<compile_context>
chip_gen: v6e
topology: v6e:2x2x1
jax: 0.10.0
libtpu: 0.0.40
codegen_flags: <defaults>
</compile_context>

<pallas_src>
import numpy as np
import jax
import jax.numpy as jnp
from jax.experimental import pallas as pl
from jax.experimental.pallas import tpu as pltpu


# ----------------------------- kernel helpers -----------------------------

def _roll_lanes(x, off, hw):
    """Cyclic left shift by `off` along the last (lane) axis, static offset."""
    off = off % hw
    if off == 0:
        return x
    return jnp.concatenate([x[:, off:], x[:, :off]], axis=1)


def _make_decoder_kernel(plan, n_masks):
    """Builds the fused kernel body.  `plan` is a static tuple of
    (kind, H, W, mask_idx) stages; parameter refs are consumed in the same
    order they were appended to the flat parameter list."""

    def kernel(*args):
        x_ref = args[0]
        mask_refs = args[1:1 + n_masks]
        o_ref = args[-1]
        prm = iter(args[1 + n_masks:-1])

        def conv3x3(x, w_ref, b_ref, m_ref, H, W):
            # x: (Cin, H*W) -> (Cout, H*W); w_ref: (Cout, 9*Cin) with column
            # order (kh*3+kw)*Cin + ci ; b_ref: (Cout, 1);
            # m_ref: (9*Cin, H*W) boundary-validity mask (host precomputed).
            HW = H * W
            taps = []
            for dh in (-1, 0, 1):
                for dw in (-1, 0, 1):
                    taps.append(_roll_lanes(x, dh * W + dw, HW))
            patches = jnp.concatenate(taps, axis=0) * m_ref[...]
            return (jnp.dot(w_ref[...], patches,
                            preferred_element_type=jnp.float32)
                    + b_ref[...])

        def ln_relu(x, g_ref, b_ref):
            # LayerNorm over the flattened (H, W) axis per channel row
            # (== nn.LayerNorm([H, W])), then ReLU.
            hw = x.shape[1]
            inv = jnp.float32(1.0 / hw)
            mean = jnp.sum(x, axis=1, keepdims=True) * inv
            var = jnp.sum(x * x, axis=1, keepdims=True) * inv - mean * mean
            xn = (x - mean) * jax.lax.rsqrt(var + jnp.float32(1e-5))
            return jnp.maximum(xn * g_ref[...] + b_ref[...], jnp.float32(0.0))

        # dense: (1, E) @ (E, H0*W0) + b  ->  flat (1, H0*W0) activation
        a = (jnp.dot(x_ref[...], next(prm)[...],
                     preferred_element_type=jnp.float32)
             + next(prm)[...])

        for kind, H, W, mi in plan:
            if kind in ("conv_in", "conv_out"):
                a = conv3x3(a, next(prm), next(prm), mask_refs[mi], H, W)
            elif kind == "conv_block":
                res = a
                a = conv3x3(a, next(prm), next(prm), mask_refs[mi], H, W)
                a = conv3x3(a, next(prm), next(prm), mask_refs[mi], H, W)
                a = conv3x3(a, next(prm), next(prm), mask_refs[mi], H, W)
                a = ln_relu(a, next(prm), next(prm)) + res   # residual AFTER ReLU
            elif kind == "identity_block":
                a = conv3x3(a, next(prm), next(prm), mask_refs[mi], H, W)
                a = ln_relu(a, next(prm), next(prm))
            elif kind == "upsample":
                # bilinear align_corners=True as one matmul with kron(A, B)^T
                a = jnp.dot(a, next(prm)[...],
                            preferred_element_type=jnp.float32)
            else:
                raise ValueError(kind)

        o_ref[...] = a.astype(o_ref.dtype)   # (1, Hf*Wf), lane-dense store

    return kernel


# ----------------------------- forward wrapper -----------------------------

def decoder_forward(params, x):
    plan = params["plan"]
    flat = params["flat"]
    masks = params["masks"]
    Hf, Wf = params["output_size"]
    N, E = x.shape

    kernel = _make_decoder_kernel(plan, len(masks))
    x3 = x.reshape(N, 1, E).astype(jnp.float32)

    in_specs = [pl.BlockSpec((None, 1, E), lambda n: (n, 0, 0))]
    for arr in list(masks) + list(flat):
        in_specs.append(pl.BlockSpec(arr.shape, lambda n: (0, 0)))

    out = pl.pallas_call(
        kernel,
        out_shape=jax.ShapeDtypeStruct((N, 1, Hf * Wf), jnp.float32),
        grid=(N,),
        in_specs=in_specs,
        out_specs=pl.BlockSpec((None, 1, Hf * Wf), lambda n: (n, 0, 0)),
        compiler_params=pltpu.CompilerParams(
            dimension_semantics=("parallel",)),   # 2 TCs on v7x
    )(x3, *masks, *flat)
    return out.reshape(N, Hf, Wf)


# ----------------------------- host-side prep -----------------------------

def _interp_matrix(n_in, n_out):
    # PyTorch bilinear, align_corners=True: src = i * (n_in-1)/(n_out-1)
    A = np.zeros((n_out, n_in), dtype=np.float32)
    if n_out == 1:
        A[0, 0] = 1.0
    else:
        for i in range(n_out):
            src = i * (n_in - 1) / (n_out - 1)
            i0 = int(np.floor(src))
            i1 = min(i0 + 1, n_in - 1)
            frac = src - i0
            A[i, i0] += 1.0 - frac
            A[i, i1] += frac
    return A


def _tap_mask(H, W, cin):
    # (9*cin, H*W) validity mask; row order (kh*3+kw)*cin + ci.
    hh, ww = np.meshgrid(np.arange(H), np.arange(W), indexing="ij")
    hh = hh.reshape(-1)
    ww = ww.reshape(-1)
    rows = []
    for dh in (-1, 0, 1):
        for dw in (-1, 0, 1):
            valid = ((hh + dh >= 0) & (hh + dh < H) &
                     (ww + dw >= 0) & (ww + dw < W)).astype(np.float32)
            rows.append(np.broadcast_to(valid[None, :], (cin, H * W)))
    return jnp.asarray(np.concatenate(rows, axis=0))


def _conv_params(key, cin, cout, scale=0.15):
    kw, kb = jax.random.split(key)
    w = scale * jax.random.normal(kw, (cout, cin, 3, 3), dtype=jnp.float32)
    b = scale * jax.random.normal(kb, (cout,), dtype=jnp.float32)
    # matmul form: (Cout, 9*Cin), columns ordered (kh*3+kw)*Cin + ci
    w_mat = jnp.transpose(w, (0, 2, 3, 1)).reshape(cout, 9 * cin)
    return (w, b), (w_mat, b.reshape(cout, 1))


def init_decoder_params(key, original_step_size, upsampling_list,
                        embedding_size, conv_size):
    keys = iter(jax.random.split(key, 64))
    H0, W0 = original_step_size

    flat, plan, mask_arrays = [], [], []
    mask_index = {}
    ref = {"blocks": []}

    def mask_slot(H, W, cin):
        k = (H, W, cin)
        if k not in mask_index:
            mask_index[k] = len(mask_arrays)
            mask_arrays.append(_tap_mask(H, W, cin))
        return mask_index[k]

    # dense
    dense_w = 0.15 * jax.random.normal(next(keys), (embedding_size, H0 * W0),
                                       dtype=jnp.float32)
    dense_b = 0.05 * jax.random.normal(next(keys), (1, H0 * W0),
                                       dtype=jnp.float32)
    flat += [dense_w, dense_b]
    ref["dense_w"], ref["dense_b"] = dense_w, dense_b

    # cov2d: 1 -> conv_size
    raw, km = _conv_params(next(keys), 1, conv_size)
    ref["cov2d"] = raw
    flat += list(km)
    plan.append(("conv_in", H0, W0, mask_slot(H0, W0, 1)))

    def add_conv_block(k, H, W):
        ks = jax.random.split(k, 3)
        raw_convs = []
        for kk in ks:
            r, m = _conv_params(kk, conv_size, conv_size)
            raw_convs.append(r)
            flat.extend(m)
        gamma = jnp.ones((H, W), jnp.float32)
        beta = jnp.zeros((H, W), jnp.float32)
        flat.append(gamma.reshape(1, H * W))
        flat.append(beta.reshape(1, H * W))
        plan.append(("conv_block", H, W, mask_slot(H, W, conv_size)))
        ref["blocks"].append(("conv_block",
                              {"convs": raw_convs, "gamma": gamma, "beta": beta}))

    def add_identity_block(k, H, W):
        r, m = _conv_params(k, conv_size, conv_size)
        flat.extend(m)
        gamma = jnp.ones((H, W), jnp.float32)
        beta = jnp.zeros((H, W), jnp.float32)
        flat.append(gamma.reshape(1, H * W))
        flat.append(beta.reshape(1, H * W))
        plan.append(("identity_block", H, W, mask_slot(H, W, conv_size)))
        ref["blocks"].append(("identity_block",
                              {"convs": [r], "gamma": gamma, "beta": beta}))

    step = [H0, W0]
    add_conv_block(next(keys), *step)
    add_identity_block(next(keys), *step)
    for s in upsampling_list:
        new_step = [step[0] * s, step[1] * s]
        A_np = _interp_matrix(step[0], new_step[0])
        B_np = _interp_matrix(step[1], new_step[1])
        flat.append(jnp.asarray(np.kron(A_np, B_np).T.astype(np.float32)))
        plan.append(("upsample", new_step[0], new_step[1], -1))
        ref["blocks"].append(("upsample",
                              {"A": jnp.asarray(A_np), "B": jnp.asarray(B_np)}))
        step = new_step
        add_conv_block(next(keys), *step)
        add_identity_block(next(keys), *step)

    # cov2d_1: conv_size -> 1
    raw, km = _conv_params(next(keys), conv_size, 1)
    ref["cov2d_1"] = raw
    flat += list(km)
    plan.append(("conv_out", step[0], step[1], mask_slot(step[0], step[1], conv_size)))

    return {"flat": flat, "masks": mask_arrays, "plan": tuple(plan), "ref": ref,
            "input_size": (H0, W0), "output_size": (step[0], step[1]),
            "embedding_size": embedding_size, "conv_size": conv_size}


# ----------------------------- plain-XLA reference -----------------------------

def _reference_forward(params, x):
    ref = params["ref"]
    H0, W0 = params["input_size"]
    Hf, Wf = params["output_size"]
    N = x.shape[0]
    hp = jax.lax.Precision.HIGHEST

    def conv(h, wb):
        w, b = wb
        y = jax.lax.conv_general_dilated(
            h, w, window_strides=(1, 1), padding=((1, 1), (1, 1)),
            dimension_numbers=("NCHW", "OIHW", "NCHW"), precision=hp)
        return y + b.reshape(1, -1, 1, 1)

    def ln_relu(h, g, b):
        mean = jnp.mean(h, axis=(2, 3), keepdims=True)
        var = jnp.mean((h - mean) ** 2, axis=(2, 3), keepdims=True)
        hn = (h - mean) * jax.lax.rsqrt(var + 1e-5)
        return jnp.maximum(hn * g[None, None] + b[None, None], 0.0)

    out = jnp.dot(x, ref["dense_w"], precision=hp) + ref["dense_b"]
    out = out.reshape(N, 1, H0, W0)
    out = conv(out, ref["cov2d"])
    for kind, p in ref["blocks"]:
        if kind == "conv_block":
            r = out
            h = conv(out, p["convs"][0])
            h = conv(h, p["convs"][1])
            h = conv(h, p["convs"][2])
            out = ln_relu(h, p["gamma"], p["beta"]) + r
        elif kind == "identity_block":
            h = conv(out, p["convs"][0])
            out = ln_relu(h, p["gamma"], p["beta"])
        else:  # upsample, bilinear align_corners=True (separable)
            out = jnp.einsum("oh,nchw,pw->ncop", p["A"], out, p["B"],
                             precision=hp)
    out = conv(out, ref["cov2d_1"])
    return out.reshape(N, Hf, Wf)


# ----------------------------- main -----------------------------

if __name__ == "__main__":
    original_step_size = [8, 8]
    upsampling_list = [2]
    embedding_size = 32
    conv_size = 4
    pooling_list = [2]  # present in the torch __init__ signature; unused in forward

    key = jax.random.PRNGKey(0)
    pkey, xkey = jax.random.split(key)
    params = init_decoder_params(pkey, original_step_size, upsampling_list,
                                 embedding_size, conv_size)

    batch = 2
    x = jax.random.normal(xkey, (batch, embedding_size), dtype=jnp.float32)

    fwd = jax.jit(lambda inp: decoder_forward(params, inp))
    y = fwd(x)
    jax.block_until_ready(y)

    expected = (batch, params["output_size"][0], params["output_size"][1])
    assert y.shape == expected, (y.shape, expected)
    assert bool(jnp.all(jnp.isfinite(y)))

    # correctness check against a plain-XLA implementation of the same module
    y_ref = _reference_forward(params, x)
    err = float(jnp.max(jnp.abs(y - y_ref)))
    assert err < 5e-2, f"max abs error vs reference: {err}"

    print("KERNEL_OK")
</pallas_src>

<mosaic_0001>
module attributes {stable_mosaic.version = 11 : i64} {
  func.func @kernel(%arg0: i32, %arg1: memref<1x1x32xf32, #tpu.memory_space<vmem>>, %arg2: memref<9x64xf32, #tpu.memory_space<vmem>>, %arg3: memref<36x64xf32, #tpu.memory_space<vmem>>, %arg4: memref<36x256xf32, #tpu.memory_space<vmem>>, %arg5: memref<32x64xf32, #tpu.memory_space<vmem>>, %arg6: memref<1x64xf32, #tpu.memory_space<vmem>>, %arg7: memref<4x9xf32, #tpu.memory_space<vmem>>, %arg8: memref<4x1xf32, #tpu.memory_space<vmem>>, %arg9: memref<4x36xf32, #tpu.memory_space<vmem>>, %arg10: memref<4x1xf32, #tpu.memory_space<vmem>>, %arg11: memref<4x36xf32, #tpu.memory_space<vmem>>, %arg12: memref<4x1xf32, #tpu.memory_space<vmem>>, %arg13: memref<4x36xf32, #tpu.memory_space<vmem>>, %arg14: memref<4x1xf32, #tpu.memory_space<vmem>>, %arg15: memref<1x64xf32, #tpu.memory_space<vmem>>, %arg16: memref<1x64xf32, #tpu.memory_space<vmem>>, %arg17: memref<4x36xf32, #tpu.memory_space<vmem>>, %arg18: memref<4x1xf32, #tpu.memory_space<vmem>>, %arg19: memref<1x64xf32, #tpu.memory_space<vmem>>, %arg20: memref<1x64xf32, #tpu.memory_space<vmem>>, %arg21: memref<64x256xf32, #tpu.memory_space<vmem>>, %arg22: memref<4x36xf32, #tpu.memory_space<vmem>>, %arg23: memref<4x1xf32, #tpu.memory_space<vmem>>, %arg24: memref<4x36xf32, #tpu.memory_space<vmem>>, %arg25: memref<4x1xf32, #tpu.memory_space<vmem>>, %arg26: memref<4x36xf32, #tpu.memory_space<vmem>>, %arg27: memref<4x1xf32, #tpu.memory_space<vmem>>, %arg28: memref<1x256xf32, #tpu.memory_space<vmem>>, %arg29: memref<1x256xf32, #tpu.memory_space<vmem>>, %arg30: memref<4x36xf32, #tpu.memory_space<vmem>>, %arg31: memref<4x1xf32, #tpu.memory_space<vmem>>, %arg32: memref<1x256xf32, #tpu.memory_space<vmem>>, %arg33: memref<1x256xf32, #tpu.memory_space<vmem>>, %arg34: memref<1x36xf32, #tpu.memory_space<vmem>>, %arg35: memref<1x1xf32, #tpu.memory_space<vmem>>, %arg36: memref<1x1x256xf32, #tpu.memory_space<vmem>>) attributes {dimension_semantics = [#tpu.dimension_semantics<parallel>], iteration_bounds = array<i64: 2>, scalar_prefetch = 0 : i64, scratch_operands = 0 : i64, tpu.core_type = #tpu.core_type<tc>, window_params = [{transform_indices = @transform_0, window_bounds = array<i64: 1, 1, 32>}, {pipeline_mode = #tpu.pipeline_mode<synchronous>, transform_indices = @transform_1, window_bounds = array<i64: 9, 64>}, {pipeline_mode = #tpu.pipeline_mode<synchronous>, transform_indices = @transform_2, window_bounds = array<i64: 36, 64>}, {pipeline_mode = #tpu.pipeline_mode<synchronous>, transform_indices = @transform_3, window_bounds = array<i64: 36, 256>}, {pipeline_mode = #tpu.pipeline_mode<synchronous>, transform_indices = @transform_4, window_bounds = array<i64: 32, 64>}, {pipeline_mode = #tpu.pipeline_mode<synchronous>, transform_indices = @transform_5, window_bounds = array<i64: 1, 64>}, {pipeline_mode = #tpu.pipeline_mode<synchronous>, transform_indices = @transform_6, window_bounds = array<i64: 4, 9>}, {pipeline_mode = #tpu.pipeline_mode<synchronous>, transform_indices = @transform_7, window_bounds = array<i64: 4, 1>}, {pipeline_mode = #tpu.pipeline_mode<synchronous>, transform_indices = @transform_8, window_bounds = array<i64: 4, 36>}, {pipeline_mode = #tpu.pipeline_mode<synchronous>, transform_indices = @transform_9, window_bounds = array<i64: 4, 1>}, {pipeline_mode = #tpu.pipeline_mode<synchronous>, transform_indices = @transform_10, window_bounds = array<i64: 4, 36>}, {pipeline_mode = #tpu.pipeline_mode<synchronous>, transform_indices = @transform_11, window_bounds = array<i64: 4, 1>}, {pipeline_mode = #tpu.pipeline_mode<synchronous>, transform_indices = @transform_12, window_bounds = array<i64: 4, 36>}, {pipeline_mode = #tpu.pipeline_mode<synchronous>, transform_indices = @transform_13, window_bounds = array<i64: 4, 1>}, {pipeline_mode = #tpu.pipeline_mode<synchronous>, transform_indices = @transform_14, window_bounds = array<i64: 1, 64>}, {pipeline_mode = #tpu.pipeline_mode<synchronous>, transform_indices = @transform_15, window_bounds = array<i64: 1, 64>}, {pipeline_mode = #tpu.pipeline_mode<synchronous>, transform_indices = @transform_16, window_bounds = array<i64: 4, 36>}, {pipeline_mode = #tpu.pipeline_mode<synchronous>, transform_indices = @transform_17, window_bounds = array<i64: 4, 1>}, {pipeline_mode = #tpu.pipeline_mode<synchronous>, transform_indices = @transform_18, window_bounds = array<i64: 1, 64>}, {pipeline_mode = #tpu.pipeline_mode<synchronous>, transform_indices = @transform_19, window_bounds = array<i64: 1, 64>}, {pipeline_mode = #tpu.pipeline_mode<synchronous>, transform_indices = @transform_20, window_bounds = array<i64: 64, 256>}, {pipeline_mode = #tpu.pipeline_mode<synchronous>, transform_indices = @transform_21, window_bounds = array<i64: 4, 36>}, {pipeline_mode = #tpu.pipeline_mode<synchronous>, transform_indices = @transform_22, window_bounds = array<i64: 4, 1>}, {pipeline_mode = #tpu.pipeline_mode<synchronous>, transform_indices = @transform_23, window_bounds = array<i64: 4, 36>}, {pipeline_mode = #tpu.pipeline_mode<synchronous>, transform_indices = @transform_24, window_bounds = array<i64: 4, 1>}, {pipeline_mode = #tpu.pipeline_mode<synchronous>, transform_indices = @transform_25, window_bounds = array<i64: 4, 36>}, {pipeline_mode = #tpu.pipeline_mode<synchronous>, transform_indices = @transform_26, window_bounds = array<i64: 4, 1>}, {pipeline_mode = #tpu.pipeline_mode<synchronous>, transform_indices = @transform_27, window_bounds = array<i64: 1, 256>}, {pipeline_mode = #tpu.pipeline_mode<synchronous>, transform_indices = @transform_28, window_bounds = array<i64: 1, 256>}, {pipeline_mode = #tpu.pipeline_mode<synchronous>, transform_indices = @transform_29, window_bounds = array<i64: 4, 36>}, {pipeline_mode = #tpu.pipeline_mode<synchronous>, transform_indices = @transform_30, window_bounds = array<i64: 4, 1>}, {pipeline_mode = #tpu.pipeline_mode<synchronous>, transform_indices = @transform_31, window_bounds = array<i64: 1, 256>}, {pipeline_mode = #tpu.pipeline_mode<synchronous>, transform_indices = @transform_32, window_bounds = array<i64: 1, 256>}, {pipeline_mode = #tpu.pipeline_mode<synchronous>, transform_indices = @transform_33, window_bounds = array<i64: 1, 36>}, {pipeline_mode = #tpu.pipeline_mode<synchronous>, transform_indices = @transform_34, window_bounds = array<i64: 1, 1>}, {transform_indices = @transform_35, window_bounds = array<i64: 1, 1, 256>}]} {
    %c0 = arith.constant 0 : index
    %c0_0 = arith.constant 0 : index
    %c0_1 = arith.constant 0 : index
    %0 = vector.load %arg1[%c0, %c0_0, %c0_1] : memref<1x1x32xf32, #tpu.memory_space<vmem>>, vector<1x1x32xf32>
    %1 = vector.shape_cast %0 : vector<1x1x32xf32> to vector<1x32xf32>
    %c0_2 = arith.constant 0 : index
    %c0_3 = arith.constant 0 : index
    %2 = vector.load %arg5[%c0_2, %c0_3] : memref<32x64xf32, #tpu.memory_space<vmem>>, vector<32x64xf32>
    %cst = arith.constant dense<0.000000e+00> : vector<1x64xf32>
    %3 = tpu.matmul %1, %2, %cst {dimension_numbers = #tpu.dot_dimension_numbers<[1], [0], [0], [1], [0, 0, 1, 1], [], []>} : vector<1x32xf32>, vector<32x64xf32>, vector<1x64xf32> -> vector<1x64xf32>
    %c0_4 = arith.constant 0 : index
    %c0_5 = arith.constant 0 : index
    %4 = vector.load %arg6[%c0_4, %c0_5] : memref<1x64xf32, #tpu.memory_space<vmem>>, vector<1x64xf32>
    %5 = arith.addf %3, %4 : vector<1x64xf32>
    %6 = vector.extract_strided_slice %5 {offsets = [0, 55], sizes = [1, 9], strides = [1, 1]} : vector<1x64xf32> to vector<1x9xf32>
    %7 = vector.extract_strided_slice %5 {offsets = [0, 0], sizes = [1, 55], strides = [1, 1]} : vector<1x64xf32> to vector<1x55xf32>
    %8 = tpu.concatenate %6, %7 in 1 : vector<1x9xf32>, vector<1x55xf32> -> vector<1x64xf32>
    %9 = vector.extract_strided_slice %5 {offsets = [0, 56], sizes = [1, 8], strides = [1, 1]} : vector<1x64xf32> to vector<1x8xf32>
    %10 = vector.extract_strided_slice %5 {offsets = [0, 0], sizes = [1, 56], strides = [1, 1]} : vector<1x64xf32> to vector<1x56xf32>
    %11 = tpu.concatenate %9, %10 in 1 : vector<1x8xf32>, vector<1x56xf32> -> vector<1x64xf32>
    %12 = vector.extract_strided_slice %5 {offsets = [0, 57], sizes = [1, 7], strides = [1, 1]} : vector<1x64xf32> to vector<1x7xf32>
    %13 = vector.extract_strided_slice %5 {offsets = [0, 0], sizes = [1, 57], strides = [1, 1]} : vector<1x64xf32> to vector<1x57xf32>
    %14 = tpu.concatenate %12, %13 in 1 : vector<1x7xf32>, vector<1x57xf32> -> vector<1x64xf32>
    %15 = vector.extract_strided_slice %5 {offsets = [0, 63], sizes = [1, 1], strides = [1, 1]} : vector<1x64xf32> to vector<1x1xf32>
    %16 = vector.extract_strided_slice %5 {offsets = [0, 0], sizes = [1, 63], strides = [1, 1]} : vector<1x64xf32> to vector<1x63xf32>
    %17 = tpu.concatenate %15, %16 in 1 : vector<1x1xf32>, vector<1x63xf32> -> vector<1x64xf32>
    %18 = vector.extract_strided_slice %5 {offsets = [0, 1], sizes = [1, 63], strides = [1, 1]} : vector<1x64xf32> to vector<1x63xf32>
    %19 = vector.extract_strided_slice %5 {offsets = [0, 0], sizes = [1, 1], strides = [1, 1]} : vector<1x64xf32> to vector<1x1xf32>
    %20 = tpu.concatenate %18, %19 in 1 : vector<1x63xf32>, vector<1x1xf32> -> vector<1x64xf32>
    %21 = vector.extract_strided_slice %5 {offsets = [0, 7], sizes = [1, 57], strides = [1, 1]} : vector<1x64xf32> to vector<1x57xf32>
    %22 = vector.extract_strided_slice %5 {offsets = [0, 0], sizes = [1, 7], strides = [1, 1]} : vector<1x64xf32> to vector<1x7xf32>
    %23 = tpu.concatenate %21, %22 in 1 : vector<1x57xf32>, vector<1x7xf32> -> vector<1x64xf32>
    %24 = vector.extract_strided_slice %5 {offsets = [0, 8], sizes = [1, 56], strides = [1, 1]} : vector<1x64xf32> to vector<1x56xf32>
    %25 = vector.extract_strided_slice %5 {offsets = [0, 0], sizes = [1, 8], strides = [1, 1]} : vector<1x64xf32> to vector<1x8xf32>
    %26 = tpu.concatenate %24, %25 in 1 : vector<1x56xf32>, vector<1x8xf32> -> vector<1x64xf32>
    %27 = vector.extract_strided_slice %5 {offsets = [0, 9], sizes = [1, 55], strides = [1, 1]} : vector<1x64xf32> to vector<1x55xf32>
    %28 = vector.extract_strided_slice %5 {offsets = [0, 0], sizes = [1, 9], strides = [1, 1]} : vector<1x64xf32> to vector<1x9xf32>
    %29 = tpu.concatenate %27, %28 in 1 : vector<1x55xf32>, vector<1x9xf32> -> vector<1x64xf32>
    %30 = tpu.concatenate %8, %11, %14, %17, %5, %20, %23, %26, %29 in 0 : vector<1x64xf32>, vector<1x64xf32>, vector<1x64xf32>, vector<1x64xf32>, vector<1x64xf32>, vector<1x64xf32>, vector<1x64xf32>, vector<1x64xf32>, vector<1x64xf32> -> vector<9x64xf32>
    %c0_6 = arith.constant 0 : index
    %c0_7 = arith.constant 0 : index
    %31 = vector.load %arg2[%c0_6, %c0_7] : memref<9x64xf32, #tpu.memory_space<vmem>>, vector<9x64xf32>
    %32 = arith.mulf %30, %31 : vector<9x64xf32>
    %c0_8 = arith.constant 0 : index
    %c0_9 = arith.constant 0 : index
    %33 = vector.load %arg7[%c0_8, %c0_9] : memref<4x9xf32, #tpu.memory_space<vmem>>, vector<4x9xf32>
    %cst_10 = arith.constant dense<0.000000e+00> : vector<4x64xf32>
    %34 = tpu.matmul %33, %32, %cst_10 {dimension_numbers = #tpu.dot_dimension_numbers<[1], [0], [0], [1], [0, 0, 1, 1], [], []>} : vector<4x9xf32>, vector<9x64xf32>, vector<4x64xf32> -> vector<4x64xf32>
    %c0_11 = arith.constant 0 : index
    %c0_12 = arith.constant 0 : index
    %35 = vector.load %arg8[%c0_11, %c0_12] : memref<4x1xf32, #tpu.memory_space<vmem>>, vector<4x1xf32>
    %36 = vector.broadcast %35 : vector<4x1xf32> to vector<4x64xf32>
    %37 = arith.addf %34, %36 : vector<4x64xf32>
    %38 = vector.extract_strided_slice %37 {offsets = [0, 55], sizes = [4, 9], strides = [1, 1]} : vector<4x64xf32> to vector<4x9xf32>
    %39 = vector.extract_strided_slice %37 {offsets = [0, 0], sizes = [4, 55], strides = [1, 1]} : vector<4x64xf32> to vector<4x55xf32>
    %40 = tpu.concatenate %38, %39 in 1 : vector<4x9xf32>, vector<4x55xf32> -> vector<4x64xf32>
    %41 = vector.extract_strided_slice %37 {offsets = [0, 56], sizes = [4, 8], strides = [1, 1]} : vector<4x64xf32> to vector<4x8xf32>
    %42 = vector.extract_strided_slice %37 {offsets = [0, 0], sizes = [4, 56], strides = [1, 1]} : vector<4x64xf32> to vector<4x56xf32>
    %43 = tpu.concatenate %41, %42 in 1 : vector<4x8xf32>, vector<4x56xf32> -> vector<4x64xf32>
    %44 = vector.extract_strided_slice %37 {offsets = [0, 57], sizes = [4, 7], strides = [1, 1]} : vector<4x64xf32> to vector<4x7xf32>
    %45 = vector.extract_strided_slice %37 {offsets = [0, 0], sizes = [4, 57], strides = [1, 1]} : vector<4x64xf32> to vector<4x57xf32>
    %46 = tpu.concatenate %44, %45 in 1 : vector<4x7xf32>, vector<4x57xf32> -> vector<4x64xf32>
    %47 = vector.extract_strided_slice %37 {offsets = [0, 63], sizes = [4, 1], strides = [1, 1]} : vector<4x64xf32> to vector<4x1xf32>
    %48 = vector.extract_strided_slice %37 {offsets = [0, 0], sizes = [4, 63], strides = [1, 1]} : vector<4x64xf32> to vector<4x63xf32>
    %49 = tpu.concatenate %47, %48 in 1 : vector<4x1xf32>, vector<4x63xf32> -> vector<4x64xf32>
    %50 = vector.extract_strided_slice %37 {offsets = [0, 1], sizes = [4, 63], strides = [1, 1]} : vector<4x64xf32> to vector<4x63xf32>
    %51 = vector.extract_strided_slice %37 {offsets = [0, 0], sizes = [4, 1], strides = [1, 1]} : vector<4x64xf32> to vector<4x1xf32>
    %52 = tpu.concatenate %50, %51 in 1 : vector<4x63xf32>, vector<4x1xf32> -> vector<4x64xf32>
    %53 = vector.extract_strided_slice %37 {offsets = [0, 7], sizes = [4, 57], strides = [1, 1]} : vector<4x64xf32> to vector<4x57xf32>
    %54 = vector.extract_strided_slice %37 {offsets = [0, 0], sizes = [4, 7], strides = [1, 1]} : vector<4x64xf32> to vector<4x7xf32>
    %55 = tpu.concatenate %53, %54 in 1 : vector<4x57xf32>, vector<4x7xf32> -> vector<4x64xf32>
    %56 = vector.extract_strided_slice %37 {offsets = [0, 8], sizes = [4, 56], strides = [1, 1]} : vector<4x64xf32> to vector<4x56xf32>
    %57 = vector.extract_strided_slice %37 {offsets = [0, 0], sizes = [4, 8], strides = [1, 1]} : vector<4x64xf32> to vector<4x8xf32>
    %58 = tpu.concatenate %56, %57 in 1 : vector<4x56xf32>, vector<4x8xf32> -> vector<4x64xf32>
    %59 = vector.extract_strided_slice %37 {offsets = [0, 9], sizes = [4, 55], strides = [1, 1]} : vector<4x64xf32> to vector<4x55xf32>
    %60 = vector.extract_strided_slice %37 {offsets = [0, 0], sizes = [4, 9], strides = [1, 1]} : vector<4x64xf32> to vector<4x9xf32>
    %61 = tpu.concatenate %59, %60 in 1 : vector<4x55xf32>, vector<4x9xf32> -> vector<4x64xf32>
    %62 = tpu.concatenate %40, %43, %46, %49, %37, %52, %55, %58, %61 in 0 : vector<4x64xf32>, vector<4x64xf32>, vector<4x64xf32>, vector<4x64xf32>, vector<4x64xf32>, vector<4x64xf32>, vector<4x64xf32>, vector<4x64xf32>, vector<4x64xf32> -> vector<36x64xf32>
    %c0_13 = arith.constant 0 : index
    %c0_14 = arith.constant 0 : index
    %63 = vector.load %arg3[%c0_13, %c0_14] : memref<36x64xf32, #tpu.memory_space<vmem>>, vector<36x64xf32>
    %64 = arith.mulf %62, %63 : vector<36x64xf32>
    %c0_15 = arith.constant 0 : index
    %c0_16 = arith.constant 0 : index
    %65 = vector.load %arg9[%c0_15, %c0_16] : memref<4x36xf32, #tpu.memory_space<vmem>>, vector<4x36xf32>
    %cst_17 = arith.constant dense<0.000000e+00> : vector<4x64xf32>
    %66 = tpu.matmul %65, %64, %cst_17 {dimension_numbers = #tpu.dot_dimension_numbers<[1], [0], [0], [1], [0, 0, 1, 1], [], []>} : vector<4x36xf32>, vector<36x64xf32>, vector<4x64xf32> -> vector<4x64xf32>
    %c0_18 = arith.constant 0 : index
    %c0_19 = arith.constant 0 : index
    %67 = vector.load %arg10[%c0_18, %c0_19] : memref<4x1xf32, #tpu.memory_space<vmem>>, vector<4x1xf32>
    %68 = vector.broadcast %67 : vector<4x1xf32> to vector<4x64xf32>
    %69 = arith.addf %66, %68 : vector<4x64xf32>
    %70 = vector.extract_strided_slice %69 {offsets = [0, 55], sizes = [4, 9], strides = [1, 1]} : vector<4x64xf32> to vector<4x9xf32>
    %71 = vector.extract_strided_slice %69 {offsets = [0, 0], sizes = [4, 55], strides = [1, 1]} : vector<4x64xf32> to vector<4x55xf32>
    %72 = tpu.concatenate %70, %71 in 1 : vector<4x9xf32>, vector<4x55xf32> -> vector<4x64xf32>
    %73 = vector.extract_strided_slice %69 {offsets = [0, 56], sizes = [4, 8], strides = [1, 1]} : vector<4x64xf32> to vector<4x8xf32>
    %74 = vector.extract_strided_slice %69 {offsets = [0, 0], sizes = [4, 56], strides = [1, 1]} : vector<4x64xf32> to vector<4x56xf32>
    %75 = tpu.concatenate %73, %74 in 1 : vector<4x8xf32>, vector<4x56xf32> -> vector<4x64xf32>
    %76 = vector.extract_strided_slice %69 {offsets = [0, 57], sizes = [4, 7], strides = [1, 1]} : vector<4x64xf32> to vector<4x7xf32>
    %77 = vector.extract_strided_slice %69 {offsets = [0, 0], sizes = [4, 57], strides = [1, 1]} : vector<4x64xf32> to vector<4x57xf32>
    %78 = tpu.concatenate %76, %77 in 1 : vector<4x7xf32>, vector<4x57xf32> -> vector<4x64xf32>
    %79 = vector.extract_strided_slice %69 {offsets = [0, 63], sizes = [4, 1], strides = [1, 1]} : vector<4x64xf32> to vector<4x1xf32>
    %80 = vector.extract_strided_slice %69 {offsets = [0, 0], sizes = [4, 63], strides = [1, 1]} : vector<4x64xf32> to vector<4x63xf32>
    %81 = tpu.concatenate %79, %80 in 1 : vector<4x1xf32>, vector<4x63xf32> -> vector<4x64xf32>
    %82 = vector.extract_strided_slice %69 {offsets = [0, 1], sizes = [4, 63], strides = [1, 1]} : vector<4x64xf32> to vector<4x63xf32>
    %83 = vector.extract_strided_slice %69 {offsets = [0, 0], sizes = [4, 1], strides = [1, 1]} : vector<4x64xf32> to vector<4x1xf32>
    %84 = tpu.concatenate %82, %83 in 1 : vector<4x63xf32>, vector<4x1xf32> -> vector<4x64xf32>
    %85 = vector.extract_strided_slice %69 {offsets = [0, 7], sizes = [4, 57], strides = [1, 1]} : vector<4x64xf32> to vector<4x57xf32>
    %86 = vector.extract_strided_slice %69 {offsets = [0, 0], sizes = [4, 7], strides = [1, 1]} : vector<4x64xf32> to vector<4x7xf32>
    %87 = tpu.concatenate %85, %86 in 1 : vector<4x57xf32>, vector<4x7xf32> -> vector<4x64xf32>
    %88 = vector.extract_strided_slice %69 {offsets = [0, 8], sizes = [4, 56], strides = [1, 1]} : vector<4x64xf32> to vector<4x56xf32>
    %89 = vector.extract_strided_slice %69 {offsets = [0, 0], sizes = [4, 8], strides = [1, 1]} : vector<4x64xf32> to vector<4x8xf32>
    %90 = tpu.concatenate %88, %89 in 1 : vector<4x56xf32>, vector<4x8xf32> -> vector<4x64xf32>
    %91 = vector.extract_strided_slice %69 {offsets = [0, 9], sizes = [4, 55], strides = [1, 1]} : vector<4x64xf32> to vector<4x55xf32>
    %92 = vector.extract_strided_slice %69 {offsets = [0, 0], sizes = [4, 9], strides = [1, 1]} : vector<4x64xf32> to vector<4x9xf32>
    %93 = tpu.concatenate %91, %92 in 1 : vector<4x55xf32>, vector<4x9xf32> -> vector<4x64xf32>
    %94 = tpu.concatenate %72, %75, %78, %81, %69, %84, %87, %90, %93 in 0 : vector<4x64xf32>, vector<4x64xf32>, vector<4x64xf32>, vector<4x64xf32>, vector<4x64xf32>, vector<4x64xf32>, vector<4x64xf32>, vector<4x64xf32>, vector<4x64xf32> -> vector<36x64xf32>
    %c0_20 = arith.constant 0 : index
    %c0_21 = arith.constant 0 : index
    %95 = vector.load %arg3[%c0_20, %c0_21] : memref<36x64xf32, #tpu.memory_space<vmem>>, vector<36x64xf32>
    %96 = arith.mulf %94, %95 : vector<36x64xf32>
    %c0_22 = arith.constant 0 : index
    %c0_23 = arith.constant 0 : index
    %97 = vector.load %arg11[%c0_22, %c0_23] : memref<4x36xf32, #tpu.memory_space<vmem>>, vector<4x36xf32>
    %cst_24 = arith.constant dense<0.000000e+00> : vector<4x64xf32>
    %98 = tpu.matmul %97, %96, %cst_24 {dimension_numbers = #tpu.dot_dimension_numbers<[1], [0], [0], [1], [0, 0, 1, 1], [], []>} : vector<4x36xf32>, vector<36x64xf32>, vector<4x64xf32> -> vector<4x64xf32>
    %c0_25 = arith.constant 0 : index
    %c0_26 = arith.constant 0 : index
    %99 = vector.load %arg12[%c0_25, %c0_26] : memref<4x1xf32, #tpu.memory_space<vmem>>, vector<4x1xf32>
    %100 = vector.broadcast %99 : vector<4x1xf32> to vector<4x64xf32>
    %101 = arith.addf %98, %100 : vector<4x64xf32>
    %102 = vector.extract_strided_slice %101 {offsets = [0, 55], sizes = [4, 9], strides = [1, 1]} : vector<4x64xf32> to vector<4x9xf32>
    %103 = vector.extract_strided_slice %101 {offsets = [0, 0], sizes = [4, 55], strides = [1, 1]} : vector<4x64xf32> to vector<4x55xf32>
    %104 = tpu.concatenate %102, %103 in 1 : vector<4x9xf32>, vector<4x55xf32> -> vector<4x64xf32>
    %105 = vector.extract_strided_slice %101 {offsets = [0, 56], sizes = [4, 8], strides = [1, 1]} : vector<4x64xf32> to vector<4x8xf32>
    %106 = vector.extract_strided_slice %101 {offsets = [0, 0], sizes = [4, 56], strides = [1, 1]} : vector<4x64xf32> to vector<4x56xf32>
    %107 = tpu.concatenate %105, %106 in 1 : vector<4x8xf32>, vector<4x56xf32> -> vector<4x64xf32>
    %108 = vector.extract_strided_slice %101 {offsets = [0, 57], sizes = [4, 7], strides = [1, 1]} : vector<4x64xf32> to vector<4x7xf32>
    %109 = vector.extract_strided_slice %101 {offsets = [0, 0], sizes = [4, 57], strides = [1, 1]} : vector<4x64xf32> to vector<4x57xf32>
    %110 = tpu.concatenate %108, %109 in 1 : vector<4x7xf32>, vector<4x57xf32> -> vector<4x64xf32>
    %111 = vector.extract_strided_slice %101 {offsets = [0, 63], sizes = [4, 1], strides = [1, 1]} : vector<4x64xf32> to vector<4x1xf32>
    %112 = vector.extract_strided_slice %101 {offsets = [0, 0], sizes = [4, 63], strides = [1, 1]} : vector<4x64xf32> to vector<4x63xf32>
    %113 = tpu.concatenate %111, %112 in 1 : vector<4x1xf32>, vector<4x63xf32> -> vector<4x64xf32>
    %114 = vector.extract_strided_slice %101 {offsets = [0, 1], sizes = [4, 63], strides = [1, 1]} : vector<4x64xf32> to vector<4x63xf32>
    %115 = vector.extract_strided_slice %101 {offsets = [0, 0], sizes = [4, 1], strides = [1, 1]} : vector<4x64xf32> to vector<4x1xf32>
    %116 = tpu.concatenate %114, %115 in 1 : vector<4x63xf32>, vector<4x1xf32> -> vector<4x64xf32>
    %117 = vector.extract_strided_slice %101 {offsets = [0, 7], sizes = [4, 57], strides = [1, 1]} : vector<4x64xf32> to vector<4x57xf32>
    %118 = vector.extract_strided_slice %101 {offsets = [0, 0], sizes = [4, 7], strides = [1, 1]} : vector<4x64xf32> to vector<4x7xf32>
    %119 = tpu.concatenate %117, %118 in 1 : vector<4x57xf32>, vector<4x7xf32> -> vector<4x64xf32>
    %120 = vector.extract_strided_slice %101 {offsets = [0, 8], sizes = [4, 56], strides = [1, 1]} : vector<4x64xf32> to vector<4x56xf32>
    %121 = vector.extract_strided_slice %101 {offsets = [0, 0], sizes = [4, 8], strides = [1, 1]} : vector<4x64xf32> to vector<4x8xf32>
    %122 = tpu.concatenate %120, %121 in 1 : vector<4x56xf32>, vector<4x8xf32> -> vector<4x64xf32>
    %123 = vector.extract_strided_slice %101 {offsets = [0, 9], sizes = [4, 55], strides = [1, 1]} : vector<4x64xf32> to vector<4x55xf32>
    %124 = vector.extract_strided_slice %101 {offsets = [0, 0], sizes = [4, 9], strides = [1, 1]} : vector<4x64xf32> to vector<4x9xf32>
    %125 = tpu.concatenate %123, %124 in 1 : vector<4x55xf32>, vector<4x9xf32> -> vector<4x64xf32>
    %126 = tpu.concatenate %104, %107, %110, %113, %101, %116, %119, %122, %125 in 0 : vector<4x64xf32>, vector<4x64xf32>, vector<4x64xf32>, vector<4x64xf32>, vector<4x64xf32>, vector<4x64xf32>, vector<4x64xf32>, vector<4x64xf32>, vector<4x64xf32> -> vector<36x64xf32>
    %c0_27 = arith.constant 0 : index
    %c0_28 = arith.constant 0 : index
    %127 = vector.load %arg3[%c0_27, %c0_28] : memref<36x64xf32, #tpu.memory_space<vmem>>, vector<36x64xf32>
    %128 = arith.mulf %126, %127 : vector<36x64xf32>
    %c0_29 = arith.constant 0 : index
    %c0_30 = arith.constant 0 : index
    %129 = vector.load %arg13[%c0_29, %c0_30] : memref<4x36xf32, #tpu.memory_space<vmem>>, vector<4x36xf32>
    %cst_31 = arith.constant dense<0.000000e+00> : vector<4x64xf32>
    %130 = tpu.matmul %129, %128, %cst_31 {dimension_numbers = #tpu.dot_dimension_numbers<[1], [0], [0], [1], [0, 0, 1, 1], [], []>} : vector<4x36xf32>, vector<36x64xf32>, vector<4x64xf32> -> vector<4x64xf32>
    %c0_32 = arith.constant 0 : index
    %c0_33 = arith.constant 0 : index
    %131 = vector.load %arg14[%c0_32, %c0_33] : memref<4x1xf32, #tpu.memory_space<vmem>>, vector<4x1xf32>
    %132 = vector.broadcast %131 : vector<4x1xf32> to vector<4x64xf32>
    %133 = arith.addf %130, %132 : vector<4x64xf32>
    %cst_34 = arith.constant dense<0.000000e+00> : vector<4xf32>
    %134 = vector.multi_reduction <add>, %133, %cst_34 [1] : vector<4x64xf32> to vector<4xf32>
    %135 = vector.shape_cast %134 : vector<4xf32> to vector<4x1xf32>
    %cst_35 = arith.constant 1.562500e-02 : f32
    %136 = vector.broadcast %cst_35 : f32 to vector<4x1xf32>
    %137 = arith.mulf %135, %136 : vector<4x1xf32>
    %138 = arith.mulf %133, %133 : vector<4x64xf32>
    %cst_36 = arith.constant dense<0.000000e+00> : vector<4xf32>
    %139 = vector.multi_reduction <add>, %138, %cst_36 [1] : vector<4x64xf32> to vector<4xf32>
    %140 = vector.shape_cast %139 : vector<4xf32> to vector<4x1xf32>
    %cst_37 = arith.constant 1.562500e-02 : f32
    %141 = vector.broadcast %cst_37 : f32 to vector<4x1xf32>
    %142 = arith.mulf %140, %141 : vector<4x1xf32>
    %143 = arith.mulf %137, %137 : vector<4x1xf32>
    %144 = arith.subf %142, %143 : vector<4x1xf32>
    %145 = vector.broadcast %137 : vector<4x1xf32> to vector<4x64xf32>
    %146 = arith.subf %133, %145 : vector<4x64xf32>
    %cst_38 = arith.constant 9.99999974E-6 : f32
    %147 = vector.broadcast %cst_38 : f32 to vector<4x1xf32>
    %148 = arith.addf %144, %147 : vector<4x1xf32>
    %149 = math.rsqrt %148 : vector<4x1xf32>
    %150 = vector.broadcast %149 : vector<4x1xf32> to vector<4x64xf32>
    %151 = arith.mulf %146, %150 : vector<4x64xf32>
    %c0_39 = arith.constant 0 : index
    %c0_40 = arith.constant 0 : index
    %152 = vector.load %arg15[%c0_39, %c0_40] : memref<1x64xf32, #tpu.memory_space<vmem>>, vector<1x64xf32>
    %153 = vector.broadcast %152 : vector<1x64xf32> to vector<4x64xf32>
    %154 = arith.mulf %151, %153 : vector<4x64xf32>
    %c0_41 = arith.constant 0 : index
    %c0_42 = arith.constant 0 : index
    %155 = vector.load %arg16[%c0_41, %c0_42] : memref<1x64xf32, #tpu.memory_space<vmem>>, vector<1x64xf32>
    %156 = vector.broadcast %155 : vector<1x64xf32> to vector<4x64xf32>
    %157 = arith.addf %154, %156 : vector<4x64xf32>
    %cst_43 = arith.constant 0.000000e+00 : f32
    %158 = vector.broadcast %cst_43 : f32 to vector<4x64xf32>
    %159 = arith.maximumf %157, %158 : vector<4x64xf32>
    %160 = arith.addf %159, %37 : vector<4x64xf32>
    %161 = vector.extract_strided_slice %160 {offsets = [0, 55], sizes = [4, 9], strides = [1, 1]} : vector<4x64xf32> to vector<4x9xf32>
    %162 = vector.extract_strided_slice %160 {offsets = [0, 0], sizes = [4, 55], strides = [1, 1]} : vector<4x64xf32> to vector<4x55xf32>
    %163 = tpu.concatenate %161, %162 in 1 : vector<4x9xf32>, vector<4x55xf32> -> vector<4x64xf32>
    %164 = vector.extract_strided_slice %160 {offsets = [0, 56], sizes = [4, 8], strides = [1, 1]} : vector<4x64xf32> to vector<4x8xf32>
    %165 = vector.extract_strided_slice %160 {offsets = [0, 0], sizes = [4, 56], strides = [1, 1]} : vector<4x64xf32> to vector<4x56xf32>
    %166 = tpu.concatenate %164, %165 in 1 : vector<4x8xf32>, vector<4x56xf32> -> vector<4x64xf32>
    %167 = vector.extract_strided_slice %160 {offsets = [0, 57], sizes = [4, 7], strides = [1, 1]} : vector<4x64xf32> to vector<4x7xf32>
    %168 = vector.extract_strided_slice %160 {offsets = [0, 0], sizes = [4, 57], strides = [1, 1]} : vector<4x64xf32> to vector<4x57xf32>
    %169 = tpu.concatenate %167, %168 in 1 : vector<4x7xf32>, vector<4x57xf32> -> vector<4x64xf32>
    %170 = vector.extract_strided_slice %160 {offsets = [0, 63], sizes = [4, 1], strides = [1, 1]} : vector<4x64xf32> to vector<4x1xf32>
    %171 = vector.extract_strided_slice %160 {offsets = [0, 0], sizes = [4, 63], strides = [1, 1]} : vector<4x64xf32> to vector<4x63xf32>
    %172 = tpu.concatenate %170, %171 in 1 : vector<4x1xf32>, vector<4x63xf32> -> vector<4x64xf32>
    %173 = vector.extract_strided_slice %160 {offsets = [0, 1], sizes = [4, 63], strides = [1, 1]} : vector<4x64xf32> to vector<4x63xf32>
    %174 = vector.extract_strided_slice %160 {offsets = [0, 0], sizes = [4, 1], strides = [1, 1]} : vector<4x64xf32> to vector<4x1xf32>
    %175 = tpu.concatenate %173, %174 in 1 : vector<4x63xf32>, vector<4x1xf32> -> vector<4x64xf32>
    %176 = vector.extract_strided_slice %160 {offsets = [0, 7], sizes = [4, 57], strides = [1, 1]} : vector<4x64xf32> to vector<4x57xf32>
    %177 = vector.extract_strided_slice %160 {offsets = [0, 0], sizes = [4, 7], strides = [1, 1]} : vector<4x64xf32> to vector<4x7xf32>
    %178 = tpu.concatenate %176, %177 in 1 : vector<4x57xf32>, vector<4x7xf32> -> vector<4x64xf32>
    %179 = vector.extract_strided_slice %160 {offsets = [0, 8], sizes = [4, 56], strides = [1, 1]} : vector<4x64xf32> to vector<4x56xf32>
    %180 = vector.extract_strided_slice %160 {offsets = [0, 0], sizes = [4, 8], strides = [1, 1]} : vector<4x64xf32> to vector<4x8xf32>
    %181 = tpu.concatenate %179, %180 in 1 : vector<4x56xf32>, vector<4x8xf32> -> vector<4x64xf32>
    %182 = vector.extract_strided_slice %160 {offsets = [0, 9], sizes = [4, 55], strides = [1, 1]} : vector<4x64xf32> to vector<4x55xf32>
    %183 = vector.extract_strided_slice %160 {offsets = [0, 0], sizes = [4, 9], strides = [1, 1]} : vector<4x64xf32> to vector<4x9xf32>
    %184 = tpu.concatenate %182, %183 in 1 : vector<4x55xf32>, vector<4x9xf32> -> vector<4x64xf32>
    %185 = tpu.concatenate %163, %166, %169, %172, %160, %175, %178, %181, %184 in 0 : vector<4x64xf32>, vector<4x64xf32>, vector<4x64xf32>, vector<4x64xf32>, vector<4x64xf32>, vector<4x64xf32>, vector<4x64xf32>, vector<4x64xf32>, vector<4x64xf32> -> vector<36x64xf32>
    %c0_44 = arith.constant 0 : index
    %c0_45 = arith.constant 0 : index
    %186 = vector.load %arg3[%c0_44, %c0_45] : memref<36x64xf32, #tpu.memory_space<vmem>>, vector<36x64xf32>
    %187 = arith.mulf %185, %186 : vector<36x64xf32>
    %c0_46 = arith.constant 0 : index
    %c0_47 = arith.constant 0 : index
    %188 = vector.load %arg17[%c0_46, %c0_47] : memref<4x36xf32, #tpu.memory_space<vmem>>, vector<4x36xf32>
    %cst_48 = arith.constant dense<0.000000e+00> : vector<4x64xf32>
    %189 = tpu.matmul %188, %187, %cst_48 {dimension_numbers = #tpu.dot_dimension_numbers<[1], [0], [0], [1], [0, 0, 1, 1], [], []>} : vector<4x36xf32>, vector<36x64xf32>, vector<4x64xf32> -> vector<4x64xf32>
    %c0_49 = arith.constant 0 : index
    %c0_50 = arith.constant 0 : index
    %190 = vector.load %arg18[%c0_49, %c0_50] : memref<4x1xf32, #tpu.memory_space<vmem>>, vector<4x1xf32>
    %191 = vector.broadcast %190 : vector<4x1xf32> to vector<4x64xf32>
    %192 = arith.addf %189, %191 : vector<4x64xf32>
    %cst_51 = arith.constant dense<0.000000e+00> : vector<4xf32>
    %193 = vector.multi_reduction <add>, %192, %cst_51 [1] : vector<4x64xf32> to vector<4xf32>
    %194 = vector.shape_cast %193 : vector<4xf32> to vector<4x1xf32>
    %cst_52 = arith.constant 1.562500e-02 : f32
    %195 = vector.broadcast %cst_52 : f32 to vector<4x1xf32>
    %196 = arith.mulf %194, %195 : vector<4x1xf32>
    %197 = arith.mulf %192, %192 : vector<4x64xf32>
    %cst_53 = arith.constant dense<0.000000e+00> : vector<4xf32>
    %198 = vector.multi_reduction <add>, %197, %cst_53 [1] : vector<4x64xf32> to vector<4xf32>
    %199 = vector.shape_cast %198 : vector<4xf32> to vector<4x1xf32>
    %cst_54 = arith.constant 1.562500e-02 : f32
    %200 = vector.broadcast %cst_54 : f32 to vector<4x1xf32>
    %201 = arith.mulf %199, %200 : vector<4x1xf32>
    %202 = arith.mulf %196, %196 : vector<4x1xf32>
    %203 = arith.subf %201, %202 : vector<4x1xf32>
    %204 = vector.broadcast %196 : vector<4x1xf32> to vector<4x64xf32>
    %205 = arith.subf %192, %204 : vector<4x64xf32>
    %cst_55 = arith.constant 9.99999974E-6 : f32
    %206 = vector.broadcast %cst_55 : f32 to vector<4x1xf32>
    %207 = arith.addf %203, %206 : vector<4x1xf32>
    %208 = math.rsqrt %207 : vector<4x1xf32>
    %209 = vector.broadcast %208 : vector<4x1xf32> to vector<4x64xf32>
    %210 = arith.mulf %205, %209 : vector<4x64xf32>
    %c0_56 = arith.constant 0 : index
    %c0_57 = arith.constant 0 : index
    %211 = vector.load %arg19[%c0_56, %c0_57] : memref<1x64xf32, #tpu.memory_space<vmem>>, vector<1x64xf32>
    %212 = vector.broadcast %211 : vector<1x64xf32> to vector<4x64xf32>
    %213 = arith.mulf %210, %212 : vector<4x64xf32>
    %c0_58 = arith.constant 0 : index
    %c0_59 = arith.constant 0 : index
    %214 = vector.load %arg20[%c0_58, %c0_59] : memref<1x64xf32, #tpu.memory_space<vmem>>, vector<1x64xf32>
    %215 = vector.broadcast %214 : vector<1x64xf32> to vector<4x64xf32>
    %216 = arith.addf %213, %215 : vector<4x64xf32>
    %cst_60 = arith.constant 0.000000e+00 : f32
    %217 = vector.broadcast %cst_60 : f32 to vector<4x64xf32>
    %218 = arith.maximumf %216, %217 : vector<4x64xf32>
    %c0_61 = arith.constant 0 : index
    %c0_62 = arith.constant 0 : index
    %219 = vector.load %arg21[%c0_61, %c0_62] : memref<64x256xf32, #tpu.memory_space<vmem>>, vector<64x256xf32>
    %cst_63 = arith.constant dense<0.000000e+00> : vector<4x256xf32>
    %220 = tpu.matmul %218, %219, %cst_63 {dimension_numbers = #tpu.dot_dimension_numbers<[1], [0], [0], [1], [0, 0, 1, 1], [], []>} : vector<4x64xf32>, vector<64x256xf32>, vector<4x256xf32> -> vector<4x256xf32>
    %221 = vector.extract_strided_slice %220 {offsets = [0, 239], sizes = [4, 17], strides = [1, 1]} : vector<4x256xf32> to vector<4x17xf32>
    %222 = vector.extract_strided_slice %220 {offsets = [0, 0], sizes = [4, 239], strides = [1, 1]} : vector<4x256xf32> to vector<4x239xf32>
    %223 = tpu.concatenate %221, %222 in 1 : vector<4x17xf32>, vector<4x239xf32> -> vector<4x256xf32>
    %224 = vector.extract_strided_slice %220 {offsets = [0, 240], sizes = [4, 16], strides = [1, 1]} : vector<4x256xf32> to vector<4x16xf32>
    %225 = vector.extract_strided_slice %220 {offsets = [0, 0], sizes = [4, 240], strides = [1, 1]} : vector<4x256xf32> to vector<4x240xf32>
    %226 = tpu.concatenate %224, %225 in 1 : vector<4x16xf32>, vector<4x240xf32> -> vector<4x256xf32>
    %227 = vector.extract_strided_slice %220 {offsets = [0, 241], sizes = [4, 15], strides = [1, 1]} : vector<4x256xf32> to vector<4x15xf32>
    %228 = vector.extract_strided_slice %220 {offsets = [0, 0], sizes = [4, 241], strides = [1, 1]} : vector<4x256xf32> to vector<4x241xf32>
    %229 = tpu.concatenate %227, %228 in 1 : vector<4x15xf32>, vector<4x241xf32> -> vector<4x256xf32>
    %230 = vector.extract_strided_slice %220 {offsets = [0, 255], sizes = [4, 1], strides = [1, 1]} : vector<4x256xf32> to vector<4x1xf32>
    %231 = vector.extract_strided_slice %220 {offsets = [0, 0], sizes = [4, 255], strides = [1, 1]} : vector<4x256xf32> to vector<4x255xf32>
    %232 = tpu.concatenate %230, %231 in 1 : vector<4x1xf32>, vector<4x255xf32> -> vector<4x256xf32>
    %233 = vector.extract_strided_slice %220 {offsets = [0, 1], sizes = [4, 255], strides = [1, 1]} : vector<4x256xf32> to vector<4x255xf32>
    %234 = vector.extract_strided_slice %220 {offsets = [0, 0], sizes = [4, 1], strides = [1, 1]} : vector<4x256xf32> to vector<4x1xf32>
    %235 = tpu.concatenate %233, %234 in 1 : vector<4x255xf32>, vector<4x1xf32> -> vector<4x256xf32>
    %236 = vector.extract_strided_slice %220 {offsets = [0, 15], sizes = [4, 241], strides = [1, 1]} : vector<4x256xf32> to vector<4x241xf32>
    %237 = vector.extract_strided_slice %220 {offsets = [0, 0], sizes = [4, 15], strides = [1, 1]} : vector<4x256xf32> to vector<4x15xf32>
    %238 = tpu.concatenate %236, %237 in 1 : vector<4x241xf32>, vector<4x15xf32> -> vector<4x256xf32>
    %239 = vector.extract_strided_slice %220 {offsets = [0, 16], sizes = [4, 240], strides = [1, 1]} : vector<4x256xf32> to vector<4x240xf32>
    %240 = vector.extract_strided_slice %220 {offsets = [0, 0], sizes = [4, 16], strides = [1, 1]} : vector<4x256xf32> to vector<4x16xf32>
    %241 = tpu.concatenate %239, %240 in 1 : vector<4x240xf32>, vector<4x16xf32> -> vector<4x256xf32>
    %242 = vector.extract_strided_slice %220 {offsets = [0, 17], sizes = [4, 239], strides = [1, 1]} : vector<4x256xf32> to vector<4x239xf32>
    %243 = vector.extract_strided_slice %220 {offsets = [0, 0], sizes = [4, 17], strides = [1, 1]} : vector<4x256xf32> to vector<4x17xf32>
    %244 = tpu.concatenate %242, %243 in 1 : vector<4x239xf32>, vector<4x17xf32> -> vector<4x256xf32>
    %245 = tpu.concatenate %223, %226, %229, %232, %220, %235, %238, %241, %244 in 0 : vector<4x256xf32>, vector<4x256xf32>, vector<4x256xf32>, vector<4x256xf32>, vector<4x256xf32>, vector<4x256xf32>, vector<4x256xf32>, vector<4x256xf32>, vector<4x256xf32> -> vector<36x256xf32>
    %c0_64 = arith.constant 0 : index
    %c0_65 = arith.constant 0 : index
    %246 = vector.load %arg4[%c0_64, %c0_65] : memref<36x256xf32, #tpu.memory_space<vmem>>, vector<36x256xf32>
    %247 = arith.mulf %245, %246 : vector<36x256xf32>
    %c0_66 = arith.constant 0 : index
    %c0_67 = arith.constant 0 : index
    %248 = vector.load %arg22[%c0_66, %c0_67] : memref<4x36xf32, #tpu.memory_space<vmem>>, vector<4x36xf32>
    %cst_68 = arith.constant dense<0.000000e+00> : vector<4x256xf32>
    %249 = tpu.matmul %248, %247, %cst_68 {dimension_numbers = #tpu.dot_dimension_numbers<[1], [0], [0], [1], [0, 0, 1, 1], [], []>} : vector<4x36xf32>, vector<36x256xf32>, vector<4x256xf32> -> vector<4x256xf32>
    %c0_69 = arith.constant 0 : index
    %c0_70 = arith.constant 0 : index
    %250 = vector.load %arg23[%c0_69, %c0_70] : memref<4x1xf32, #tpu.memory_space<vmem>>, vector<4x1xf32>
    %251 = vector.broadcast %250 : vector<4x1xf32> to vector<4x256xf32>
    %252 = arith.addf %249, %251 : vector<4x256xf32>
    %253 = vector.extract_strided_slice %252 {offsets = [0, 239], sizes = [4, 17], strides = [1, 1]} : vector<4x256xf32> to vector<4x17xf32>
    %254 = vector.extract_strided_slice %252 {offsets = [0, 0], sizes = [4, 239], strides = [1, 1]} : vector<4x256xf32> to vector<4x239xf32>
    %255 = tpu.concatenate %253, %254 in 1 : vector<4x17xf32>, vector<4x239xf32> -> vector<4x256xf32>
    %256 = vector.extract_strided_slice %252 {offsets = [0, 240], sizes = [4, 16], strides = [1, 1]} : vector<4x256xf32> to vector<4x16xf32>
    %257 = vector.extract_strided_slice %252 {offsets = [0, 0], sizes = [4, 240], strides = [1, 1]} : vector<4x256xf32> to vector<4x240xf32>
    %258 = tpu.concatenate %256, %257 in 1 : vector<4x16xf32>, vector<4x240xf32> -> vector<4x256xf32>
    %259 = vector.extract_strided_slice %252 {offsets = [0, 241], sizes = [4, 15], strides = [1, 1]} : vector<4x256xf32> to vector<4x15xf32>
    %260 = vector.extract_strided_slice %252 {offsets = [0, 0], sizes = [4, 241], strides = [1, 1]} : vector<4x256xf32> to vector<4x241xf32>
    %261 = tpu.concatenate %259, %260 in 1 : vector<4x15xf32>, vector<4x241xf32> -> vector<4x256xf32>
    %262 = vector.extract_strided_slice %252 {offsets = [0, 255], sizes = [4, 1], strides = [1, 1]} : vector<4x256xf32> to vector<4x1xf32>
    %263 = vector.extract_strided_slice %252 {offsets = [0, 0], sizes = [4, 255], strides = [1, 1]} : vector<4x256xf32> to vector<4x255xf32>
    %264 = tpu.concatenate %262, %263 in 1 : vector<4x1xf32>, vector<4x255xf32> -> vector<4x256xf32>
    %265 = vector.extract_strided_slice %252 {offsets = [0, 1], sizes = [4, 255], strides = [1, 1]} : vector<4x256xf32> to vector<4x255xf32>
    %266 = vector.extract_strided_slice %252 {offsets = [0, 0], sizes = [4, 1], strides = [1, 1]} : vector<4x256xf32> to vector<4x1xf32>
    %267 = tpu.concatenate %265, %266 in 1 : vector<4x255xf32>, vector<4x1xf32> -> vector<4x256xf32>
    %268 = vector.extract_strided_slice %252 {offsets = [0, 15], sizes = [4, 241], strides = [1, 1]} : vector<4x256xf32> to vector<4x241xf32>
    %269 = vector.extract_strided_slice %252 {offsets = [0, 0], sizes = [4, 15], strides = [1, 1]} : vector<4x256xf32> to vector<4x15xf32>
    %270 = tpu.concatenate %268, %269 in 1 : vector<4x241xf32>, vector<4x15xf32> -> vector<4x256xf32>
    %271 = vector.extract_strided_slice %252 {offsets = [0, 16], sizes = [4, 240], strides = [1, 1]} : vector<4x256xf32> to vector<4x240xf32>
    %272 = vector.extract_strided_slice %252 {offsets = [0, 0], sizes = [4, 16], strides = [1, 1]} : vector<4x256xf32> to vector<4x16xf32>
    %273 = tpu.concatenate %271, %272 in 1 : vector<4x240xf32>, vector<4x16xf32> -> vector<4x256xf32>
    %274 = vector.extract_strided_slice %252 {offsets = [0, 17], sizes = [4, 239], strides = [1, 1]} : vector<4x256xf32> to vector<4x239xf32>
    %275 = vector.extract_strided_slice %252 {offsets = [0, 0], sizes = [4, 17], strides = [1, 1]} : vector<4x256xf32> to vector<4x17xf32>
    %276 = tpu.concatenate %274, %275 in 1 : vector<4x239xf32>, vector<4x17xf32> -> vector<4x256xf32>
    %277 = tpu.concatenate %255, %258, %261, %264, %252, %267, %270, %273, %276 in 0 : vector<4x256xf32>, vector<4x256xf32>, vector<4x256xf32>, vector<4x256xf32>, vector<4x256xf32>, vector<4x256xf32>, vector<4x256xf32>, vector<4x256xf32>, vector<4x256xf32> -> vector<36x256xf32>
    %c0_71 = arith.constant 0 : index
    %c0_72 = arith.constant 0 : index
    %278 = vector.load %arg4[%c0_71, %c0_72] : memref<36x256xf32, #tpu.memory_space<vmem>>, vector<36x256xf32>
    %279 = arith.mulf %277, %278 : vector<36x256xf32>
    %c0_73 = arith.constant 0 : index
    %c0_74 = arith.constant 0 : index
    %280 = vector.load %arg24[%c0_73, %c0_74] : memref<4x36xf32, #tpu.memory_space<vmem>>, vector<4x36xf32>
    %cst_75 = arith.constant dense<0.000000e+00> : vector<4x256xf32>
    %281 = tpu.matmul %280, %279, %cst_75 {dimension_numbers = #tpu.dot_dimension_numbers<[1], [0], [0], [1], [0, 0, 1, 1], [], []>} : vector<4x36xf32>, vector<36x256xf32>, vector<4x256xf32> -> vector<4x256xf32>
    %c0_76 = arith.constant 0 : index
    %c0_77 = arith.constant 0 : index
    %282 = vector.load %arg25[%c0_76, %c0_77] : memref<4x1xf32, #tpu.memory_space<vmem>>, vector<4x1xf32>
    %283 = vector.broadcast %282 : vector<4x1xf32> to vector<4x256xf32>
    %284 = arith.addf %281, %283 : vector<4x256xf32>
    %285 = vector.extract_strided_slice %284 {offsets = [0, 239], sizes = [4, 17], strides = [1, 1]} : vector<4x256xf32> to vector<4x17xf32>
    %286 = vector.extract_strided_slice %284 {offsets = [0, 0], sizes = [4, 239], strides = [1, 1]} : vector<4x256xf32> to vector<4x239xf32>
    %287 = tpu.concatenate %285, %286 in 1 : vector<4x17xf32>, vector<4x239xf32> -> vector<4x256xf32>
    %288 = vector.extract_strided_slice %284 {offsets = [0, 240], sizes = [4, 16], strides = [1, 1]} : vector<4x256xf32> to vector<4x16xf32>
    %289 = vector.extract_strided_slice %284 {offsets = [0, 0], sizes = [4, 240], strides = [1, 1]} : vector<4x256xf32> to vector<4x240xf32>
    %290 = tpu.concatenate %288, %289 in 1 : vector<4x16xf32>, vector<4x240xf32> -> vector<4x256xf32>
    %291 = vector.extract_strided_slice %284 {offsets = [0, 241], sizes = [4, 15], strides = [1, 1]} : vector<4x256xf32> to vector<4x15xf32>
    %292 = vector.extract_strided_slice %284 {offsets = [0, 0], sizes = [4, 241], strides = [1, 1]} : vector<4x256xf32> to vector<4x241xf32>
    %293 = tpu.concatenate %291, %292 in 1 : vector<4x15xf32>, vector<4x241xf32> -> vector<4x256xf32>
    %294 = vector.extract_strided_slice %284 {offsets = [0, 255], sizes = [4, 1], strides = [1, 1]} : vector<4x256xf32> to vector<4x1xf32>
    %295 = vector.extract_strided_slice %284 {offsets = [0, 0], sizes = [4, 255], strides = [1, 1]} : vector<4x256xf32> to vector<4x255xf32>
    %296 = tpu.concatenate %294, %295 in 1 : vector<4x1xf32>, vector<4x255xf32> -> vector<4x256xf32>
    %297 = vector.extract_strided_slice %284 {offsets = [0, 1], sizes = [4, 255], strides = [1, 1]} : vector<4x256xf32> to vector<4x255xf32>
    %298 = vector.extract_strided_slice %284 {offsets = [0, 0], sizes = [4, 1], strides = [1, 1]} : vector<4x256xf32> to vector<4x1xf32>
    %299 = tpu.concatenate %297, %298 in 1 : vector<4x255xf32>, vector<4x1xf32> -> vector<4x256xf32>
    %300 = vector.extract_strided_slice %284 {offsets = [0, 15], sizes = [4, 241], strides = [1, 1]} : vector<4x256xf32> to vector<4x241xf32>
    %301 = vector.extract_strided_slice %284 {offsets = [0, 0], sizes = [4, 15], strides = [1, 1]} : vector<4x256xf32> to vector<4x15xf32>
    %302 = tpu.concatenate %300, %301 in 1 : vector<4x241xf32>, vector<4x15xf32> -> vector<4x256xf32>
    %303 = vector.extract_strided_slice %284 {offsets = [0, 16], sizes = [4, 240], strides = [1, 1]} : vector<4x256xf32> to vector<4x240xf32>
    %304 = vector.extract_strided_slice %284 {offsets = [0, 0], sizes = [4, 16], strides = [1, 1]} : vector<4x256xf32> to vector<4x16xf32>
    %305 = tpu.concatenate %303, %304 in 1 : vector<4x240xf32>, vector<4x16xf32> -> vector<4x256xf32>
    %306 = vector.extract_strided_slice %284 {offsets = [0, 17], sizes = [4, 239], strides = [1, 1]} : vector<4x256xf32> to vector<4x239xf32>
    %307 = vector.extract_strided_slice %284 {offsets = [0, 0], sizes = [4, 17], strides = [1, 1]} : vector<4x256xf32> to vector<4x17xf32>
    %308 = tpu.concatenate %306, %307 in 1 : vector<4x239xf32>, vector<4x17xf32> -> vector<4x256xf32>
    %309 = tpu.concatenate %287, %290, %293, %296, %284, %299, %302, %305, %308 in 0 : vector<4x256xf32>, vector<4x256xf32>, vector<4x256xf32>, vector<4x256xf32>, vector<4x256xf32>, vector<4x256xf32>, vector<4x256xf32>, vector<4x256xf32>, vector<4x256xf32> -> vector<36x256xf32>
    %c0_78 = arith.constant 0 : index
    %c0_79 = arith.constant 0 : index
    %310 = vector.load %arg4[%c0_78, %c0_79] : memref<36x256xf32, #tpu.memory_space<vmem>>, vector<36x256xf32>
    %311 = arith.mulf %309, %310 : vector<36x256xf32>
    %c0_80 = arith.constant 0 : index
    %c0_81 = arith.constant 0 : index
    %312 = vector.load %arg26[%c0_80, %c0_81] : memref<4x36xf32, #tpu.memory_space<vmem>>, vector<4x36xf32>
    %cst_82 = arith.constant dense<0.000000e+00> : vector<4x256xf32>
    %313 = tpu.matmul %312, %311, %cst_82 {dimension_numbers = #tpu.dot_dimension_numbers<[1], [0], [0], [1], [0, 0, 1, 1], [], []>} : vector<4x36xf32>, vector<36x256xf32>, vector<4x256xf32> -> vector<4x256xf32>
    %c0_83 = arith.constant 0 : index
    %c0_84 = arith.constant 0 : index
    %314 = vector.load %arg27[%c0_83, %c0_84] : memref<4x1xf32, #tpu.memory_space<vmem>>, vector<4x1xf32>
    %315 = vector.broadcast %314 : vector<4x1xf32> to vector<4x256xf32>
    %316 = arith.addf %313, %315 : vector<4x256xf32>
    %cst_85 = arith.constant dense<0.000000e+00> : vector<4xf32>
    %317 = vector.multi_reduction <add>, %316, %cst_85 [1] : vector<4x256xf32> to vector<4xf32>
    %318 = vector.shape_cast %317 : vector<4xf32> to vector<4x1xf32>
    %cst_86 = arith.constant 3.906250e-03 : f32
    %319 = vector.broadcast %cst_86 : f32 to vector<4x1xf32>
    %320 = arith.mulf %318, %319 : vector<4x1xf32>
    %321 = arith.mulf %316, %316 : vector<4x256xf32>
    %cst_87 = arith.constant dense<0.000000e+00> : vector<4xf32>
    %322 = vector.multi_reduction <add>, %321, %cst_87 [1] : vector<4x256xf32> to vector<4xf32>
    %323 = vector.shape_cast %322 : vector<4xf32> to vector<4x1xf32>
    %cst_88 = arith.constant 3.906250e-03 : f32
    %324 = vector.broadcast %cst_88 : f32 to vector<4x1xf32>
    %325 = arith.mulf %323, %324 : vector<4x1xf32>
    %326 = arith.mulf %320, %320 : vector<4x1xf32>
    %327 = arith.subf %325, %326 : vector<4x1xf32>
    %328 = vector.broadcast %320 : vector<4x1xf32> to vector<4x256xf32>
    %329 = arith.subf %316, %328 : vector<4x256xf32>
    %cst_89 = arith.constant 9.99999974E-6 : f32
    %330 = vector.broadcast %cst_89 : f32 to vector<4x1xf32>
    %331 = arith.addf %327, %330 : vector<4x1xf32>
    %332 = math.rsqrt %331 : vector<4x1xf32>
    %333 = vector.broadcast %332 : vector<4x1xf32> to vector<4x256xf32>
    %334 = arith.mulf %329, %333 : vector<4x256xf32>
    %c0_90 = arith.constant 0 : index
    %c0_91 = arith.constant 0 : index
    %335 = vector.load %arg28[%c0_90, %c0_91] : memref<1x256xf32, #tpu.memory_space<vmem>>, vector<1x256xf32>
    %336 = vector.broadcast %335 : vector<1x256xf32> to vector<4x256xf32>
    %337 = arith.mulf %334, %336 : vector<4x256xf32>
    %c0_92 = arith.constant 0 : index
    %c0_93 = arith.constant 0 : index
    %338 = vector.load %arg29[%c0_92, %c0_93] : memref<1x256xf32, #tpu.memory_space<vmem>>, vector<1x256xf32>
    %339 = vector.broadcast %338 : vector<1x256xf32> to vector<4x256xf32>
    %340 = arith.addf %337, %339 : vector<4x256xf32>
    %cst_94 = arith.constant 0.000000e+00 : f32
    %341 = vector.broadcast %cst_94 : f32 to vector<4x256xf32>
    %342 = arith.maximumf %340, %341 : vector<4x256xf32>
    %343 = arith.addf %342, %220 : vector<4x256xf32>
    %344 = vector.extract_strided_slice %343 {offsets = [0, 239], sizes = [4, 17], strides = [1, 1]} : vector<4x256xf32> to vector<4x17xf32>
    %345 = vector.extract_strided_slice %343 {offsets = [0, 0], sizes = [4, 239], strides = [1, 1]} : vector<4x256xf32> to vector<4x239xf32>
    %346 = tpu.concatenate %344, %345 in 1 : vector<4x17xf32>, vector<4x239xf32> -> vector<4x256xf32>
    %347 = vector.extract_strided_slice %343 {offsets = [0, 240], sizes = [4, 16], strides = [1, 1]} : vector<4x256xf32> to vector<4x16xf32>
    %348 = vector.extract_strided_slice %343 {offsets = [0, 0], sizes = [4, 240], strides = [1, 1]} : vector<4x256xf32> to vector<4x240xf32>
    %349 = tpu.concatenate %347, %348 in 1 : vector<4x16xf32>, vector<4x240xf32> -> vector<4x256xf32>
    %350 = vector.extract_strided_slice %343 {offsets = [0, 241], sizes = [4, 15], strides = [1, 1]} : vector<4x256xf32> to vector<4x15xf32>
    %351 = vector.extract_strided_slice %343 {offsets = [0, 0], sizes = [4, 241], strides = [1, 1]} : vector<4x256xf32> to vector<4x241xf32>
    %352 = tpu.concatenate %350, %351 in 1 : vector<4x15xf32>, vector<4x241xf32> -> vector<4x256xf32>
    %353 = vector.extract_strided_slice %343 {offsets = [0, 255], sizes = [4, 1], strides = [1, 1]} : vector<4x256xf32> to vector<4x1xf32>
    %354 = vector.extract_strided_slice %343 {offsets = [0, 0], sizes = [4, 255], strides = [1, 1]} : vector<4x256xf32> to vector<4x255xf32>
    %355 = tpu.concatenate %353, %354 in 1 : vector<4x1xf32>, vector<4x255xf32> -> vector<4x256xf32>
    %356 = vector.extract_strided_slice %343 {offsets = [0, 1], sizes = [4, 255], strides = [1, 1]} : vector<4x256xf32> to vector<4x255xf32>
    %357 = vector.extract_strided_slice %343 {offsets = [0, 0], sizes = [4, 1], strides = [1, 1]} : vector<4x256xf32> to vector<4x1xf32>
    %358 = tpu.concatenate %356, %357 in 1 : vector<4x255xf32>, vector<4x1xf32> -> vector<4x256xf32>
    %359 = vector.extract_strided_slice %343 {offsets = [0, 15], sizes = [4, 241], strides = [1, 1]} : vector<4x256xf32> to vector<4x241xf32>
    %360 = vector.extract_strided_slice %343 {offsets = [0, 0], sizes = [4, 15], strides = [1, 1]} : vector<4x256xf32> to vector<4x15xf32>
    %361 = tpu.concatenate %359, %360 in 1 : vector<4x241xf32>, vector<4x15xf32> -> vector<4x256xf32>
    %362 = vector.extract_strided_slice %343 {offsets = [0, 16], sizes = [4, 240], strides = [1, 1]} : vector<4x256xf32> to vector<4x240xf32>
    %363 = vector.extract_strided_slice %343 {offsets = [0, 0], sizes = [4, 16], strides = [1, 1]} : vector<4x256xf32> to vector<4x16xf32>
    %364 = tpu.concatenate %362, %363 in 1 : vector<4x240xf32>, vector<4x16xf32> -> vector<4x256xf32>
    %365 = vector.extract_strided_slice %343 {offsets = [0, 17], sizes = [4, 239], strides = [1, 1]} : vector<4x256xf32> to vector<4x239xf32>
    %366 = vector.extract_strided_slice %343 {offsets = [0, 0], sizes = [4, 17], strides = [1, 1]} : vector<4x256xf32> to vector<4x17xf32>
    %367 = tpu.concatenate %365, %366 in 1 : vector<4x239xf32>, vector<4x17xf32> -> vector<4x256xf32>
    %368 = tpu.concatenate %346, %349, %352, %355, %343, %358, %361, %364, %367 in 0 : vector<4x256xf32>, vector<4x256xf32>, vector<4x256xf32>, vector<4x256xf32>, vector<4x256xf32>, vector<4x256xf32>, vector<4x256xf32>, vector<4x256xf32>, vector<4x256xf32> -> vector<36x256xf32>
    %c0_95 = arith.constant 0 : index
    %c0_96 = arith.constant 0 : index
    %369 = vector.load %arg4[%c0_95, %c0_96] : memref<36x256xf32, #tpu.memory_space<vmem>>, vector<36x256xf32>
    %370 = arith.mulf %368, %369 : vector<36x256xf32>
    %c0_97 = arith.constant 0 : index
    %c0_98 = arith.constant 0 : index
    %371 = vector.load %arg30[%c0_97, %c0_98] : memref<4x36xf32, #tpu.memory_space<vmem>>, vector<4x36xf32>
    %cst_99 = arith.constant dense<0.000000e+00> : vector<4x256xf32>
    %372 = tpu.matmul %371, %370, %cst_99 {dimension_numbers = #tpu.dot_dimension_numbers<[1], [0], [0], [1], [0, 0, 1, 1], [], []>} : vector<4x36xf32>, vector<36x256xf32>, vector<4x256xf32> -> vector<4x256xf32>
    %c0_100 = arith.constant 0 : index
    %c0_101 = arith.constant 0 : index
    %373 = vector.load %arg31[%c0_100, %c0_101] : memref<4x1xf32, #tpu.memory_space<vmem>>, vector<4x1xf32>
    %374 = vector.broadcast %373 : vector<4x1xf32> to vector<4x256xf32>
    %375 = arith.addf %372, %374 : vector<4x256xf32>
    %cst_102 = arith.constant dense<0.000000e+00> : vector<4xf32>
    %376 = vector.multi_reduction <add>, %375, %cst_102 [1] : vector<4x256xf32> to vector<4xf32>
    %377 = vector.shape_cast %376 : vector<4xf32> to vector<4x1xf32>
    %cst_103 = arith.constant 3.906250e-03 : f32
    %378 = vector.broadcast %cst_103 : f32 to vector<4x1xf32>
    %379 = arith.mulf %377, %378 : vector<4x1xf32>
    %380 = arith.mulf %375, %375 : vector<4x256xf32>
    %cst_104 = arith.constant dense<0.000000e+00> : vector<4xf32>
    %381 = vector.multi_reduction <add>, %380, %cst_104 [1] : vector<4x256xf32> to vector<4xf32>
    %382 = vector.shape_cast %381 : vector<4xf32> to vector<4x1xf32>
    %cst_105 = arith.constant 3.906250e-03 : f32
    %383 = vector.broadcast %cst_105 : f32 to vector<4x1xf32>
    %384 = arith.mulf %382, %383 : vector<4x1xf32>
    %385 = arith.mulf %379, %379 : vector<4x1xf32>
    %386 = arith.subf %384, %385 : vector<4x1xf32>
    %387 = vector.broadcast %379 : vector<4x1xf32> to vector<4x256xf32>
    %388 = arith.subf %375, %387 : vector<4x256xf32>
    %cst_106 = arith.constant 9.99999974E-6 : f32
    %389 = vector.broadcast %cst_106 : f32 to vector<4x1xf32>
    %390 = arith.addf %386, %389 : vector<4x1xf32>
    %391 = math.rsqrt %390 : vector<4x1xf32>
    %392 = vector.broadcast %391 : vector<4x1xf32> to vector<4x256xf32>
    %393 = arith.mulf %388, %392 : vector<4x256xf32>
    %c0_107 = arith.constant 0 : index
    %c0_108 = arith.constant 0 : index
    %394 = vector.load %arg32[%c0_107, %c0_108] : memref<1x256xf32, #tpu.memory_space<vmem>>, vector<1x256xf32>
    %395 = vector.broadcast %394 : vector<1x256xf32> to vector<4x256xf32>
    %396 = arith.mulf %393, %395 : vector<4x256xf32>
    %c0_109 = arith.constant 0 : index
    %c0_110 = arith.constant 0 : index
    %397 = vector.load %arg33[%c0_109, %c0_110] : memref<1x256xf32, #tpu.memory_space<vmem>>, vector<1x256xf32>
    %398 = vector.broadcast %397 : vector<1x256xf32> to vector<4x256xf32>
    %399 = arith.addf %396, %398 : vector<4x256xf32>
    %cst_111 = arith.constant 0.000000e+00 : f32
    %400 = vector.broadcast %cst_111 : f32 to vector<4x256xf32>
    %401 = arith.maximumf %399, %400 : vector<4x256xf32>
    %402 = vector.extract_strided_slice %401 {offsets = [0, 239], sizes = [4, 17], strides = [1, 1]} : vector<4x256xf32> to vector<4x17xf32>
    %403 = vector.extract_strided_slice %401 {offsets = [0, 0], sizes = [4, 239], strides = [1, 1]} : vector<4x256xf32> to vector<4x239xf32>
    %404 = tpu.concatenate %402, %403 in 1 : vector<4x17xf32>, vector<4x239xf32> -> vector<4x256xf32>
    %405 = vector.extract_strided_slice %401 {offsets = [0, 240], sizes = [4, 16], strides = [1, 1]} : vector<4x256xf32> to vector<4x16xf32>
    %406 = vector.extract_strided_slice %401 {offsets = [0, 0], sizes = [4, 240], strides = [1, 1]} : vector<4x256xf32> to vector<4x240xf32>
    %407 = tpu.concatenate %405, %406 in 1 : vector<4x16xf32>, vector<4x240xf32> -> vector<4x256xf32>
    %408 = vector.extract_strided_slice %401 {offsets = [0, 241], sizes = [4, 15], strides = [1, 1]} : vector<4x256xf32> to vector<4x15xf32>
    %409 = vector.extract_strided_slice %401 {offsets = [0, 0], sizes = [4, 241], strides = [1, 1]} : vector<4x256xf32> to vector<4x241xf32>
    %410 = tpu.concatenate %408, %409 in 1 : vector<4x15xf32>, vector<4x241xf32> -> vector<4x256xf32>
    %411 = vector.extract_strided_slice %401 {offsets = [0, 255], sizes = [4, 1], strides = [1, 1]} : vector<4x256xf32> to vector<4x1xf32>
    %412 = vector.extract_strided_slice %401 {offsets = [0, 0], sizes = [4, 255], strides = [1, 1]} : vector<4x256xf32> to vector<4x255xf32>
    %413 = tpu.concatenate %411, %412 in 1 : vector<4x1xf32>, vector<4x255xf32> -> vector<4x256xf32>
    %414 = vector.extract_strided_slice %401 {offsets = [0, 1], sizes = [4, 255], strides = [1, 1]} : vector<4x256xf32> to vector<4x255xf32>
    %415 = vector.extract_strided_slice %401 {offsets = [0, 0], sizes = [4, 1], strides = [1, 1]} : vector<4x256xf32> to vector<4x1xf32>
    %416 = tpu.concatenate %414, %415 in 1 : vector<4x255xf32>, vector<4x1xf32> -> vector<4x256xf32>
    %417 = vector.extract_strided_slice %401 {offsets = [0, 15], sizes = [4, 241], strides = [1, 1]} : vector<4x256xf32> to vector<4x241xf32>
    %418 = vector.extract_strided_slice %401 {offsets = [0, 0], sizes = [4, 15], strides = [1, 1]} : vector<4x256xf32> to vector<4x15xf32>
    %419 = tpu.concatenate %417, %418 in 1 : vector<4x241xf32>, vector<4x15xf32> -> vector<4x256xf32>
    %420 = vector.extract_strided_slice %401 {offsets = [0, 16], sizes = [4, 240], strides = [1, 1]} : vector<4x256xf32> to vector<4x240xf32>
    %421 = vector.extract_strided_slice %401 {offsets = [0, 0], sizes = [4, 16], strides = [1, 1]} : vector<4x256xf32> to vector<4x16xf32>
    %422 = tpu.concatenate %420, %421 in 1 : vector<4x240xf32>, vector<4x16xf32> -> vector<4x256xf32>
    %423 = vector.extract_strided_slice %401 {offsets = [0, 17], sizes = [4, 239], strides = [1, 1]} : vector<4x256xf32> to vector<4x239xf32>
    %424 = vector.extract_strided_slice %401 {offsets = [0, 0], sizes = [4, 17], strides = [1, 1]} : vector<4x256xf32> to vector<4x17xf32>
    %425 = tpu.concatenate %423, %424 in 1 : vector<4x239xf32>, vector<4x17xf32> -> vector<4x256xf32>
    %426 = tpu.concatenate %404, %407, %410, %413, %401, %416, %419, %422, %425 in 0 : vector<4x256xf32>, vector<4x256xf32>, vector<4x256xf32>, vector<4x256xf32>, vector<4x256xf32>, vector<4x256xf32>, vector<4x256xf32>, vector<4x256xf32>, vector<4x256xf32> -> vector<36x256xf32>
    %c0_112 = arith.constant 0 : index
    %c0_113 = arith.constant 0 : index
    %427 = vector.load %arg4[%c0_112, %c0_113] : memref<36x256xf32, #tpu.memory_space<vmem>>, vector<36x256xf32>
    %428 = arith.mulf %426, %427 : vector<36x256xf32>
    %c0_114 = arith.constant 0 : index
    %c0_115 = arith.constant 0 : index
    %429 = vector.load %arg34[%c0_114, %c0_115] : memref<1x36xf32, #tpu.memory_space<vmem>>, vector<1x36xf32>
    %cst_116 = arith.constant dense<0.000000e+00> : vector<1x256xf32>
    %430 = tpu.matmul %429, %428, %cst_116 {dimension_numbers = #tpu.dot_dimension_numbers<[1], [0], [0], [1], [0, 0, 1, 1], [], []>} : vector<1x36xf32>, vector<36x256xf32>, vector<1x256xf32> -> vector<1x256xf32>
    %c0_117 = arith.constant 0 : index
    %c0_118 = arith.constant 0 : index
    %431 = vector.load %arg35[%c0_117, %c0_118] : memref<1x1xf32, #tpu.memory_space<vmem>>, vector<1x1xf32>
    %432 = vector.broadcast %431 : vector<1x1xf32> to vector<1x256xf32>
    %433 = arith.addf %430, %432 : vector<1x256xf32>
    %c0_119 = arith.constant 0 : index
    %c0_120 = arith.constant 0 : index
    %c0_121 = arith.constant 0 : index
    %434 = vector.load %arg36[%c0_119, %c0_120, %c0_121] : memref<1x1x256xf32, #tpu.memory_space<vmem>>, vector<1x1x256xf32>
    %435 = vector.shape_cast %434 : vector<1x1x256xf32> to vector<1x256xf32>
    %436 = vector.shape_cast %433 : vector<1x256xf32> to vector<1x1x256xf32>
    tpu.vector_store %arg36[%c0_119, %c0_120, %c0_121], %436 {strides = array<i32>} : memref<1x1x256xf32, #tpu.memory_space<vmem>>, vector<1x1x256xf32>,
    return
  }
  func.func @transform_0(%arg0: i32) -> (i32, i32, i32) {
    %c0_i32 = arith.constant 0 : i32
    %c0_i32_0 = arith.constant 0 : i32
    %c0_i32_1 = arith.constant 0 : i32
    return %arg0, %c0_i32, %c0_i32_0 : i32, i32, i32
  }
  func.func @transform_1(%arg0: i32) -> (i32, i32) {
    %c0_i32 = arith.constant 0 : i32
    %c0_i32_0 = arith.constant 0 : i32
    %c0_i32_1 = arith.constant 0 : i32
    return %c0_i32, %c0_i32_0 : i32, i32
  }
  func.func @transform_2(%arg0: i32) -> (i32, i32) {
    %c0_i32 = arith.constant 0 : i32
    %c0_i32_0 = arith.constant 0 : i32
    %c0_i32_1 = arith.constant 0 : i32
    return %c0_i32, %c0_i32_0 : i32, i32
  }
  func.func @transform_3(%arg0: i32) -> (i32, i32) {
    %c0_i32 = arith.constant 0 : i32
    %c0_i32_0 = arith.constant 0 : i32
    %c0_i32_1 = arith.constant 0 : i32
    return %c0_i32, %c0_i32_0 : i32, i32
  }
  func.func @transform_4(%arg0: i32) -> (i32, i32) {
    %c0_i32 = arith.constant 0 : i32
    %c0_i32_0 = arith.constant 0 : i32
    %c0_i32_1 = arith.constant 0 : i32
    return %c0_i32, %c0_i32_0 : i32, i32
  }
  func.func @transform_5(%arg0: i32) -> (i32, i32) {
    %c0_i32 = arith.constant 0 : i32
    %c0_i32_0 = arith.constant 0 : i32
    %c0_i32_1 = arith.constant 0 : i32
    return %c0_i32, %c0_i32_0 : i32, i32
  }
  func.func @transform_6(%arg0: i32) -> (i32, i32) {
    %c0_i32 = arith.constant 0 : i32
    %c0_i32_0 = arith.constant 0 : i32
    %c0_i32_1 = arith.constant 0 : i32
    return %c0_i32, %c0_i32_0 : i32, i32
  }
  func.func @transform_7(%arg0: i32) -> (i32, i32) {
    %c0_i32 = arith.constant 0 : i32
    %c0_i32_0 = arith.constant 0 : i32
    %c0_i32_1 = arith.constant 0 : i32
    return %c0_i32, %c0_i32_0 : i32, i32
  }
  func.func @transform_8(%arg0: i32) -> (i32, i32) {
    %c0_i32 = arith.constant 0 : i32
    %c0_i32_0 = arith.constant 0 : i32
    %c0_i32_1 = arith.constant 0 : i32
    return %c0_i32, %c0_i32_0 : i32, i32
  }
  func.func @transform_9(%arg0: i32) -> (i32, i32) {
    %c0_i32 = arith.constant 0 : i32
    %c0_i32_0 = arith.constant 0 : i32
    %c0_i32_1 = arith.constant 0 : i32
    return %c0_i32, %c0_i32_0 : i32, i32
  }
  func.func @transform_10(%arg0: i32) -> (i32, i32) {
    %c0_i32 = arith.constant 0 : i32
    %c0_i32_0 = arith.constant 0 : i32
    %c0_i32_1 = arith.constant 0 : i32
    return %c0_i32, %c0_i32_0 : i32, i32
  }
  func.func @transform_11(%arg0: i32) -> (i32, i32) {
    %c0_i32 = arith.constant 0 : i32
    %c0_i32_0 = arith.constant 0 : i32
    %c0_i32_1 = arith.constant 0 : i32
    return %c0_i32, %c0_i32_0 : i32, i32
  }
  func.func @transform_12(%arg0: i32) -> (i32, i32) {
    %c0_i32 = arith.constant 0 : i32
    %c0_i32_0 = arith.constant 0 : i32
    %c0_i32_1 = arith.constant 0 : i32
    return %c0_i32, %c0_i32_0 : i32, i32
  }
  func.func @transform_13(%arg0: i32) -> (i32, i32) {
    %c0_i32 = arith.constant 0 : i32
    %c0_i32_0 = arith.constant 0 : i32
    %c0_i32_1 = arith.constant 0 : i32
    return %c0_i32, %c0_i32_0 : i32, i32
  }
  func.func @transform_14(%arg0: i32) -> (i32, i32) {
    %c0_i32 = arith.constant 0 : i32
    %c0_i32_0 = arith.constant 0 : i32
    %c0_i32_1 = arith.constant 0 : i32
    return %c0_i32, %c0_i32_0 : i32, i32
  }
  func.func @transform_15(%arg0: i32) -> (i32, i32) {
    %c0_i32 = arith.constant 0 : i32
    %c0_i32_0 = arith.constant 0 : i32
    %c0_i32_1 = arith.constant 0 : i32
    return %c0_i32, %c0_i32_0 : i32, i32
  }
  func.func @transform_16(%arg0: i32) -> (i32, i32) {
    %c0_i32 = arith.constant 0 : i32
    %c0_i32_0 = arith.constant 0 : i32
    %c0_i32_1 = arith.constant 0 : i32
    return %c0_i32, %c0_i32_0 : i32, i32
  }
  func.func @transform_17(%arg0: i32) -> (i32, i32) {
    %c0_i32 = arith.constant 0 : i32
    %c0_i32_0 = arith.constant 0 : i32
    %c0_i32_1 = arith.constant 0 : i32
    return %c0_i32, %c0_i32_0 : i32, i32
  }
  func.func @transform_18(%arg0: i32) -> (i32, i32) {
    %c0_i32 = arith.constant 0 : i32
    %c0_i32_0 = arith.constant 0 : i32
    %c0_i32_1 = arith.constant 0 : i32
    return %c0_i32, %c0_i32_0 : i32, i32
  }
  func.func @transform_19(%arg0: i32) -> (i32, i32) {
    %c0_i32 = arith.constant 0 : i32
    %c0_i32_0 = arith.constant 0 : i32
    %c0_i32_1 = arith.constant 0 : i32
    return %c0_i32, %c0_i32_0 : i32, i32
  }
  func.func @transform_20(%arg0: i32) -> (i32, i32) {
    %c0_i32 = arith.constant 0 : i32
    %c0_i32_0 = arith.constant 0 : i32
    %c0_i32_1 = arith.constant 0 : i32
    return %c0_i32, %c0_i32_0 : i32, i32
  }
  func.func @transform_21(%arg0: i32) -> (i32, i32) {
    %c0_i32 = arith.constant 0 : i32
    %c0_i32_0 = arith.constant 0 : i32
    %c0_i32_1 = arith.constant 0 : i32
    return %c0_i32, %c0_i32_0 : i32, i32
  }
  func.func @transform_22(%arg0: i32) -> (i32, i32) {
    %c0_i32 = arith.constant 0 : i32
    %c0_i32_0 = arith.constant 0 : i32
    %c0_i32_1 = arith.constant 0 : i32
    return %c0_i32, %c0_i32_0 : i32, i32
  }
  func.func @transform_23(%arg0: i32) -> (i32, i32) {
    %c0_i32 = arith.constant 0 : i32
    %c0_i32_0 = arith.constant 0 : i32
    %c0_i32_1 = arith.constant 0 : i32
    return %c0_i32, %c0_i32_0 : i32, i32
  }
  func.func @transform_24(%arg0: i32) -> (i32, i32) {
    %c0_i32 = arith.constant 0 : i32
    %c0_i32_0 = arith.constant 0 : i32
    %c0_i32_1 = arith.constant 0 : i32
    return %c0_i32, %c0_i32_0 : i32, i32
  }
  func.func @transform_25(%arg0: i32) -> (i32, i32) {
    %c0_i32 = arith.constant 0 : i32
    %c0_i32_0 = arith.constant 0 : i32
    %c0_i32_1 = arith.constant 0 : i32
    return %c0_i32, %c0_i32_0 : i32, i32
  }
  func.func @transform_26(%arg0: i32) -> (i32, i32) {
    %c0_i32 = arith.constant 0 : i32
    %c0_i32_0 = arith.constant 0 : i32
    %c0_i32_1 = arith.constant 0 : i32
    return %c0_i32, %c0_i32_0 : i32, i32
  }
  func.func @transform_27(%arg0: i32) -> (i32, i32) {
    %c0_i32 = arith.constant 0 : i32
    %c0_i32_0 = arith.constant 0 : i32
    %c0_i32_1 = arith.constant 0 : i32
    return %c0_i32, %c0_i32_0 : i32, i32
  }
  func.func @transform_28(%arg0: i32) -> (i32, i32) {
    %c0_i32 = arith.constant 0 : i32
    %c0_i32_0 = arith.constant 0 : i32
    %c0_i32_1 = arith.constant 0 : i32
    return %c0_i32, %c0_i32_0 : i32, i32
  }
  func.func @transform_29(%arg0: i32) -> (i32, i32) {
    %c0_i32 = arith.constant 0 : i32
    %c0_i32_0 = arith.constant 0 : i32
    %c0_i32_1 = arith.constant 0 : i32
    return %c0_i32, %c0_i32_0 : i32, i32
  }
  func.func @transform_30(%arg0: i32) -> (i32, i32) {
    %c0_i32 = arith.constant 0 : i32
    %c0_i32_0 = arith.constant 0 : i32
    %c0_i32_1 = arith.constant 0 : i32
    return %c0_i32, %c0_i32_0 : i32, i32
  }
  func.func @transform_31(%arg0: i32) -> (i32, i32) {
    %c0_i32 = arith.constant 0 : i32
    %c0_i32_0 = arith.constant 0 : i32
    %c0_i32_1 = arith.constant 0 : i32
    return %c0_i32, %c0_i32_0 : i32, i32
  }
  func.func @transform_32(%arg0: i32) -> (i32, i32) {
    %c0_i32 = arith.constant 0 : i32
    %c0_i32_0 = arith.constant 0 : i32
    %c0_i32_1 = arith.constant 0 : i32
    return %c0_i32, %c0_i32_0 : i32, i32
  }
  func.func @transform_33(%arg0: i32) -> (i32, i32) {
    %c0_i32 = arith.constant 0 : i32
    %c0_i32_0 = arith.constant 0 : i32
    %c0_i32_1 = arith.constant 0 : i32
    return %c0_i32, %c0_i32_0 : i32, i32
  }
  func.func @transform_34(%arg0: i32) -> (i32, i32) {
    %c0_i32 = arith.constant 0 : i32
    %c0_i32_0 = arith.constant 0 : i32
    %c0_i32_1 = arith.constant 0 : i32
    return %c0_i32, %c0_i32_0 : i32, i32
  }
  func.func @transform_35(%arg0: i32) -> (i32, i32, i32) {
    %c0_i32 = arith.constant 0 : i32
    %c0_i32_0 = arith.constant 0 : i32
    %c0_i32_1 = arith.constant 0 : i32
    return %arg0, %c0_i32, %c0_i32_0 : i32, i32, i32
  }
}

</mosaic_0001>

<bundles_post_ra>
// kernel: _lambda_.1
= control target key start
LH: loop header
LB: loop body
LE: loop exit
PB: predicated region body
PF: predicated region fallthrough
CT: control target
= control target key end

     0   :  { %s4641_s6 = smov 1   ;;  %s4642_s10 = smov 2   ;;  %s5763_s0 = inlined_call_operand.smem [shape: u32[36], index: -1, kind: input, shape index: {}] }
   0x1   :  { %s4730_s5 = sld [smem:[%s5763_s0]]   ;;  %s4643_s14 = smov 3  }
   0x2   :  { %s4735_s9 = sld [smem:[%s5763_s0 + %s4641_s6]]   ;;  %s4644_s18 = smov 4  }
   0x3   :  { %s4740_s13 = sld [smem:[%s5763_s0 + %s4642_s10]]   ;;  %s4645_s22 = smov 5  }
   0x4   :  { %s4745_s17 = sld [smem:[%s5763_s0 + %s4643_s14]]   ;;  %s4646_s26 = smov 6  }
   0x5   :  { %s4750_s21 = sld [smem:[%s5763_s0 + %s4644_s18]]   ;;  %s4647_s30 = smov 7  }
   0x6   :  { %s4755_s25 = sld [smem:[%s5763_s0 + %s4645_s22]]   ;;  %s4648_s4 = smov 8  }
   0x7   :  { %5802 = sst [smem:[#allocation37_spill]] %s4730_s5  ;;  %s4649_s10 = smov 9  }
   0x8   :  { %5803 = sst [smem:[#allocation38_spill]] %s4735_s9  ;;  %s4650_s15 = smov 10  }
   0x9   :  { %5804 = sst [smem:[#allocation39_spill]] %s4740_s13  ;;  %s4651_s20 = smov 11  }
   0xa   :  { %5805 = sst [smem:[#allocation40_spill]] %s4745_s17  ;;  %s4653_s1 = smov 13  }
   0xb   :  { %s4760_s29 = sld [smem:[%s5763_s0 + %s4646_s26]]   ;;  %s4652_s26 = smov 12  }
   0xc   :  { %s4765_s3 = sld [smem:[%s5763_s0 + %s4647_s30]]   ;;  %s4654_s7 = smov 14  }
   0xd   :  { %s4770_s8 = sld [smem:[%s5763_s0 + %s4648_s4]]   ;;  %s4656_s22 = smov 16  }
   0xe   :  { %s4775_s14 = sld [smem:[%s5763_s0 + %s4649_s10]]   ;;  %s4657_s28 = smov 17  }
   0xf   :  { %s4780_s19 = sld [smem:[%s5763_s0 + %s4650_s15]]   ;;  %s4655_s15 = smov 15  }
  0x10   :  { %s4785_s24 = sld [smem:[%s5763_s0 + %s4651_s20]]   ;;  %s4675_s16 = smov 35  }
  0x11   :  { %s4790_s30 = sld [smem:[%s5763_s0 + %s4652_s26]]  }
  0x12   :  { %5806 = sst [smem:[#allocation41_spill]] %s4765_s3 }
  0x13   :  { %5807 = sst [smem:[#allocation42_spill]] %s4770_s8 }
  0x14   :  { %5808 = sst [smem:[#allocation43_spill]] %s4775_s14 }
  0x15   :  { %5809 = sst [smem:[#allocation44_spill]] %s4780_s19 }
  0x16   :  { %s4795_s6 = sld [smem:[%s5763_s0 + %s4653_s1]]  }
  0x17   :  { %s4800_s12 = sld [smem:[%s5763_s0 + %s4654_s7]]   ;;  %s4658_s7 = smov 18  }
  0x18   :  { %s4805_s20 = sld [smem:[%s5763_s0 + %s4655_s15]]   ;;  %s4659_s15 = smov 19  }
  0x19   :  { %s4810_s27 = sld [smem:[%s5763_s0 + %s4656_s22]]   ;;  %s4660_s22 = smov 20  }
  0x1a   :  { %s4815_s4 = sld [smem:[%s5763_s0 + %s4657_s28]]   ;;  %s4661_s28 = smov 21  }
  0x1b   :  { %s4830_s9 = sld [smem:[%s5763_s0 + %s4660_s22]]   ;;  %s4664_s22 = smov 24  }
  0x1c   :  { %5810 = sst [smem:[#allocation45_spill]] %s4795_s6 }
  0x1d   :  { %5811 = sst [smem:[#allocation46_spill]] %s4800_s12 }
  0x1e   :  { %5812 = sst [smem:[#allocation47_spill]] %s4805_s20 }
  0x1f   :  { %s4820_s12 = sld [smem:[%s5763_s0 + %s4658_s7]]   ;;  %s4662_s7 = smov 22  }
  0x20   :  { %5813 = sst [smem:[#allocation48_spill]] %s4815_s4 }
  0x21   :  { %s4825_s20 = sld [smem:[%s5763_s0 + %s4659_s15]]   ;;  %s4663_s15 = smov 23  }
  0x22   :  { %5816 = sst [smem:[#allocation51_spill]] %s4830_s9 }
  0x23   :  { %s4835_s5 = sld [smem:[%s5763_s0 + %s4661_s28]]   ;;  %s4665_s28 = smov 25  }
  0x24   :  { %s4850_s9 = sld [smem:[%s5763_s0 + %s4664_s22]]   ;;  %s4668_s22 = smov 28  }
  0x25   :  { %5814 = sst [smem:[#allocation49_spill]] %s4820_s12 }
  0x26   :  { %s4840_s12 = sld [smem:[%s5763_s0 + %s4662_s7]]   ;;  %s4666_s7 = smov 26  }
  0x27   :  { %5815 = sst [smem:[#allocation50_spill]] %s4825_s20 }
  0x28   :  { %s4845_s20 = sld [smem:[%s5763_s0 + %s4663_s15]]   ;;  %s4667_s15 = smov 27  }
  0x29   :  { %5817 = sst [smem:[#allocation52_spill]] %s4835_s5 }
  0x2a   :  { %5820 = sst [smem:[#allocation55_spill]] %s4850_s9 }
  0x2b   :  { %s4855_s5 = sld [smem:[%s5763_s0 + %s4665_s28]]   ;;  %s4669_s28 = smov 29  }
  0x2c   :  { %5818 = sst [smem:[#allocation53_spill]] %s4840_s12 }
  0x2d   :  { %s4860_s12 = sld [smem:[%s5763_s0 + %s4666_s7]]   ;;  %s4670_s7 = smov 30  }
  0x2e   :  { %5819 = sst [smem:[#allocation54_spill]] %s4845_s20 }
  0x2f   :  { %s4865_s20 = sld [smem:[%s5763_s0 + %s4667_s15]]   ;;  %s4671_s15 = smov 31  }
  0x30   :  { %s4870_s9 = sld [smem:[%s5763_s0 + %s4668_s22]]   ;;  %s4672_s22 = smov 32  }
  0x31   :  { %5821 = sst [smem:[#allocation56_spill]] %s4855_s5 }
  0x32   :  { %s4875_s5 = sld [smem:[%s5763_s0 + %s4669_s28]]   ;;  %s4673_s28 = smov 33  }
  0x33   :  { %5822 = sst [smem:[#allocation57_spill]] %s4860_s12 }
  0x34   :  { %s4880_s12 = sld [smem:[%s5763_s0 + %s4670_s7]]   ;;  %s4674_s7 = smov 34  }
  0x35   :  { %5823 = sst [smem:[#allocation58_spill]] %s4865_s20 }
  0x36   :  { %5824 = sst [smem:[#allocation59_spill]] %s4870_s9 }
  0x37   :  { %s4885_s20 = sld [smem:[%s5763_s0 + %s4671_s15]]  }
  0x38   :  { %5825 = sst [smem:[#allocation60_spill]] %s4875_s5 }
  0x39   :  { %s4890_s9 = sld [smem:[%s5763_s0 + %s4672_s22]]  }
  0x3a   :  { %5826 = sst [smem:[#allocation61_spill]] %s4880_s12 }
  0x3b   :  { %s4895_s5 = sld [smem:[%s5763_s0 + %s4673_s28]]  }
  0x3c   :  { %s3716_s12 = sld [smem:[%s5763_s0 + %s4674_s7]]  }
  0x3d   :  { %5827 = sst [smem:[#allocation62_spill]] %s4885_s20 }
  0x3e   :  { %s4903_s20 = sld [smem:[%s5763_s0 + %s4675_s16]]  }
  0x42   :  { %v76_v0 = vstv %s3716_s12 }
  0x43   :  { %77 = vst [vmem:[#allocation2] sm:$0x1] %v76_v0 }
  0x44   :  { %5828 = sst [smem:[#allocation63_spill]] %s4903_s20 }
  0x45   :  { %78 = vsyncpa [#allocation4], 0 }
  0x46   :  { %80 = vsyncpa [#allocation4 + $0x1], 0 }
  0x47   :  { %81 = vsyncpa [#allocation6], 0 }
  0x48   :  { %82 = vsyncpa [#allocation9], 0 }
  0x49   :  { %83 = vsyncpa [#allocation12], 0 }
  0x4a   :  { %84 = vsyncpa [#allocation15], 0 }
  0x4b   :  { %85 = vsyncpa [#allocation18], 0 }
  0x4c   :  { %86 = vsyncpa [#allocation21], 0 }
  0x4d   :  { %87 = vsyncpa [#allocation24], 0 }
  0x4e   :  { %88 = vsyncpa [#allocation27], 0  ;;  %s4905_s22 = smov 0   ;;  %s4907_s23 = smov 0  }
  0x4f   :  { %s4909_s26 = smov 0   ;;  %s4911_s0 = smov 0  }
  0x50 LB: > { %s4676_s12 = smov [#allocation5]   ;;  %s4926_s1 = sadd.s32 4294967295, %s4639_s0   ;;  %s4639_s0 = sphi %s4911_s0, %s5899_s0   ;;  %s4635_s26 = sphi %s4909_s26, %s5898_s26   ;;  %s4631_s23 = sphi %s4907_s23, %s5897_s23   ;;  %s4627_s22 = sphi %s4905_s22, %s5896_s22  }
  0x51   : > { %s880_s28 = sshll.u32 %s4676_s12, 4  ;;  %p3720_p0 = scmp.ge.s32.totalorder %s4639_s0, 1  ;;  %s881_s28 = int_to_ptr.vmem [resolvable:$true] %s880_s28 }
  0x52   : > { %p5766_p1 = scmp.eq.s32.totalorder %s4926_s1, 0  ;;  %p865_p2 = scmp.lt.s32.totalorder %s4639_s0, 3 }
  0x53   : > { %s4677_s7 = smov [#allocation8]   ;;  %s4678_s16 = smov [#allocation11]  }
  0x54   : > { %p4931_p3 = pnand %p3720_p0, %p865_p2  ;;  %s906_s10 = sshll.u32 %s4677_s7, 4  ;;  %s4943_s10 = int_to_ptr.vmem [resolvable:$true] %s906_s10 }
  0x55   : > { %s931_s15 = sshll.u32 %s4678_s16, 4  ;;  %s4166_s12 = scalar_lea.vmem %s881_s28, 640  ;;  %s4945_s15 = int_to_ptr.vmem [resolvable:$true] %s931_s15 }
  0x56   : > { %s5829_s2 = scalar_select %p4931_p3, 1, 0 }
  0x57   : > { %p3952_p4 = pneg %p4931_p3  ;;  %p4167_p7 = scmp.ne.s32.totalorder %s881_s28, %s4166_s12 }
  0x58   : > { %p4174_p10 = scmp.lt.s32.totalorder %s881_s28, %s881_s28  ;;  %p4175_p11 = scmp.lt.s32.totalorder %s4166_s12, %s4166_s12 }
  0x59   : > { %p4939_p5 = pnand %p3952_p4, %p5766_p1 }
  0x5a   : > { %p4176_p12 = por %p4175_p11, %p4174_p10 }
  0x5b   : > { %p4949_p6 = pneg %p4939_p5 }
  0x5d   : > { %p4169_p8 = pnand %p4167_p7, %p4949_p6 }
  0x5f   : > { %p4170_p9 = pneg %p4169_p8 }
  0x61   : > { %p4177_p13 = pnand %p4176_p12, %p4170_p9 }
  0x63   : > { %4180 = shalt.err (!%p4177_p13)
}
  0x64   : > { %s4679_s7 = smov 128   ;;  %s5832_s13 = sld [smem:[#allocation39_spill]] }
  0x65   : > { %s4680_s16 = smov 8   ;;  %s4192_s20 = scalar_lea.vmem %s4943_s10, 512 }
  0x66   : > { %p4193_p0 = scmp.ne.s32.totalorder %s4943_s10, %s4192_s20  ;;  %p4200_p7 = scmp.lt.s32.totalorder %s4943_s10, %s4943_s10 }
  0x67   : > { %p4201_p8 = scmp.lt.s32.totalorder %s4192_s20, %s4192_s20 }
  0x68   : > { %p4195_p2 = pnand %p4193_p0, %p4949_p6 }
  0x69   : > { %p4202_p9 = por %p4201_p8, %p4200_p7 }
  0x6a   : > { %3955 = dma.hbm_to_vmem [thread:$0]  (!%p4939_p5), %s5832_s13, 640, %s881_s28, [#allocation6], %s4679_s7, %s4679_s7, %s4680_s16  }
  0x6b   : > { %p4196_p4 = pneg %p4195_p2 }
  0x6d   : > { %p4203_p10 = pnand %p4202_p9, %p4196_p4 }
  0x6f   : > { %4206 = shalt.err (!%p4203_p10)
}
  0x70   : > { %3961 = dma.hbm_to_vmem [thread:$0]  (!%p4939_p5), %s4750_s21, 512, %s4943_s10, [#allocation9], %s4679_s7, %s4679_s7, %s4680_s16  }
  0x71   : > { %s4218_s28 = scalar_lea.vmem %s4945_s15, 64  ;;  %p4226_p0 = scmp.lt.s32.totalorder %s4945_s15, %s4945_s15 }
  0x72   : > { %p4219_p11 = scmp.ne.s32.totalorder %s4945_s15, %s4218_s28  ;;  %p4227_p2 = scmp.lt.s32.totalorder %s4218_s28, %s4218_s28 }
  0x74   : > { %p4221_p12 = pnand %p4219_p11, %p4949_p6  ;;  %p4228_p7 = por %p4227_p2, %p4226_p0 }
  0x76   : > { %p4222_p13 = pneg %p4221_p12 }
  0x78   : > { %p4229_p4 = pnand %p4228_p7, %p4222_p13 }
  0x7a   : > { %4232 = shalt.err (!%p4229_p4)
}
  0x7b   : > { %3967 = dma.hbm_to_vmem [thread:$0]  (!%p4939_p5), %s4760_s29, 64, %s4945_s15, [#allocation12]  }
  0x7c   : > { %s4681_s20 = smov [#allocation14]   ;;  %s4682_s10 = smov [#allocation17]  }
  0x7d   : > { %s953_s12 = sshll.u32 %s4681_s20, 4  ;;  %s975_s7 = sshll.u32 %s4682_s10, 4  ;;  %s954_s12 = int_to_ptr.vmem [resolvable:$true] %s953_s12  ;;  %s976_s7 = int_to_ptr.vmem [resolvable:$true] %s975_s7 }
  0x7e   : > { %s4244_s16 = scalar_lea.vmem %s954_s12, 64  ;;  %p4252_p11 = scmp.lt.s32.totalorder %s954_s12, %s954_s12 }
  0x7f   : > { %p4245_p8 = scmp.ne.s32.totalorder %s954_s12, %s4244_s16  ;;  %p4253_p12 = scmp.lt.s32.totalorder %s4244_s16, %s4244_s16 }
  0x81   : > { %p4247_p9 = pnand %p4245_p8, %p4949_p6  ;;  %p4254_p13 = por %p4253_p12, %p4252_p11 }
  0x83   : > { %p4248_p10 = pneg %p4247_p9 }
  0x85   : > { %p4255_p0 = pnand %p4254_p13, %p4248_p10 }
  0x87   : > { %4258 = shalt.err (!%p4255_p0)
}
  0x88   : > { %s5833_s8 = sld [smem:[#allocation42_spill]]  ;;  %s4270_s15 = scalar_lea.vmem %s976_s7, 64 }
  0x89   : > { %p4271_p2 = scmp.ne.s32.totalorder %s976_s7, %s4270_s15  ;;  %p4278_p1 = scmp.lt.s32.totalorder %s976_s7, %s976_s7 }
  0x8a   : > { %p4279_p3 = scmp.lt.s32.totalorder %s4270_s15, %s4270_s15 }
  0x8b   : > { %p4273_p7 = pnand %p4271_p2, %p4949_p6 }
  0x8c   : > { %p4280_p8 = por %p4279_p3, %p4278_p1 }
  0x8d   : > { %p4274_p4 = pneg %p4273_p7 }
  0x8e   : > { %3973 = dma.hbm_to_vmem [thread:$0]  (!%p4939_p5), %s5833_s8, 64, %s954_s12, [#allocation15]  }
  0x8f   : > { %p4281_p9 = pnand %p4280_p8, %p4274_p4 }
  0x91   : > { %4284 = shalt.err (!%p4281_p9)
}
  0x92   : > { %s5834_s19 = sld [smem:[#allocation44_spill]]  ;;  %s4683_s28 = smov [#allocation20]  }
  0x93   : > { %s997_s20 = sshll.u32 %s4683_s28, 4  ;;  %s4684_s12 = smov [#allocation23]   ;;  %s998_s20 = int_to_ptr.vmem [resolvable:$true] %s997_s20 }
  0x94   : > { %s1025_s10 = sshll.u32 %s4684_s12, 4  ;;  %s4296_s16 = scalar_lea.vmem %s998_s20, 64  ;;  %s1026_s10 = int_to_ptr.vmem [resolvable:$true] %s1025_s10 }
  0x95   : > { %p4297_p10 = scmp.ne.s32.totalorder %s998_s20, %s4296_s16  ;;  %p4304_p13 = scmp.lt.s32.totalorder %s998_s20, %s998_s20 }
  0x96   : > { %p4305_p0 = scmp.lt.s32.totalorder %s4296_s16, %s4296_s16 }
  0x97   : > { %p4299_p11 = pnand %p4297_p10, %p4949_p6 }
  0x98   : > { %3979 = dma.hbm_to_vmem [thread:$0]  (!%p4939_p5), %s5834_s19, 64, %s976_s7, [#allocation18]  }
  0x99   : > { %p4300_p12 = pneg %p4299_p11  ;;  %p4306_p1 = por %p4305_p0, %p4304_p13 }
  0x9b   : > { %p4307_p3 = pnand %p4306_p1, %p4300_p12 }
  0x9d   : > { %4310 = shalt.err (!%p4307_p3)
}
  0x9e   : > { %3985 = dma.hbm_to_vmem [thread:$0]  (!%p4939_p5), %s4790_s30, 64, %s998_s20, [#allocation21]  }
  0x9f   : > { %s4322_s7 = scalar_lea.vmem %s1026_s10, 64  ;;  %p4330_p8 = scmp.lt.s32.totalorder %s1026_s10, %s1026_s10 }
  0xa0   : > { %p4323_p2 = scmp.ne.s32.totalorder %s1026_s10, %s4322_s7  ;;  %p4331_p9 = scmp.lt.s32.totalorder %s4322_s7, %s4322_s7 }
  0xa2   : > { %p4325_p7 = pnand %p4323_p2, %p4949_p6  ;;  %p4332_p10 = por %p4331_p9, %p4330_p8 }
  0xa4   : > { %p4326_p4 = pneg %p4325_p7 }
  0xa6   : > { %p4333_p11 = pnand %p4332_p10, %p4326_p4 }
  0xa8   : > { %4336 = shalt.err (!%p4333_p11)
}
  0xa9   : > { %3991 = dma.hbm_to_vmem [thread:$0]  (!%p4939_p5), %s4810_s27, 64, %s1026_s10, [#allocation24]  }
  0xaa   : > { %s4685_s15 = smov [#allocation7]  }
  0xab   : > { %s893_s28 = sshll.u32 %s4685_s15, 4  ;;  %s894_s28 = int_to_ptr.vmem [resolvable:$true] %s893_s28 }
  0xac   : > { %s4348_s20 = scalar_lea.vmem %s894_s28, 1280  ;;  %p4356_p1 = scmp.lt.s32.totalorder %s894_s28, %s894_s28 }
  0xad   : > { %p4349_p12 = scmp.ne.s32.totalorder %s894_s28, %s4348_s20  ;;  %p4357_p3 = scmp.lt.s32.totalorder %s4348_s20, %s4348_s20 }
  0xaf   : > { %p4351_p13 = pnand %p4349_p12, %p4949_p6  ;;  %p4358_p2 = por %p4357_p3, %p4356_p1 }
  0xb1   : > { %p4352_p0 = pneg %p4351_p13 }
  0xb3   : > { %p4359_p7 = pnand %p4358_p2, %p4352_p0 }
  0xb5   : > { %4362 = shalt.err (!%p4359_p7)
}
  0xb6   : > { %s4686_s12 = smov 256   ;;  %s5835_s17 = sld [smem:[#allocation40_spill]] }
  0xb7   : > { %s4687_s16 = smov 16   ;;  %s4688_s10 = smov [#allocation10]  }
  0xb8   : > { %s920_s7 = sshll.u32 %s4688_s10, 4  ;;  %s4689_s15 = smov [#allocation13]   ;;  %s921_s7 = int_to_ptr.vmem [resolvable:$true] %s920_s7 }
  0xb9   : > { %s942_s8 = sshll.u32 %s4689_s15, 4  ;;  %s4374_s20 = scalar_lea.vmem %s921_s7, 16  ;;  %s943_s8 = int_to_ptr.vmem [resolvable:$true] %s942_s8 }
  0xba   : > { %p4375_p4 = scmp.ne.s32.totalorder %s921_s7, %s4374_s20  ;;  %s4381_s13 = scalar_lea.vmem %s921_s7, 32 }
  0xbb   : > { %p4382_p10 = scmp.lt.s32.totalorder %s921_s7, %s921_s7  ;;  %p4383_p11 = scmp.lt.s32.totalorder %s4381_s13, %s4374_s20 }
  0xbc   : > { %3958 = dma.hbm_to_vmem [thread:$0]  (!%p4939_p5), %s5835_s17, 1280, %s894_s28, [#allocation6], %s4686_s12, %s4686_s12, %s4687_s16  }
  0xbd   : > { %p4377_p8 = pnand %p4375_p4, %p4949_p6  ;;  %p4384_p12 = por %p4383_p11, %p4382_p10 }
  0xbf   : > { %p4378_p9 = pneg %p4377_p8 }
  0xc1   : > { %p4385_p13 = pnand %p4384_p12, %p4378_p9 }
  0xc3   : > { %4388 = shalt.err (!%p4385_p13)
}
  0xc4   : > { %3964 = dma.hbm_to_vmem [thread:$0]  (!%p4939_p5), %s4755_s25, 16, %s921_s7, [#allocation9]  }
  0xc5   : > { %s4400_s28 = scalar_lea.vmem %s943_s8, 64  ;;  %p4408_p2 = scmp.lt.s32.totalorder %s943_s8, %s943_s8 }
  0xc6   : > { %p4401_p0 = scmp.ne.s32.totalorder %s943_s8, %s4400_s28  ;;  %p4409_p7 = scmp.lt.s32.totalorder %s4400_s28, %s4400_s28 }
  0xc8   : > { %p4403_p1 = pnand %p4401_p0, %p4949_p6  ;;  %p4410_p4 = por %p4409_p7, %p4408_p2 }
  0xca   : > { %p4404_p3 = pneg %p4403_p1 }
  0xcc   : > { %p4411_p8 = pnand %p4410_p4, %p4404_p3 }
  0xce   : > { %4414 = shalt.err (!%p4411_p8)
}
  0xcf   : > { %s5836_s3 = sld [smem:[#allocation41_spill]]  ;;  %s4690_s13 = smov [#allocation16]  }
  0xd0   : > { %s964_s10 = sshll.u32 %s4690_s13, 4  ;;  %s4691_s15 = smov [#allocation19]   ;;  %s965_s10 = int_to_ptr.vmem [resolvable:$true] %s964_s10 }
  0xd1   : > { %s986_s20 = sshll.u32 %s4691_s15, 4  ;;  %s4426_s7 = scalar_lea.vmem %s965_s10, 64  ;;  %s987_s20 = int_to_ptr.vmem [resolvable:$true] %s986_s20 }
  0xd2   : > { %p4427_p9 = scmp.ne.s32.totalorder %s965_s10, %s4426_s7  ;;  %p4434_p12 = scmp.lt.s32.totalorder %s965_s10, %s965_s10 }
  0xd3   : > { %p4435_p13 = scmp.lt.s32.totalorder %s4426_s7, %s4426_s7 }
  0xd4   : > { %p4429_p10 = pnand %p4427_p9, %p4949_p6 }
  0xd5   : > { %3970 = dma.hbm_to_vmem [thread:$0]  (!%p4939_p5), %s5836_s3, 64, %s943_s8, [#allocation12]  }
  0xd6   : > { %p4430_p11 = pneg %p4429_p10  ;;  %p4436_p0 = por %p4435_p13, %p4434_p12 }
  0xd8   : > { %p4437_p1 = pnand %p4436_p0, %p4430_p11 }
  0xda   : > { %4440 = shalt.err (!%p4437_p1)
}
  0xdb   : > { %s5837_s14 = sld [smem:[#allocation43_spill]]  ;;  %s4452_s8 = scalar_lea.vmem %s987_s20, 64 }
  0xdc   : > { %p4453_p3 = scmp.ne.s32.totalorder %s987_s20, %s4452_s8  ;;  %p4460_p4 = scmp.lt.s32.totalorder %s987_s20, %s987_s20 }
  0xdd   : > { %p4461_p8 = scmp.lt.s32.totalorder %s4452_s8, %s4452_s8 }
  0xde   : > { %p4455_p2 = pnand %p4453_p3, %p4949_p6 }
  0xdf   : > { %p4462_p9 = por %p4461_p8, %p4460_p4 }
  0xe0   : > { %p4456_p7 = pneg %p4455_p2 }
  0xe1   : > { %3976 = dma.hbm_to_vmem [thread:$0]  (!%p4939_p5), %s5837_s14, 64, %s965_s10, [#allocation15]  }
  0xe2   : > { %p4463_p10 = pnand %p4462_p9, %p4456_p7 }
  0xe4   : > { %4466 = shalt.err (!%p4463_p10)
}
  0xe5   : > { %3982 = dma.hbm_to_vmem [thread:$0]  (!%p4939_p5), %s4785_s24, 64, %s987_s20, [#allocation18]  }
  0xe6   : > { %s4692_s28 = smov [#allocation22]   ;;  %s4693_s15 = smov [#allocation25]  }
  0xe7   : > { %s1008_s13 = sshll.u32 %s4692_s28, 4  ;;  %s1036_s7 = sshll.u32 %s4693_s15, 4  ;;  %s1009_s13 = int_to_ptr.vmem [resolvable:$true] %s1008_s13  ;;  %s1037_s7 = int_to_ptr.vmem [resolvable:$true] %s1036_s7 }
  0xe8   : > { %s4478_s10 = scalar_lea.vmem %s1009_s13, 64  ;;  %p4486_p0 = scmp.lt.s32.totalorder %s1009_s13, %s1009_s13 }
  0xe9   : > { %p4479_p11 = scmp.ne.s32.totalorder %s1009_s13, %s4478_s10  ;;  %p4487_p1 = scmp.lt.s32.totalorder %s4478_s10, %s4478_s10 }
  0xeb   : > { %p4481_p12 = pnand %p4479_p11, %p4949_p6  ;;  %p4488_p3 = por %p4487_p1, %p4486_p0 }
  0xed   : > { %p4482_p13 = pneg %p4481_p12 }
  0xef   : > { %p4489_p2 = pnand %p4488_p3, %p4482_p13 }
  0xf1   : > { %4492 = shalt.err (!%p4489_p2)
}
  0xf2   : > { %s5838_s6 = sld [smem:[#allocation45_spill]]  ;;  %s4504_s20 = scalar_lea.vmem %s1037_s7, 64 }
  0xf3   : > { %p4505_p7 = scmp.ne.s32.totalorder %s1037_s7, %s4504_s20  ;;  %p4512_p9 = scmp.lt.s32.totalorder %s1037_s7, %s1037_s7 }
  0xf4   : > { %p4513_p10 = scmp.lt.s32.totalorder %s4504_s20, %s4504_s20 }
  0xf5   : > { %p4507_p4 = pnand %p4505_p7, %p4949_p6 }
  0xf6   : > { %p4514_p11 = por %p4513_p10, %p4512_p9 }
  0xf7   : > { %p4508_p8 = pneg %p4507_p4 }
  0xf8   : > { %3988 = dma.hbm_to_vmem [thread:$0]  (!%p4939_p5), %s5838_s6, 64, %s1009_s13, [#allocation21]  }
  0xf9   : > { %p4515_p12 = pnand %p4514_p11, %p4508_p8 }
  0xfb   : > { %4518 = shalt.err (!%p4515_p12)
}
  0xfc   : > { %s5839_s4 = sld [smem:[#allocation48_spill]]  ;;  %s4694_s8 = smov [#allocation26]  }
  0xfd   : > { %s1052_s28 = sshll.u32 %s4694_s8, 4  ;;  %s1053_s28 = int_to_ptr.vmem [resolvable:$true] %s1052_s28 }
  0xfe   : > { %s4530_s15 = scalar_lea.vmem %s1053_s28, 2048  ;;  %p4538_p3 = scmp.lt.s32.totalorder %s1053_s28, %s1053_s28 }
  0xff   : > { %p4531_p13 = scmp.ne.s32.totalorder %s1053_s28, %s4530_s15  ;;  %p4539_p2 = scmp.lt.s32.totalorder %s4530_s15, %s4530_s15 }
 0x101   : > { %p4533_p0 = pnand %p4531_p13, %p4949_p6  ;;  %p4540_p7 = por %p4539_p2, %p4538_p3 }
 0x102   : > { %3994 = dma.hbm_to_vmem [thread:$0]  (!%p4939_p5), %s5839_s4, 64, %s1037_s7, [#allocation24]  }
 0x103   : > { %p4534_p1 = pneg %p4533_p0 }
 0x105   : > { %p4541_p4 = pnand %p4540_p7, %p4534_p1 }
 0x107   : > { %4544 = shalt.err (!%p4541_p4)
}
 0x108   : > { %s5840_s13 = sld [smem:[#allocation51_spill]]  ;;  %s5045_s11 = sadd.s32 1, %s4639_s0  }
 0x109   : > { %s5841_s18 = sld [smem:[#allocation37_spill]]  ;;  %s98_s7 = ssub.s32 %s4639_s0, %s5045_s11 }
 0x10a   : > { %s101_s10 = sadd.s32 1, %s4635_s26  ;;  %p99_p6 = scmp.eq.s32.totalorder %s98_s7, 0 }
 0x10b   : > { %p108_p8 = scmp.ne.s32.totalorder %s4635_s26, %s4631_s23  ;;  %p109_p9 = scmp.eq.s32.totalorder %s4639_s0, 0 }
 0x10c   : > { %p114_p10 = scmp.ne.s32.totalorder %s4631_s23, %s4627_s22  ;;  %p5842_p12 = scmp.eq.s32.totalorder %s4926_s1, 0 }
 0x10d   : > { %s5056_s20 = scalar_select %p99_p6, %s4635_s26, %s101_s10  }
 0x10e   : > { %3997 = dma.hbm_to_vmem [thread:$0]  (!%p4939_p5), %s5840_s13, 2048, %s1053_s28, [#allocation27], %s4686_s12, %s4686_s12, %s4687_s16  }
 0x10f   : > { %p110_p11 = por %p109_p9, %p108_p8  ;;  %p5060_p13 = por %p5842_p12, %p114_p10 }
 0x110   : > { %p4017_p5 = scmp.lt.s32.totalorder %s4639_s0, 2  ;;  %s1108_s12 = sand.u32 1, %s4635_s26  }
 0x111   : > { %s5843_s8 = scalar_select %p5060_p13, 1, 0 }
 0x112   : > { %s3737_s16 = sshll.u32 %s4639_s0, 4  ;;  %s1111_s28 = scalar_lea.vmem [#allocation3], %s1108_s12 }
 0x113   : > { %s1118_s15 = sshll.u32 %s1111_s28, 4  ;;  %s5068_s13 = scalar_lea.hbm %s5841_s18, %s3737_s16  ;;  %s1119_s15 = int_to_ptr.vmem [resolvable:$true] %s1118_s15 }
 0x114   : > { %p5070_p0 = pnand %p4017_p5, %p110_p11  ;;  %s1109_s7 = scalar_lea.sflag [#allocation4], %s1108_s12 }
 0x115   : > { %s4545_s10 = scalar_lea.hbm %s5068_s13, 16  ;;  %s4550_s0 = scalar_lea.hbm %s5841_s18, 32 }
 0x116   : > { %s5844_s22 = scalar_select %p5070_p0, 1, 0 }
 0x117   : > { %p4546_p1 = scmp.ne.s32.totalorder %s5068_s13, %s4545_s10  ;;  %p4547_p3 = pneg %p5070_p0 }
 0x118   : > { %p4551_p4 = scmp.lt.s32.totalorder %s5068_s13, %s5841_s18  ;;  %p4552_p6 = scmp.lt.s32.totalorder %s4550_s0, %s4545_s10 }
 0x119   : > { %p4548_p2 = pnand %p4547_p3, %p4546_p1 }
 0x11a   : > { %p4553_p8 = por %p4552_p6, %p4551_p4 }
 0x11b   : > { %p4549_p7 = pneg %p4548_p2 }
 0x11d   : > { %p4554_p9 = pnand %p4553_p8, %p4549_p7 }
 0x11f   : > { %4557 = shalt.err (!%p4554_p9)
}
 0x120   : > { %s4558_s16 = scalar_lea.vmem %s1119_s15, 16  ;;  %s4695_s28 = smov [#allocation3]  }
 0x121   : > { %p4559_p10 = scmp.ne.s32.totalorder %s1119_s15, %s4558_s16  ;;  %s4563_s3 = sshll.u32 %s4695_s28, 4  ;;  %s4564_s3 = int_to_ptr.vmem [resolvable:$false] %s4563_s3 }
 0x122   : > { %s4565_s12 = scalar_lea.vmem %s4564_s3, 32  ;;  %p4566_p5 = scmp.lt.s32.totalorder %s1119_s15, %s4564_s3 }
 0x123   : > { %p4561_p11 = pnand %p4559_p10, %p4547_p3  ;;  %p4567_p13 = scmp.lt.s32.totalorder %s4565_s12, %s4558_s16 }
 0x125   : > { %p4562_p12 = pneg %p4561_p11  ;;  %p4568_p0 = por %p4567_p13, %p4566_p5 }
 0x127   : > { %p4569_p1 = pnand %p4568_p0, %p4562_p12 }
 0x129   : > { %4572 = shalt.err (!%p4569_p1)
}
 0x12a   : > { %p5845_p2 = scmp.ne.s32.totalorder %s5844_s22, 0  ;;  %p5846_p7 = scmp.ne.s32.totalorder %s5829_s2, 0 }
 0x12b   : > { %s1129_s10 = sand.u32 (!%p5846_p7), 1, %s4631_s23   ;;  %p5847_p3 = scmp.ne.s32.totalorder (!%p5846_p7), %s5843_s8, 0 }
 0x12c   : > { %4001 = dma.hbm_to_vmem [thread:$0]  (!%p5845_p2), %s5068_s13, 16, %s1119_s15, %s1109_s7  }
 0x12d   : > { %1127 = sbr.rel (%p5846_p7) target bundleno = 4867 (0x1303), region = 160  ;;  %s1130_s0 = scalar_lea.sflag (!%p5846_p7), [#allocation4], %s1129_s10 }
 0x12e   : > { %s5087_s4 = scalar_lea.vmem (!%p5846_p7), [#allocation3], %s1129_s10 }
 0x132   : > { %4590 = dma.done.wait (%p5847_p3), %s1130_s0, 16  }
 0x133   : > { %4592 = vsyncadd (%p5847_p3), %s1130_s0, 4294967280  ;;  %p5848_p13 = scmp.eq.s32.totalorder %s4926_s1, 0 }
 0x135   : > { %4594 = dma.done.wait (%p5848_p13), [#allocation6], 1920   ;;  %p5849_p0 = pmov %p5848_p13 }
 0x137   : > { %4596 = vsyncadd (%p5849_p0), [#allocation6], 4294965376  ;;  %p5850_p4 = pmov %p5849_p0 }
 0x138   : > { %p5851_p6 = pmov %p5849_p0 }
 0x139   : > { %4598 = dma.done.wait (%p5850_p4), [#allocation9], 528  }
 0x13a   : > { %4600 = vsyncadd (%p5851_p6), [#allocation9], 4294966768  ;;  %p5852_p8 = pmov %p5849_p0 }
 0x13b   : > { %p5853_p9 = pmov %p5849_p0 }
 0x13c   : > { %4602 = dma.done.wait (%p5852_p8), [#allocation12], 128  }
 0x13d   : > { %4604 = vsyncadd (%p5853_p9), [#allocation12], 4294967168  ;;  %p5854_p10 = pmov %p5849_p0 }
 0x13e   : > { %p5855_p11 = pmov %p5849_p0 }
 0x13f   : > { %4606 = dma.done.wait (%p5854_p10), [#allocation15], 128  }
 0x140   : > { %4608 = vsyncadd (%p5855_p11), [#allocation15], 4294967168  ;;  %p5856_p12 = pmov %p5849_p0 }
 0x141   : > { %p5857_p5 = pmov %p5849_p0 }
 0x142   : > { %4610 = dma.done.wait (%p5856_p12), [#allocation18], 128  }
 0x143   : > { %4612 = vsyncadd (%p5857_p5), [#allocation18], 4294967168  ;;  %p5858_p1 = pmov %p5849_p0 }
 0x144   : > { %p5859_p2 = pmov %p5849_p0 }
 0x145   : > { %4614 = dma.done.wait (%p5858_p1), [#allocation21], 128  }
 0x146   : > { %4616 = vsyncadd (%p5859_p2), [#allocation21], 4294967168  ;;  %p5860_p7 = pmov %p5849_p0 }
 0x147   : > { %p5861_p3 = pmov %p5849_p0 }
 0x148   : > { %4618 = dma.done.wait (%p5860_p7), [#allocation24], 128  }
 0x149   : > { %4620 = vsyncadd (%p5861_p3), [#allocation24], 4294967168  ;;  %p5862_p13 = pmov %p5849_p0 }
 0x14b   : > { %4622 = dma.done.wait (%p5862_p13), [#allocation27], 2048  }
 0x14c   : > { %4624 = vsyncadd (%p5849_p0), [#allocation27], 4294965248  ;;  %v4696_v1 = vmov 0.0   ;;  %vm4697_vm0 = vmmov 0   ;;  %v1285_v2 = vld [vmem:[#allocation8 + $0x18] sm:$0xff]  ;;  %v1284_v3 = vld [vmem:[#allocation8 + $0x10] sm:$0xff] }
 0x14d   : > { %3820 = vmatprep.subr.mxu0 %v4696_v1  ;;  %3828 = vmatprep.mubr.msk.f32.mxu0 %vm4697_vm0, %v4696_v1  ;;  %v1283_v4 = vld [vmem:[#allocation8 + $0x8] sm:$0xff]  ;;  %v1282_v5 = vld [vmem:[#allocation8] sm:$0xff]  ;;  %vm1287_vm1 = vcmask 261120   ;;  %s5786_s3 = smov 71   ;;  %s5772_s2 = smov 7   ;;  %v4710_v11 = vmov 0  }
 0x14e   : > { %3831 = vmatprep.subr.mxu1 %v4696_v1  ;;  %3835 = vmatprep.mubr.msk.f32.mxu1 %vm4697_vm0, %v4696_v1  ;;  %v1281_v6 = vld [vmem:[%s5087_s4] sm:$0x1]  ;;  %v1286_v7 = vld [vmem:[#allocation10] sm:$0x1]  ;;  %s5784_s4 = smov 72   ;;  %s5774_s8 = smov 8  }
 0x14f   : > { %3821 = vmatpush3.msra.mxu0 %v1285_v2  ;;  %s5770_s15 = smov 9   ;;  %s5776_s13 = smov 73   ;;  %4145 = vset.pattern.permute.xlu0 %v4710_v11  ;;  %v1465_v12 = vld [vmem:[#allocation13] sm:$0xf]  ;;  %vm1376_vm2 = vcmask 64512   ;;  %vm1368_vm3 = vcmask 72704  }
 0x150   : > { %3822 = vmatprep.subr.mxu0 %v4696_v1  ;;  %s5788_s22 = smov 1   ;;  %s5782_s7 = smov 65   ;;  %4146 = vset.pattern.permute.xlu1 %v4710_v11  ;;  %vm1392_vm4 = vcmask 7168   ;;  %vm1384_vm5 = vcmask 56320   ;;  %vm1446_vm6 = vcmask 1040384   ;;  %vm1400_vm7 = vcmask 515072  }
 0x151   : > { %3823 = vmatpush3.msra.mxu0 %v1284_v3  ;;  %s5797_s16 = smov 63   ;;  %s5780_s28 = smov 127   ;;  %vm1408_vm8 = vcmask 465920   ;;  %vm1448_vm9 = vcmask 1041408   ;;  %vm1450_vm10 = vcmask 1042432   ;;  %vm1416_vm11 = vcmask 457728  }
 0x152   : > { %3824 = vmatprep.subr.mxu0 %v4696_v1  ;;  %s5795_s12 = smov 57   ;;  %s5778_s10 = smov 121   ;;  %vm1452_vm12 = vcmask 1043456   ;;  %vm1454_vm13 = vcmask 1044480   ;;  %vm1456_vm14 = vcmask 1045504   ;;  %vm1424_vm15 = vcmask 449536  }
 0x153   : > { %3825 = vmatpush3.msra.mxu0 %v1283_v4  ;;  %s5791_s0 = smov 56   ;;  %v1464_v55 = vld [vmem:[#allocation11] sm:$0xf]  ;;  %v1631_v60 = vld [vmem:[#allocation16] sm:$0xf]  ;;  %s5870_s6 = smov 1  }
 0x154   : > { %3826 = vmatprep.subr.mxu0 %v4696_v1  ;;  %v5225_v2 = vld [vmem:[#allocation5 + $0x20] sm:$0xf]  ;;  %s5876_s14 = smov 63   ;;  %s5877_s17 = smov 57  }
 0x155   : > { %3827 = vmatpush3.msra.mxu0 %v1282_v5  ;;  %s5880_s18 = smov 120   ;;  %s5881_s19 = smov 119  }
 0x156   : > { %3829 = vmatmul.mubr.msk.f32.vlgmr.msra.gmra.mxu0 %vm1287_vm1, %v1281_v6  ;;  %3851 = vmatprep.subr.mxu0 %v4696_v1  ;;  %vm1458_vm1 = vcmask 1046528   ;;  %p1277_p4 = scmp.lt.s32.totalorder %s4926_s1, 1 }
 0x157   : > { %3861 = vmatprep.mubr.msk.f32.mxu0 %vm4697_vm0, %v4696_v1 }
 0x158   : > { %s5901_s1 = smov (!%p1277_p4, %s4926_s1), 1 }
 0x216   : > { %v1357_v8 = vpop.f32.mrf.mxu0 }
 0x217   : > { %v5138_v9 = vadd.f32 %v1357_v8, %v1286_v7 }
 0x218   : > { %v3830_v10 = vpop.f32.mrf.mxu0 }
 0x219   : > { %1378 = vrot.lane.b32.xlu1 %v5138_v9, %s5786_s3  ;;  %1370 = vrot.lane.b32.xlu0 %v5138_v9, %s5784_s4  ;;  %v1435_v41 = vrot.slane %v5138_v9, 4 }
 0x21d   : > { %1381 = vrot.lane.b32.xlu1 %v5138_v9, %s5772_s2  ;;  %1373 = vrot.lane.b32.xlu0 %v5138_v9, %s5774_s8  ;;  %s5793_s2 = smov 55   ;;  %s5799_s8 = smov 119  }
 0x221   : > { %1365 = vrot.lane.b32.xlu1 %v5138_v9, %s5770_s15  ;;  %1362 = vrot.lane.b32.xlu0 %v5138_v9, %s5776_s13  ;;  %s5800_s15 = smov 120   ;;  %s5863_s13 = sld [smem:[#allocation38_spill]] }
 0x225   : > { %1389 = vrot.lane.b32.xlu1 %v5138_v9, %s5788_s22  ;;  %1386 = vrot.lane.b32.xlu0 %v5138_v9, %s5782_s7 }
 0x227   : > { %v1461_v45 = vld [vmem:[%s5863_s13 + $0x8] sm:$0x1]  ;;  %v1460_v52 = vld [vmem:[%s5863_s13] sm:$0xff]  ;;  %s5871_s13 = smov 65  }
 0x229   : > { %1397 = vrot.lane.b32.xlu1 %v5138_v9, %s5797_s16  ;;  %1394 = vrot.lane.b32.xlu0 %v5138_v9, %s5780_s28 }
 0x22d   : > { %1405 = vrot.lane.b32.xlu1 %v5138_v9, %s5795_s12  ;;  %1402 = vrot.lane.b32.xlu0 %v5138_v9, %s5778_s10 }
 0x231   : > { %1413 = vrot.lane.b32.xlu1 %v5138_v9, %s5791_s0  ;;  %1410 = vrot.lane.b32.xlu0 %v5138_v9, %s5800_s15 }
 0x235   : > { %1421 = vrot.lane.b32.xlu1 %v5138_v9, %s5793_s2  ;;  %1418 = vrot.lane.b32.xlu0 %v5138_v9, %s5799_s8 }
 0x239   : > { %1468 = vperm.xlu0 %4145, %v1465_v12  }
 0x28b   : > { %v1379_v13 = vpop.permute.xlu1 %1378  ;;  %v1371_v14 = vpop.permute.xlu0 %1370 }
 0x28f   : > { %v1382_v15 = vpop.permute.xlu1 %1381  ;;  %v1374_v16 = vpop.permute.xlu0 %1373 }
 0x290   : > { %v1377_v21 = vsel %vm1376_vm2, %v1371_v14, %v1374_v16  ;;  %v1385_v26 = vsel %vm1384_vm5, %v1379_v13, %v1382_v15  ;;  %v5233_v13 = vld [vmem:[#allocation5 + $0x18] sm:$0xff] }
 0x291   : > { %v1427_v27 = vrot.slane %v1377_v21, 7  ;;  %v1430_v30 = vrot.slane %v1385_v26, 6 }
 0x293   : > { %v1366_v17 = vpop.permute.xlu1 %1365  ;;  %v1363_v18 = vpop.permute.xlu0 %1362 }
 0x294   : > { %v1369_v22 = vsel %vm1368_vm3, %v1363_v18, %v1366_v17  ;;  %v5239_v18 = vld [vmem:[#allocation5 + $0x10] sm:$0xff] }
 0x295   : > { %v1447_v29 = vsel %vm1446_vm6, %v1369_v22, %v1427_v27  ;;  %v5246_v27 = vld [vmem:[#allocation5 + $0x8] sm:$0xff] }
 0x296   : > { %v1449_v35 = vsel %vm1448_vm9, %v1447_v29, %v1430_v30  ;;  %vm2371_vm9 = vcmask 130048  }
 0x297   : > { %v1390_v19 = vpop.permute.xlu1 %1389  ;;  %v1387_v20 = vpop.permute.xlu0 %1386 }
 0x298   : > { %v1393_v23 = vsel %vm1392_vm4, %v1387_v20, %v1390_v19 }
 0x299   : > { %v1433_v28 = vrot.slane %v1393_v23, 5 }
 0x29b   : > { %v1398_v24 = vpop.permute.xlu1 %1397  ;;  %v1395_v25 = vpop.permute.xlu0 %1394  ;;  %v1451_v37 = vsel %vm1450_vm10, %v1449_v35, %v1433_v28  ;;  %v5252_v35 = vld [vmem:[#allocation5] sm:$0xff]  ;;  %vm2380_vm10 = vcmask 121856  }
 0x29c   : > { %v1401_v31 = vsel %vm1400_vm7, %v1395_v25, %v1398_v24  ;;  %v1453_v44 = vsel %vm1452_vm12, %v1451_v37, %v1435_v41 }
 0x29d   : > { %v1438_v36 = vrot.slane %v1401_v31, 3 }
 0x29f   : > { %v1406_v32 = vpop.permute.xlu1 %1405  ;;  %v1403_v33 = vpop.permute.xlu0 %1402  ;;  %v1455_v46 = vsel %vm1454_vm13, %v1453_v44, %v1438_v36 }
 0x2a0   : > { %v1409_v34 = vsel %vm1408_vm8, %v1403_v33, %v1406_v32 }
 0x2a1   : > { %v1441_v38 = vrot.slane %v1409_v34, 2 }
 0x2a3   : > { %v1414_v39 = vpop.permute.xlu1 %1413  ;;  %v1411_v40 = vpop.permute.xlu0 %1410  ;;  %v1457_v49 = vsel %vm1456_vm14, %v1455_v46, %v1441_v38 }
 0x2a4   : > { %v1417_v42 = vsel %vm1416_vm11, %v1411_v40, %v1414_v39  ;;  %v1630_v40 = vld [vmem:[#allocation14] sm:$0xf] }
 0x2a5   : > { %v1444_v43 = vrot.slane %v1417_v42, 1 }
 0x2a7   : > { %v1422_v47 = vpop.permute.xlu1 %1421  ;;  %v1419_v48 = vpop.permute.xlu0 %1418  ;;  %v1459_v51 = vsel %vm1458_vm1, %v1457_v49, %v1444_v43 }
 0x2a8   : > { %v1425_v50 = vsel %vm1424_vm15, %v1419_v48, %v1422_v47  ;;  %v1462_v54 = vmul.f32 %v1460_v52, %v1459_v51 }
 0x2a9   : > { %v1463_v53 = vmul.f32 %v1461_v45, %v1425_v50  ;;  %v1793_v45 = vld [vmem:[#allocation19] sm:$0xf] }
 0x2ab   : > { %3832 = vmatpush3.msk.msra.mxu1 %vm1446_vm6, %v1463_v53  ;;  %vm1637_vm6 = vcmask 293888  }
 0x2ac   : > { %3833 = vmatprep.subr.mxu1 %v4696_v1 }
 0x2ad   : > { %3834 = vmatpush3.msra.mxu1 %v1462_v54 }
 0x2ae   : > { %3836 = vmatmul.mubr.msk.f32.vlgmr.msra.gmra.mxu1 %vm1368_vm3, %v1464_v55  ;;  %3838 = vmatprep.subr.mxu1 %v4696_v1 }
 0x2af   : > { %3848 = vmatprep.mubr.msk.f32.mxu1 %vm4697_vm0, %v4696_v1 }
 0x2b4   : > { %v1469_v56 = vpop.permute.xlu0 %1468 }
 0x36e   : > { %v1543_v57 = vpop.f32.mrf.mxu1 }
 0x36f   : > { %v5191_v58 = vadd.f32 %v1543_v57, %v1469_v56 }
 0x370   : > { %v3837_v59 = vpop.f32.mrf.mxu1 }
 0x371   : > { %1597 = vrot.lane.b32.xlu0 %v5191_v58, %s5799_s8  ;;  %1590 = vrot.lane.b32.xlu1 %v5191_v58, %s5800_s15 }
 0x375   : > { %1576 = vrot.lane.b32.xlu0 %v5191_v58, %s5780_s28  ;;  %1593 = vrot.lane.b32.xlu1 %v5191_v58, %s5791_s0  ;;  %s5865_s28 = smov 8  }
 0x379   : > { %1583 = vrot.lane.b32.xlu0 %v5191_v58, %s5778_s10  ;;  %1600 = vrot.lane.b32.xlu1 %v5191_v58, %s5793_s2  ;;  %s5864_s10 = smov 73  }
 0x37d   : > { %1569 = vrot.lane.b32.xlu0 %v5191_v58, %s5782_s7  ;;  %1579 = vrot.lane.b32.xlu1 %v5191_v58, %s5797_s16  ;;  %s5866_s7 = smov 7  }
 0x381   : > { %1555 = vrot.lane.b32.xlu0 %v5191_v58, %s5784_s4  ;;  %1586 = vrot.lane.b32.xlu1 %v5191_v58, %s5795_s12  ;;  %s5867_s4 = smov 9  }
 0x385   : > { %1562 = vrot.lane.b32.xlu0 %v5191_v58, %s5786_s3  ;;  %1572 = vrot.lane.b32.xlu1 %v5191_v58, %s5788_s22  ;;  %s5868_s3 = smov 127   ;;  %s5869_s22 = smov 121  }
 0x389   : > { %1548 = vrot.lane.b32.xlu0 %v5191_v58, %s5864_s10  ;;  %1558 = vrot.lane.b32.xlu1 %v5191_v58, %s5865_s28 }
 0x38d   : > { %1634 = vperm.xlu0 %4145, %v1631_v60   ;;  %1565 = vrot.lane.b32.xlu1 %v5191_v58, %s5866_s7 }
 0x391   : > { %1551 = vrot.lane.b32.xlu1 %v5191_v58, %s5867_s4 }
 0x3e3   : > { %v1598_v61 = vpop.permute.xlu0 %1597  ;;  %v1591_v62 = vpop.permute.xlu1 %1590 }
 0x3e7   : > { %v1577_v63 = vpop.permute.xlu0 %1576  ;;  %v1594_v0 = vpop.permute.xlu1 %1593 }
 0x3e8   : > { %v1596_v8 = vsel %vm1416_vm11, %v1591_v62, %v1594_v0 }
 0x3e9   : > { %v1614_v12 = vrot.slane %v1596_v8, 4 }
 0x3eb   : > { %v1584_v3 = vpop.permute.xlu0 %1583  ;;  %v1601_v4 = vpop.permute.xlu1 %1600 }
 0x3ec   : > { %v1603_v5 = vsel %vm1424_vm15, %v1598_v61, %v1601_v4 }
 0x3ed   : > { %v1629_v6 = vmul.f32 %v5225_v2, %v1603_v5 }
 0x3ef   : > { %3839 = vmatpush3.msk.msra.mxu1 %vm1452_vm12, %v1629_v6  ;;  %v1580_v7 = vpop.permute.xlu1 %1579  ;;  %v1570_v10 = vpop.permute.xlu0 %1569 }
 0x3f0   : > { %v1582_v9 = vsel %vm1400_vm7, %v1577_v63, %v1580_v7  ;;  %3840 = vmatprep.subr.mxu1 %v4696_v1 }
 0x3f1   : > { %v1611_v11 = vrot.slane %v1582_v9, 4 }
 0x3f3   : > { %v1587_v14 = vpop.permute.xlu1 %1586  ;;  %v1618_v16 = vsel %vm1452_vm12, %v5191_v58, %v1611_v11  ;;  %v1556_v20 = vpop.permute.xlu0 %1555 }
 0x3f4   : > { %v1589_v15 = vsel %vm1408_vm8, %v1584_v3, %v1587_v14  ;;  %v1627_v22 = vmul.f32 %v5239_v18, %v1618_v16 }
 0x3f5   : > { %v1619_v17 = vsel %vm1452_vm12, %v1589_v15, %v1614_v12 }
 0x3f6   : > { %v1628_v19 = vmul.f32 %v5233_v13, %v1619_v17 }
 0x3f7   : > { %v1573_v21 = vpop.permute.xlu1 %1572  ;;  %v1563_v25 = vpop.permute.xlu0 %1562 }
 0x3f8   : > { %3841 = vmatpush3.msra.mxu1 %v1628_v19  ;;  %v1575_v24 = vsel %vm1392_vm4, %v1570_v10, %v1573_v21 }
 0x3f9   : > { %3842 = vmatprep.subr.mxu1 %v4696_v1  ;;  %v1608_v26 = vrot.slane %v1575_v24, 4  ;;  %v1792_v24 = vld [vmem:[#allocation17] sm:$0xf] }
 0x3fa   : > { %3843 = vmatpush3.msra.mxu1 %v1627_v22 }
 0x3fb   : > { %v1559_v23 = vpop.permute.xlu1 %1558  ;;  %3844 = vmatprep.subr.mxu1 %v4696_v1  ;;  %v1549_v33 = vpop.permute.xlu0 %1548 }
 0x3fc   : > { %v1561_v29 = vsel %vm1376_vm2, %v1556_v20, %v1559_v23 }
 0x3fd   : > { %v1605_v34 = vrot.slane %v1561_v29, 4 }
 0x3ff   : > { %v1566_v28 = vpop.permute.xlu1 %1565 }
 0x400   : > { %v1568_v30 = vsel %vm1384_vm5, %v1563_v25, %v1566_v28 }
 0x401   : > { %v1617_v31 = vsel %vm1452_vm12, %v1568_v30, %v1608_v26  ;;  %v1954_v30 = vld [vmem:[#allocation22] sm:$0xf] }
 0x402   : > { %v1626_v32 = vmul.f32 %v5246_v27, %v1617_v31 }
 0x403   : > { %v1552_v36 = vpop.permute.xlu1 %1551 }
 0x404   : > { %v1554_v37 = vsel %vm1368_vm3, %v1549_v33, %v1552_v36  ;;  %3845 = vmatpush3.msra.mxu1 %v1626_v32 }
 0x405   : > { %v1616_v38 = vsel %vm1452_vm12, %v1554_v37, %v1605_v34  ;;  %3846 = vmatprep.subr.mxu1 %v4696_v1 }
 0x406   : > { %v1625_v39 = vmul.f32 %v5252_v35, %v1616_v38 }
 0x408   : > { %3847 = vmatpush3.msra.mxu1 %v1625_v39  ;;  %v1635_v41 = vpop.permute.xlu0 %1634 }
 0x409   : > { %3849 = vmatmul.mubr.msk.f32.vlgmr.msra.gmra.mxu1 %vm1637_vm6, %v1630_v40  ;;  %3864 = vmatprep.subr.mxu1 %v4696_v1 }
 0x40a   : > { %3874 = vmatprep.mubr.msk.f32.mxu1 %vm4697_vm0, %v4696_v1 }
 0x4c9   : > { %v1710_v42 = vpop.f32.mrf.mxu1 }
 0x4ca   : > { %v1711_v43 = vadd.f32 %v1710_v42, %v1635_v41 }
 0x4cb   : > { %v3850_v44 = vpop.f32.mrf.mxu1 }
 0x4cc   : > { %1760 = vrot.lane.b32.xlu0 %v1711_v43, %s5791_s0  ;;  %1757 = vrot.lane.b32.xlu1 %v1711_v43, %s5800_s15  ;;  %s5872_s0 = smov 72  }
 0x4d0   : > { %1767 = vrot.lane.b32.xlu0 %v1711_v43, %s5793_s2  ;;  %1764 = vrot.lane.b32.xlu1 %v1711_v43, %s5799_s8  ;;  %s5873_s2 = smov 71  }
 0x4d4   : > { %1746 = vrot.lane.b32.xlu0 %v1711_v43, %s5797_s16  ;;  %1743 = vrot.lane.b32.xlu1 %v1711_v43, %s5868_s3  ;;  %s5875_s16 = smov 55  }
 0x4d8   : > { %1753 = vrot.lane.b32.xlu0 %v1711_v43, %s5795_s12  ;;  %1750 = vrot.lane.b32.xlu1 %v1711_v43, %s5869_s22  ;;  %s5874_s12 = smov 56  }
 0x4dc   : > { %1739 = vrot.lane.b32.xlu0 %v1711_v43, %s5870_s6  ;;  %1736 = vrot.lane.b32.xlu1 %v1711_v43, %s5871_s13 }
 0x4e0   : > { %1725 = vrot.lane.b32.xlu0 %v1711_v43, %s5865_s28  ;;  %1722 = vrot.lane.b32.xlu1 %v1711_v43, %s5872_s0 }
 0x4e4   : > { %1732 = vrot.lane.b32.xlu0 %v1711_v43, %s5866_s7  ;;  %1729 = vrot.lane.b32.xlu1 %v1711_v43, %s5873_s2 }
 0x4e8   : > { %1718 = vrot.lane.b32.xlu0 %v1711_v43, %s5867_s4  ;;  %1715 = vrot.lane.b32.xlu1 %v1711_v43, %s5864_s10 }
 0x4ec   : > { %1796 = vperm.xlu1 %4146, %v1793_v45  }
 0x53e   : > { %v1761_v46 = vpop.permute.xlu0 %1760  ;;  %v1758_v47 = vpop.permute.xlu1 %1757 }
 0x53f   : > { %v1763_v54 = vsel %vm1416_vm11, %v1758_v47, %v1761_v46 }
 0x540   : > { %v1781_v57 = vrot.slane %v1763_v54, 4 }
 0x542   : > { %v1768_v48 = vpop.permute.xlu0 %1767  ;;  %v1765_v49 = vpop.permute.xlu1 %1764 }
 0x543   : > { %v1770_v50 = vsel %vm1424_vm15, %v1765_v49, %v1768_v48 }
 0x544   : > { %v1791_v51 = vmul.f32 %v1770_v50, %v5225_v2 }
 0x546   : > { %v1747_v52 = vpop.permute.xlu0 %1746  ;;  %3852 = vmatpush3.msk.msra.mxu0 %vm1452_vm12, %v1791_v51  ;;  %v1744_v53 = vpop.permute.xlu1 %1743 }
 0x547   : > { %v1749_v55 = vsel %vm1400_vm7, %v1744_v53, %v1747_v52  ;;  %3853 = vmatprep.subr.mxu0 %v4696_v1 }
 0x548   : > { %v1778_v56 = vrot.slane %v1749_v55, 4 }
 0x54a   : > { %v1754_v59 = vpop.permute.xlu0 %1753  ;;  %v1751_v60 = vpop.permute.xlu1 %1750  ;;  %v1785_v62 = vsel %vm1452_vm12, %v1711_v43, %v1778_v56 }
 0x54b   : > { %v1756_v61 = vsel %vm1408_vm8, %v1751_v60, %v1754_v59  ;;  %v1789_v5 = vmul.f32 %v1785_v62, %v5239_v18 }
 0x54c   : > { %v1786_v63 = vsel %vm1452_vm12, %v1756_v61, %v1781_v57 }
 0x54d   : > { %v1790_v0 = vmul.f32 %v1786_v63, %v5233_v13 }
 0x54e   : > { %v1740_v3 = vpop.permute.xlu0 %1739  ;;  %v1737_v4 = vpop.permute.xlu1 %1736 }
 0x54f   : > { %3854 = vmatpush3.msra.mxu0 %v1790_v0  ;;  %v1742_v8 = vsel %vm1392_vm4, %v1737_v4, %v1740_v3 }
 0x550   : > { %3855 = vmatprep.subr.mxu0 %v4696_v1  ;;  %v1775_v9 = vrot.slane %v1742_v8, 4  ;;  %v1953_v8 = vld [vmem:[#allocation20] sm:$0xf] }
 0x551   : > { %3856 = vmatpush3.msra.mxu0 %v1789_v5 }
 0x552   : > { %v1726_v6 = vpop.permute.xlu0 %1725  ;;  %v1723_v7 = vpop.permute.xlu1 %1722  ;;  %3857 = vmatprep.subr.mxu0 %v4696_v1 }
 0x553   : > { %v1728_v12 = vsel %vm1376_vm2, %v1723_v7, %v1726_v6 }
 0x554   : > { %v1772_v17 = vrot.slane %v1728_v12, 4 }
 0x556   : > { %v1733_v10 = vpop.permute.xlu0 %1732  ;;  %v1730_v11 = vpop.permute.xlu1 %1729 }
 0x557   : > { %v1735_v14 = vsel %vm1384_vm5, %v1730_v11, %v1733_v10 }
 0x558   : > { %v1784_v15 = vsel %vm1452_vm12, %v1735_v14, %v1775_v9 }
 0x559   : > { %v1788_v16 = vmul.f32 %v1784_v15, %v5246_v27 }
 0x55a   : > { %v1719_v19 = vpop.permute.xlu0 %1718  ;;  %v1716_v20 = vpop.permute.xlu1 %1715 }
 0x55b   : > { %v1721_v21 = vsel %vm1368_vm3, %v1716_v20, %v1719_v19  ;;  %3858 = vmatpush3.msra.mxu0 %v1788_v16 }
 0x55c   : > { %v1783_v22 = vsel %vm1452_vm12, %v1721_v21, %v1772_v17  ;;  %3859 = vmatprep.subr.mxu0 %v4696_v1 }
 0x55d   : > { %v1787_v23 = vmul.f32 %v1783_v22, %v5252_v35 }
 0x55f   : > { %3860 = vmatpush3.msra.mxu0 %v1787_v23 }
 0x560   : > { %3862 = vmatmul.mubr.msk.f32.vlgmr.msra.gmra.mxu0 %vm1637_vm6, %v1792_v24  ;;  %3877 = vmatprep.subr.mxu0 %v4696_v1 }
 0x561   : > { %3887 = vmatprep.mubr.msk.f32.mxu0 %vm4697_vm0, %v4696_v1  ;;  %vm2036_vm0 = vcmask 519168  }
 0x567   : > { %v1797_v25 = vpop.permute.xlu1 %1796 }
 0x620   : > { %v1871_v26 = vpop.f32.mrf.mxu0 }
 0x621   : > { %v1872_v28 = vadd.f32 %v1871_v26, %v1797_v25 }
 0x622   : > { %v3863_v29 = vpop.f32.mrf.mxu0 }
 0x623   : > { %1921 = vrot.lane.b32.xlu1 %v1872_v28, %s5874_s12  ;;  %1918 = vrot.lane.b32.xlu0 %v1872_v28, %s5800_s15  ;;  %s5879_s15 = sld [smem:[#allocation47_spill]] }
 0x627   : > { %1928 = vrot.lane.b32.xlu1 %v1872_v28, %s5875_s16  ;;  %1925 = vrot.lane.b32.xlu0 %v1872_v28, %s5799_s8  ;;  %s5878_s8 = sld [smem:[#allocation46_spill]] }
 0x62b   : > { %1907 = vrot.lane.b32.xlu1 %v1872_v28, %s5876_s14  ;;  %1904 = vrot.lane.b32.xlu0 %v1872_v28, %s5868_s3 }
 0x62f   : > { %1914 = vrot.lane.b32.xlu1 %v1872_v28, %s5877_s17  ;;  %1911 = vrot.lane.b32.xlu0 %v1872_v28, %s5869_s22 }
 0x633   : > { %1900 = vrot.lane.b32.xlu1 %v1872_v28, %s5870_s6  ;;  %1897 = vrot.lane.b32.xlu0 %v1872_v28, %s5871_s13 }
 0x637   : > { %1886 = vrot.lane.b32.xlu1 %v1872_v28, %s5865_s28  ;;  %1883 = vrot.lane.b32.xlu0 %v1872_v28, %s5872_s0 }
 0x63b   : > { %1893 = vrot.lane.b32.xlu1 %v1872_v28, %s5866_s7  ;;  %1890 = vrot.lane.b32.xlu0 %v1872_v28, %s5873_s2 }
 0x63f   : > { %1879 = vrot.lane.b32.xlu1 %v1872_v28, %s5867_s4  ;;  %1876 = vrot.lane.b32.xlu0 %v1872_v28, %s5864_s10 }
 0x643   : > { %1957 = vperm.xlu0 %4145, %v1954_v30   ;;  %v3765_v30 = vld [vmem:[%s5879_s15] ss:$0 sm:$0xff]  ;;  %s4719_s15 = smov 15  }
 0x695   : > { %v1922_v31 = vpop.permute.xlu1 %1921  ;;  %v1919_v32 = vpop.permute.xlu0 %1918 }
 0x696   : > { %v1924_v40 = vsel %vm1416_vm11, %v1919_v32, %v1922_v31 }
 0x697   : > { %v1942_v43 = vrot.slane %v1924_v40, 4 }
 0x699   : > { %v1929_v33 = vpop.permute.xlu1 %1928  ;;  %v1926_v34 = vpop.permute.xlu0 %1925 }
 0x69a   : > { %v1931_v36 = vsel %vm1424_vm15, %v1926_v34, %v1929_v33 }
 0x69b   : > { %v1952_v37 = vmul.f32 %v1931_v36, %v5225_v2 }
 0x69d   : > { %v1908_v38 = vpop.permute.xlu1 %1907  ;;  %3865 = vmatpush3.msk.msra.mxu1 %vm1452_vm12, %v1952_v37  ;;  %v1905_v39 = vpop.permute.xlu0 %1904 }
 0x69e   : > { %v1910_v41 = vsel %vm1400_vm7, %v1905_v39, %v1908_v38  ;;  %3866 = vmatprep.subr.mxu1 %v4696_v1 }
 0x69f   : > { %v1939_v42 = vrot.slane %v1910_v41, 4 }
 0x6a1   : > { %v1915_v44 = vpop.permute.xlu1 %1914  ;;  %v1912_v45 = vpop.permute.xlu0 %1911  ;;  %v1946_v47 = vsel %vm1452_vm12, %v1872_v28, %v1939_v42  ;;  %v3764_v28 = vld [vmem:[%s5878_s8] ss:$0 sm:$0xff]  ;;  %s4718_s8 = smov 113  }
 0x6a2   : > { %v1917_v46 = vsel %vm1408_vm8, %v1912_v45, %v1915_v44  ;;  %v1950_v52 = vmul.f32 %v1946_v47, %v5239_v18 }
 0x6a3   : > { %v1947_v48 = vsel %vm1452_vm12, %v1917_v46, %v1942_v43 }
 0x6a4   : > { %v1951_v49 = vmul.f32 %v1947_v48, %v5233_v13 }
 0x6a5   : > { %v1901_v50 = vpop.permute.xlu1 %1900  ;;  %v1898_v51 = vpop.permute.xlu0 %1897 }
 0x6a6   : > { %3867 = vmatpush3.msra.mxu1 %v1951_v49  ;;  %v1903_v55 = vsel %vm1392_vm4, %v1898_v51, %v1901_v50 }
 0x6a7   : > { %3868 = vmatprep.subr.mxu1 %v4696_v1  ;;  %v1936_v56 = vrot.slane %v1903_v55, 4 }
 0x6a8   : > { %3869 = vmatpush3.msra.mxu1 %v1950_v52 }
 0x6a9   : > { %v1887_v53 = vpop.permute.xlu1 %1886  ;;  %v1884_v54 = vpop.permute.xlu0 %1883  ;;  %3870 = vmatprep.subr.mxu1 %v4696_v1 }
 0x6aa   : > { %v1889_v60 = vsel %vm1376_vm2, %v1884_v54, %v1887_v53 }
 0x6ab   : > { %v1933_v0 = vrot.slane %v1889_v60, 4 }
 0x6ad   : > { %v1894_v57 = vpop.permute.xlu1 %1893  ;;  %v1891_v59 = vpop.permute.xlu0 %1890 }
 0x6ae   : > { %v1896_v61 = vsel %vm1384_vm5, %v1891_v59, %v1894_v57 }
 0x6af   : > { %v1945_v62 = vsel %vm1452_vm12, %v1896_v61, %v1936_v56 }
 0x6b0   : > { %v1949_v63 = vmul.f32 %v1945_v62, %v5246_v27 }
 0x6b1   : > { %v1880_v3 = vpop.permute.xlu1 %1879  ;;  %v1877_v4 = vpop.permute.xlu0 %1876 }
 0x6b2   : > { %v1882_v5 = vsel %vm1368_vm3, %v1877_v4, %v1880_v3  ;;  %3871 = vmatpush3.msra.mxu1 %v1949_v63 }
 0x6b3   : > { %v1944_v6 = vsel %vm1452_vm12, %v1882_v5, %v1933_v0  ;;  %3872 = vmatprep.subr.mxu1 %v4696_v1 }
 0x6b4   : > { %v1948_v7 = vmul.f32 %v1944_v6, %v5252_v35 }
 0x6b6   : > { %3873 = vmatpush3.msra.mxu1 %v1948_v7 }
 0x6b7   : > { %3875 = vmatmul.mubr.msk.f32.vlgmr.msra.gmra.mxu1 %vm1637_vm6, %v1953_v8 }
 0x6b8   : > { %2347 = vmatprep.mubr.f32.mxu1 %v4696_v1 }
 0x6be   : > { %v1958_v9 = vpop.permute.xlu0 %1957 }
 0x777   : > { %v2032_v10 = vpop.f32.mrf.mxu1 }
 0x778   : > { %v2033_v11 = vadd.f32 %v2032_v10, %v1958_v9  ;;  %v2148_v9 = vld [vmem:[#allocation23] sm:$0xf] }
 0x779   : > { %v3876_v12 = vpop.f32.mrf.mxu1 }
 0x77a   : > { %v2037_v14 = vsel %vm2036_vm0, %v2033_v11, 0.0  ;;  %v2041_v15 = vmul.f32 %v2033_v11, %v2033_v11 }
 0x77b   : > { %2038 = vadd.xlane.f32.xlu1 %v2037_v14 }
 0x77c   : > { %v2042_v16 = vsel %vm2036_vm0, %v2041_v15, 0.0 }
 0x77d   : > { %2043 = vadd.xlane.f32.xlu0 %v2042_v16 }
 0x804   : > { %v2039_v17 = vpop.xlane.xlu1 %2038 }
 0x805   : > { %v2040_v19 = vmul.f32 0.015625, %v2039_v17  ;;  %v2278_v17 = vld [vmem:[#allocation26 + $0x78] sm:$0xff] }
 0x806   : > { %v2044_v20 = vpop.xlane.xlu0 %2043  ;;  %2299 = vmatprep.subr.mxu1 %v2278_v17 }
 0x807   : > { %v2046_v21 = vmul.f32 %v2040_v19, %v2040_v19  ;;  %v2045_v22 = vmul.f32 0.015625, %v2044_v20  ;;  %v2048_v25 = vsub.f32 %v2033_v11, %v2040_v19  ;;  %v2277_v19 = vld [vmem:[#allocation26 + $0x70] sm:$0xff]  ;;  %v2275_v20 = vld [vmem:[#allocation26 + $0x60] sm:$0xff] }
 0x808   : > { %2300 = vmatpush1.msra.mxu1 %v2277_v19 }
 0x809   : > { %v2047_v23 = vsub.f32 %v2045_v22, %v2046_v21  ;;  %v2274_v21 = vld [vmem:[#allocation26 + $0x58] sm:$0xff]  ;;  %v2273_v22 = vld [vmem:[#allocation26 + $0x50] sm:$0xff] }
 0x80b   : > { %v2049_v24 = vadd.f32 1e-05, %v2047_v23  ;;  %v2272_v23 = vld [vmem:[#allocation26 + $0x48] sm:$0xff] }
 0x80d   : > { %4147 = vrsqrt.f32 %v2049_v24  ;;  %v2271_v24 = vld [vmem:[#allocation26 + $0x40] sm:$0xff] }
 0x81a   : > { %v4148_v26 = vpop.eup %4147 }
 0x81b   : > { %v2051_v29 = vmul.f32 %v4148_v26, %v2048_v25  ;;  %v2270_v25 = vld [vmem:[#allocation26 + $0x38] sm:$0xff]  ;;  %v2269_v26 = vld [vmem:[#allocation26 + $0x30] sm:$0xff] }
 0x81d   : > { %v2059_v31 = vmul.f32 %v3764_v28, %v2051_v29  ;;  %v2268_v28 = vld [vmem:[#allocation26 + $0x28] sm:$0xff]  ;;  %v2267_v29 = vld [vmem:[#allocation26 + $0x20] sm:$0xff] }
 0x81f   : > { %v2067_v32 = vadd.f32 %v3765_v30, %v2059_v31  ;;  %v2266_v30 = vld [vmem:[#allocation26 + $0x18] sm:$0xff]  ;;  %v2265_v31 = vld [vmem:[#allocation26 + $0x10] sm:$0xff] }
 0x821   : > { %v2068_v33 = vmax.f32 %v2067_v32, 0.0  ;;  %v2264_v32 = vld [vmem:[#allocation26 + $0x8] sm:$0xff] }
 0x823   : > { %v2069_v34 = vadd.f32 %v2068_v33, %v5191_v58  ;;  %v2149_v58 = vld [vmem:[#allocation25] sm:$0xf]  ;;  %v2263_v33 = vld [vmem:[#allocation26] sm:$0xff] }
 0x825   : > { %2116 = vrot.lane.b32.xlu1 %v2069_v34, %s5874_s12  ;;  %2113 = vrot.lane.b32.xlu0 %v2069_v34, %s5880_s18  ;;  %s4716_s18 = smov 16   ;;  %s5889_s12 = sld [smem:[#allocation56_spill]] }
 0x829   : > { %2120 = vrot.lane.b32.xlu1 %v2069_v34, %s5881_s19  ;;  %2123 = vrot.lane.b32.xlu0 %v2069_v34, %s5875_s16  ;;  %s4715_s19 = smov 112   ;;  %s5887_s16 = sld [smem:[#allocation54_spill]] }
 0x82d   : > { %2099 = vrot.lane.b32.xlu1 %v2069_v34, %s5868_s3  ;;  %2102 = vrot.lane.b32.xlu0 %v2069_v34, %s5876_s14  ;;  %s5883_s14 = sld [smem:[#allocation50_spill]] }
 0x831   : > { %2106 = vrot.lane.b32.xlu1 %v2069_v34, %s5869_s22  ;;  %2109 = vrot.lane.b32.xlu0 %v2069_v34, %s5877_s17  ;;  %s5882_s17 = sld [smem:[#allocation49_spill]] }
 0x832   : > { %s5885_s22 = sld [smem:[#allocation52_spill]] }
 0x835   : > { %2092 = vrot.lane.b32.xlu1 %v2069_v34, %s5871_s13  ;;  %2095 = vrot.lane.b32.xlu0 %v2069_v34, %s5870_s6  ;;  %s4720_s13 = smov 17  }
 0x839   : > { %2078 = vrot.lane.b32.xlu1 %v2069_v34, %s5872_s0  ;;  %2081 = vrot.lane.b32.xlu0 %v2069_v34, %s5865_s28  ;;  %s5888_s28 = sld [smem:[#allocation57_spill]] }
 0x83a   : > { %s5891_s0 = sld [smem:[#allocation59_spill]] }
 0x83d   : > { %2085 = vrot.lane.b32.xlu1 %v2069_v34, %s5873_s2  ;;  %2088 = vrot.lane.b32.xlu0 %v2069_v34, %s5866_s7  ;;  %s5884_s2 = sld [smem:[#allocation53_spill]] }
 0x83e   : > { %s5886_s7 = sld [smem:[#allocation55_spill]] }
 0x841   : > { %2071 = vrot.lane.b32.xlu1 %v2069_v34, %s5864_s10  ;;  %2074 = vrot.lane.b32.xlu0 %v2069_v34, %s5867_s4  ;;  %s4717_s4 = smov 111   ;;  %s5890_s10 = sld [smem:[#allocation58_spill]] }
 0x845   : > { %2152 = vperm.xlu1 %4146, %v2149_v58  }
 0x897   : > { %v2117_v36 = vpop.permute.xlu1 %2116  ;;  %v2114_v37 = vpop.permute.xlu0 %2113 }
 0x898   : > { %v2119_v44 = vsel %vm1416_vm11, %v2114_v37, %v2117_v36  ;;  %vm2361_vm11 = vcmask 138240  }
 0x899   : > { %v2137_v47 = vrot.slane %v2119_v44, 4 }
 0x89b   : > { %v2121_v38 = vpop.permute.xlu1 %2120  ;;  %v2124_v39 = vpop.permute.xlu0 %2123 }
 0x89c   : > { %v2126_v40 = vsel %vm1424_vm15, %v2121_v38, %v2124_v39 }
 0x89d   : > { %v2147_v41 = vmul.f32 %v2126_v40, %v5225_v2 }
 0x89f   : > { %v2100_v42 = vpop.permute.xlu1 %2099  ;;  %3878 = vmatpush3.msk.msra.mxu0 %vm1452_vm12, %v2147_v41  ;;  %v2103_v43 = vpop.permute.xlu0 %2102 }
 0x8a0   : > { %v2105_v45 = vsel %vm1400_vm7, %v2100_v42, %v2103_v43  ;;  %3879 = vmatprep.subr.mxu0 %v4696_v1  ;;  %v3768_v43 = vld [vmem:[%s5882_s17] ss:$0 sm:$0xff]  ;;  %vm2397_vm7 = vcmask 1039360   ;;  %s5892_s17 = sld [smem:[#allocation61_spill]] }
 0x8a1   : > { %v2134_v46 = vrot.slane %v2105_v45, 4  ;;  %v3769_v45 = vld [vmem:[%s5883_s14] ss:$0 sm:$0xff]  ;;  %s5893_s14 = sld [smem:[#allocation60_spill]] }
 0x8a3   : > { %v2107_v48 = vpop.permute.xlu1 %2106  ;;  %v2110_v49 = vpop.permute.xlu0 %2109  ;;  %v2141_v51 = vsel %vm1452_vm12, %v2069_v34, %v2134_v46 }
 0x8a4   : > { %v2112_v50 = vsel %vm1408_vm8, %v2107_v48, %v2110_v49  ;;  %v2145_v55 = vmul.f32 %v2141_v51, %v5239_v18  ;;  %v2480_v51 = vld [vmem:[%s5884_s2] sm:$0xf]  ;;  %vm2406_vm8 = vcmask 924672   ;;  %s5894_s2 = sld [smem:[#allocation62_spill]] }
 0x8a5   : > { %v2142_v2 = vsel %vm1452_vm12, %v2112_v50, %v2137_v47 }
 0x8a6   : > { %v2146_v52 = vmul.f32 %v2142_v2, %v5233_v13 }
 0x8a7   : > { %v2093_v53 = vpop.permute.xlu1 %2092  ;;  %v2096_v54 = vpop.permute.xlu0 %2095 }
 0x8a8   : > { %3880 = vmatpush3.msra.mxu0 %v2146_v52  ;;  %v2098_v59 = vsel %vm1392_vm4, %v2093_v53, %v2096_v54 }
 0x8a9   : > { %3881 = vmatprep.subr.mxu0 %v4696_v1  ;;  %v2131_v60 = vrot.slane %v2098_v59, 4  ;;  %v5433_v59 = vld [vmem:[#allocation7 + $0x48] sm:$0xf] }
 0x8aa   : > { %3882 = vmatpush3.msra.mxu0 %v2145_v55 }
 0x8ab   : > { %v2079_v56 = vpop.permute.xlu1 %2078  ;;  %v2082_v57 = vpop.permute.xlu0 %2081  ;;  %3883 = vmatprep.subr.mxu0 %v4696_v1 }
 0x8ac   : > { %v2084_v63 = vsel %vm1376_vm2, %v2079_v56, %v2082_v57  ;;  %vm2279_vm2 = vcmask 523264   ;;  %v5431_v57 = vld [vmem:[#allocation7 + $0x40] sm:$0xf] }
 0x8ad   : > { %v2128_v3 = vrot.slane %v2084_v63, 4 }
 0x8af   : > { %v2086_v61 = vpop.permute.xlu1 %2085  ;;  %v2089_v62 = vpop.permute.xlu0 %2088 }
 0x8b0   : > { %v2091_v13 = vsel %vm1384_vm5, %v2086_v61, %v2089_v62  ;;  %vm2416_vm5 = vcmask 916480  }
 0x8b1   : > { %v2140_v0 = vsel %vm1452_vm12, %v2091_v13, %v2131_v60 }
 0x8b2   : > { %v2144_v18 = vmul.f32 %v2140_v0, %v5246_v27 }
 0x8b3   : > { %v2072_v4 = vpop.permute.xlu1 %2071  ;;  %v2075_v5 = vpop.permute.xlu0 %2074 }
 0x8b4   : > { %v2077_v6 = vsel %vm1368_vm3, %v2072_v4, %v2075_v5  ;;  %3884 = vmatpush3.msra.mxu0 %v2144_v18  ;;  %vm2425_vm3 = vcmask 908288  }
 0x8b5   : > { %v2139_v7 = vsel %vm1452_vm12, %v2077_v6, %v2128_v3  ;;  %3885 = vmatprep.subr.mxu0 %v4696_v1 }
 0x8b6   : > { %v2143_v8 = vmul.f32 %v2139_v7, %v5252_v35  ;;  %v2276_v35 = vld [vmem:[#allocation26 + $0x68] sm:$0xff] }
 0x8b7   : > { %2301 = vmatprep.subr.mxu1 %v2276_v35 }
 0x8b8   : > { %3886 = vmatpush3.msra.mxu0 %v2143_v8  ;;  %2302 = vmatpush1.msra.mxu1 %v2275_v20 }
 0x8b9   : > { %3888 = vmatmul.mubr.msk.f32.vlgmr.msra.gmra.mxu0 %vm1637_vm6, %v2148_v9  ;;  %2303 = vmatprep.subr.mxu1 %v2274_v21 }
 0x8ba   : > { %2559 = vmatprep.mubr.f32.mxu0 %v4696_v1  ;;  %2304 = vmatpush1.msra.mxu1 %v2273_v22 }
 0x8bb   : > { %2305 = vmatprep.subr.mxu1 %v2272_v23  ;;  %v5457_v23 = vld [vmem:[#allocation7 + $0x28] sm:$0xff] }
 0x8bc   : > { %2306 = vmatpush1.msra.mxu1 %v2271_v24 }
 0x8bd   : > { %2307 = vmatprep.subr.mxu1 %v2270_v25 }
 0x8be   : > { %2308 = vmatpush1.msra.mxu1 %v2269_v26 }
 0x8bf   : > { %2309 = vmatprep.subr.mxu1 %v2268_v28  ;;  %v5463_v28 = vld [vmem:[#allocation7 + $0x20] sm:$0xff] }
 0x8c0   : > { %v2153_v10 = vpop.permute.xlu1 %2152  ;;  %2310 = vmatpush1.msra.mxu1 %v2267_v29 }
 0x8c1   : > { %2311 = vmatprep.subr.mxu1 %v2266_v30 }
 0x8c2   : > { %2312 = vmatpush1.msra.mxu1 %v2265_v31 }
 0x8c3   : > { %2313 = vmatprep.subr.mxu1 %v2264_v32 }
 0x8c4   : > { %2314 = vmatpush1.msra.mxu1 %v2263_v33  ;;  %v5466_v33 = vld [vmem:[#allocation7 + $0x10] sm:$0xff] }
 0x979   : > { %v2227_v27 = vpop.f32.mrf.mxu0 }
 0x97a   : > { %v2228_v11 = vadd.f32 %v2227_v27, %v2153_v10 }
 0x97b   : > { %v3889_v12 = vpop.f32.mrf.mxu0 }
 0x97c   : > { %v2231_v14 = vsel %vm2036_vm0, %v2228_v11, 0.0  ;;  %v2235_v15 = vmul.f32 %v2228_v11, %v2228_v11  ;;  %v5445_v12 = vld [vmem:[#allocation7 + $0x30] sm:$0xff] }
 0x97d   : > { %2232 = vadd.xlane.f32.xlu0 %v2231_v14 }
 0x97e   : > { %v2236_v16 = vsel %vm2036_vm0, %v2235_v15, 0.0  ;;  %v5447_v15 = vld [vmem:[#allocation7 + $0x38] sm:$0xff] }
 0x97f   : > { %2237 = vadd.xlane.f32.xlu1 %v2236_v16 }
 0xa06   : > { %v2233_v34 = vpop.xlane.xlu0 %2232 }
 0xa07   : > { %v2234_v58 = vmul.f32 0.015625, %v2233_v34 }
 0xa08   : > { %v2238_v36 = vpop.xlane.xlu1 %2237 }
 0xa09   : > { %v2240_v37 = vmul.f32 %v2234_v58, %v2234_v58  ;;  %v2239_v38 = vmul.f32 0.015625, %v2238_v36  ;;  %v2242_v41 = vsub.f32 %v2228_v11, %v2234_v58  ;;  %v5468_v58 = vld [vmem:[#allocation7 + $0x18] sm:$0xff] }
 0xa0b   : > { %v2241_v39 = vsub.f32 %v2239_v38, %v2240_v37 }
 0xa0d   : > { %v2243_v40 = vadd.f32 1e-05, %v2241_v39 }
 0xa0f   : > { %4149 = vrsqrt.f32 %v2243_v40 }
 0xa1c   : > { %v4150_v42 = vpop.eup %4149 }
 0xa1d   : > { %v2245_v44 = vmul.f32 %v4150_v42, %v2242_v41 }
 0xa1f   : > { %v2253_v46 = vmul.f32 %v3768_v43, %v2245_v44 }
 0xa21   : > { %v2261_v47 = vadd.f32 %v3769_v45, %v2253_v46 }
 0xa23   : > { %v2262_v48 = vmax.f32 %v2261_v47, 0.0 }
 0xa25   : > { %3770 = vmatmul.mubr.msk.f32.vlgmr.msra.gmra.mxu1 %vm2279_vm2, %v2262_v48  ;;  %v5479_v48 = vld [vmem:[#allocation7] sm:$0xff] }
 0xa26   : > { %2949 = vmatprep.mubr.f32.mxu1 %v4696_v1 }
 0xae5   : > { %v5394_v49 = vpop.f32.mrf.mxu1 }
 0xae6   : > { %2388 = vrot.lane.b32.xlu1 %v5394_v49, %s5870_s6  ;;  %2412 = vrot.lane.b32.xlu0 %v5394_v49, %s4715_s19 }
 0xae7   : > { %v5404_v50 = vpop.f32.mrf.mxu1 }
 0xaea   : > { %2369 = vrot.lane.b32.xlu1 %v5394_v49, %s4716_s18  ;;  %2421 = vrot.lane.b32.xlu0 %v5394_v49, %s4717_s4 }
 0xaee   : > { %2393 = vrot.lane.b32.xlu0 %v5394_v49, %s5868_s3  ;;  %2414 = vrot.lane.b32.xlu1 %v5404_v50, %s4715_s19 }
 0xaf2   : > { %2402 = vrot.lane.b32.xlu0 %v5394_v49, %s4718_s8  ;;  %2423 = vrot.lane.b32.xlu1 %v5404_v50, %s4717_s4 }
 0xaf6   : > { %2385 = vrot.lane.b32.xlu0 %v5404_v50, %s5870_s6  ;;  %2395 = vrot.lane.b32.xlu1 %v5404_v50, %s5868_s3 }
 0xafa   : > { %2366 = vrot.lane.b32.xlu0 %v5404_v50, %s4716_s18  ;;  %2404 = vrot.lane.b32.xlu1 %v5404_v50, %s4718_s8 }
 0xafe   : > { %2375 = vrot.lane.b32.xlu0 %v5404_v50, %s4719_s15  ;;  %2378 = vrot.lane.b32.xlu1 %v5394_v49, %s4719_s15 }
 0xb02   : > { %2355 = vrot.lane.b32.xlu0 %v5404_v50, %s4720_s13  ;;  %2359 = vrot.lane.b32.xlu1 %v5394_v49, %s4720_s13 }
 0xb06   : > { %2483 = vperm.xlu0 %4145, %v2480_v51  }
 0xb58   : > { %v2389_v2 = vpop.permute.xlu1 %2388  ;;  %v2413_v52 = vpop.permute.xlu0 %2412 }
 0xb5c   : > { %v2370_v53 = vpop.permute.xlu1 %2369  ;;  %v2422_v54 = vpop.permute.xlu0 %2421 }
 0xb60   : > { %v2394_v55 = vpop.permute.xlu0 %2393  ;;  %v2415_v56 = vpop.permute.xlu1 %2414 }
 0xb61   : > { %v2417_v4 = vsel %vm2416_vm5, %v2413_v52, %v2415_v56  ;;  %v2420_v5 = vsel %vm2416_vm5, %v2415_v56, %v2413_v52 }
 0xb62   : > { %v2447_v10 = vrot.slane %v2417_v4, 4  ;;  %v2448_v27 = vrot.slane %v2420_v5, 4 }
 0xb64   : > { %v2403_v60 = vpop.permute.xlu0 %2402  ;;  %v2424_v61 = vpop.permute.xlu1 %2423 }
 0xb65   : > { %v2426_v62 = vsel %vm2425_vm3, %v2422_v54, %v2424_v61  ;;  %v2430_v63 = vsel %vm2425_vm3, %v2424_v61, %v2422_v54  ;;  %v2479_v61 = vld [vmem:[%s5885_s22] sm:$0xf] }
 0xb66   : > { %v2477_v13 = vmul.f32 %v5431_v57, %v2426_v62  ;;  %v2478_v0 = vmul.f32 %v5433_v59, %v2430_v63 }
 0xb68   : > { %v2386_v18 = vpop.permute.xlu0 %2385  ;;  %3771 = vmatprep.subr.msk.mxu0 %vm1452_vm12, %v2478_v0  ;;  %v2396_v3 = vpop.permute.xlu1 %2395 }
 0xb69   : > { %v2398_v6 = vsel %vm2397_vm7, %v2394_v55, %v2396_v3  ;;  %v2401_v7 = vsel %vm2397_vm7, %v2396_v3, %v2394_v55  ;;  %3772 = vmatpush1.msk.msra.mxu0 %vm1452_vm12, %v2477_v13  ;;  %v2390_v16 = vsel %vm1392_vm4, %v2389_v2, %v2386_v18  ;;  %v2392_v17 = vsel %vm1392_vm4, %v2386_v18, %v2389_v2  ;;  %v5481_v2 = vld [vmem:[#allocation7 + $0x8] sm:$0xff]  ;;  %v2675_v3 = vld [vmem:[%s5886_s7] sm:$0xf] }
 0xb6a   : > { %v2443_v8 = vrot.slane %v2401_v7, 4  ;;  %v2442_v9 = vrot.slane %v2398_v6, 4  ;;  %v2437_v29 = vrot.slane %v2392_v17, 4  ;;  %v2438_v30 = vrot.slane %v2390_v16, 4 }
 0xb6c   : > { %v2367_v11 = vpop.permute.xlu0 %2366  ;;  %v2405_v14 = vpop.permute.xlu1 %2404  ;;  %v2456_v22 = vsel %vm1452_vm12, %v5404_v50, %v2443_v8  ;;  %v2455_v24 = vsel %vm1452_vm12, %v5394_v49, %v2442_v9 }
 0xb6d   : > { %v2407_v19 = vsel %vm2406_vm8, %v2403_v60, %v2405_v14  ;;  %v2411_v35 = vsel %vm2406_vm8, %v2405_v14, %v2403_v60  ;;  %v2372_v31 = vsel %vm2371_vm9, %v2370_v53, %v2367_v11  ;;  %v2374_v36 = vsel %vm2371_vm9, %v2367_v11, %v2370_v53 }
 0xb6e   : > { %v2457_v20 = vsel %vm1452_vm12, %v2407_v19, %v2447_v10  ;;  %v2458_v21 = vsel %vm1452_vm12, %v2411_v35, %v2448_v27  ;;  %v2474_v39 = vmul.f32 %v5457_v23, %v2456_v22  ;;  %v2473_v42 = vmul.f32 %v5463_v28, %v2455_v24 }
 0xb6f   : > { %v2475_v25 = vmul.f32 %v5445_v12, %v2457_v20  ;;  %v2476_v26 = vmul.f32 %v5447_v15, %v2458_v21  ;;  %v2432_v45 = vrot.slane %v2374_v36, 4  ;;  %v2433_v46 = vrot.slane %v2372_v31, 4 }
 0xb70   : > { %v2376_v32 = vpop.permute.xlu0 %2375  ;;  %v2379_v34 = vpop.permute.xlu1 %2378 }
 0xb71   : > { %v2381_v37 = vsel %vm2380_vm10, %v2379_v34, %v2376_v32  ;;  %v2384_v38 = vsel %vm2380_vm10, %v2376_v32, %v2379_v34  ;;  %2519 = vmatprep.subr.mxu0 %v2476_v26 }
 0xb72   : > { %v2453_v40 = vsel %vm1452_vm12, %v2384_v38, %v2437_v29  ;;  %v2454_v41 = vsel %vm1452_vm12, %v2381_v37, %v2438_v30  ;;  %2520 = vmatpush1.msra.mxu0 %v2475_v25 }
 0xb73   : > { %v2471_v43 = vmul.f32 %v5466_v33, %v2453_v40  ;;  %2521 = vmatprep.subr.mxu0 %v2474_v39  ;;  %v2472_v44 = vmul.f32 %v5468_v58, %v2454_v41 }
 0xb74   : > { %v2356_v47 = vpop.permute.xlu0 %2355  ;;  %2522 = vmatpush1.msra.mxu0 %v2473_v42  ;;  %v2360_v51 = vpop.permute.xlu1 %2359 }
 0xb75   : > { %v2362_v52 = vsel %vm2361_vm11, %v2360_v51, %v2356_v47  ;;  %v2365_v53 = vsel %vm2361_vm11, %v2356_v47, %v2360_v51  ;;  %2523 = vmatprep.subr.mxu0 %v2472_v44 }
 0xb76   : > { %v2451_v54 = vsel %vm1452_vm12, %v2365_v53, %v2432_v45  ;;  %v2452_v55 = vsel %vm1452_vm12, %v2362_v52, %v2433_v46  ;;  %2524 = vmatpush1.msra.mxu0 %v2471_v43 }
 0xb77   : > { %v2469_v56 = vmul.f32 %v5479_v48, %v2451_v54  ;;  %v2470_v60 = vmul.f32 %v5481_v2, %v2452_v55 }
 0xb79   : > { %2525 = vmatprep.subr.mxu0 %v2470_v60 }
 0xb7a   : > { %2526 = vmatpush1.msra.mxu0 %v2469_v56 }
 0xb7b   : > { %3773 = vmatmul.mubr.msk.f32.vlgmr.msra.gmra.mxu0 %vm1637_vm6, %v2479_v61 }
 0xb7c   : > { %2754 = vmatprep.mubr.f32.mxu0 %v4696_v1 }
 0xb81   : > { %v2484_v62 = vpop.permute.xlu0 %2483 }
 0xc3b   : > { %v2561_v63 = vpop.f32.mrf.mxu0 }
 0xc3c   : > { %v2562_v13 = vadd.f32 %v2561_v63, %v2484_v62 }
 0xc3d   : > { %v2563_v0 = vpop.f32.mrf.mxu0 }
 0xc3e   : > { %2597 = vrot.lane.b32.xlu0 %v2562_v13, %s5870_s6  ;;  %2619 = vrot.lane.b32.xlu1 %v2562_v13, %s4715_s19  ;;  %v2564_v18 = vadd.f32 %v2563_v0, %v2484_v62 }
 0xc42   : > { %2580 = vrot.lane.b32.xlu0 %v2562_v13, %s4716_s18  ;;  %2627 = vrot.lane.b32.xlu1 %v2562_v13, %s4717_s4 }
 0xc46   : > { %2621 = vrot.lane.b32.xlu0 %v2564_v18, %s4715_s19  ;;  %2602 = vrot.lane.b32.xlu1 %v2562_v13, %s5868_s3 }
 0xc4a   : > { %2629 = vrot.lane.b32.xlu0 %v2564_v18, %s4717_s4  ;;  %2610 = vrot.lane.b32.xlu1 %v2562_v13, %s4718_s8 }
 0xc4e   : > { %2604 = vrot.lane.b32.xlu0 %v2564_v18, %s5868_s3  ;;  %2594 = vrot.lane.b32.xlu1 %v2564_v18, %s5870_s6 }
 0xc52   : > { %2612 = vrot.lane.b32.xlu0 %v2564_v18, %s4718_s8  ;;  %2577 = vrot.lane.b32.xlu1 %v2564_v18, %s4716_s18 }
 0xc56   : > { %2588 = vrot.lane.b32.xlu0 %v2562_v13, %s4719_s15  ;;  %2585 = vrot.lane.b32.xlu1 %v2564_v18, %s4719_s15 }
 0xc5a   : > { %2571 = vrot.lane.b32.xlu0 %v2562_v13, %s4720_s13  ;;  %2567 = vrot.lane.b32.xlu1 %v2564_v18, %s4720_s13 }
 0xc5e   : > { %2678 = vperm.xlu1 %4146, %v2675_v3  }
 0xcb0   : > { %v2598_v4 = vpop.permute.xlu0 %2597  ;;  %v2620_v5 = vpop.permute.xlu1 %2619 }
 0xcb4   : > { %v2581_v6 = vpop.permute.xlu0 %2580  ;;  %v2628_v7 = vpop.permute.xlu1 %2627 }
 0xcb8   : > { %v2622_v8 = vpop.permute.xlu0 %2621  ;;  %v2603_v9 = vpop.permute.xlu1 %2602 }
 0xcb9   : > { %v2623_v20 = vsel %vm2416_vm5, %v2620_v5, %v2622_v8  ;;  %v2626_v21 = vsel %vm2416_vm5, %v2622_v8, %v2620_v5 }
 0xcba   : > { %v2652_v29 = vrot.slane %v2623_v20, 4  ;;  %v2653_v30 = vrot.slane %v2626_v21, 4 }
 0xcbc   : > { %v2630_v10 = vpop.permute.xlu0 %2629  ;;  %v2611_v27 = vpop.permute.xlu1 %2610 }
 0xcbd   : > { %v2631_v11 = vsel %vm2425_vm3, %v2628_v7, %v2630_v10  ;;  %v2635_v14 = vsel %vm2425_vm3, %v2630_v10, %v2628_v7 }
 0xcbe   : > { %v2672_v16 = vmul.f32 %v2631_v11, %v5431_v57  ;;  %v2673_v17 = vmul.f32 %v2635_v14, %v5433_v59 }
 0xcc0   : > { %v2605_v19 = vpop.permute.xlu0 %2604  ;;  %3774 = vmatprep.subr.msk.mxu0 %vm1452_vm12, %v2673_v17  ;;  %v2595_v35 = vpop.permute.xlu1 %2594 }
 0xcc1   : > { %v2606_v22 = vsel %vm2397_vm7, %v2603_v9, %v2605_v19  ;;  %v2609_v24 = vsel %vm2397_vm7, %v2605_v19, %v2603_v9  ;;  %3775 = vmatpush1.msk.msra.mxu0 %vm1452_vm12, %v2672_v16  ;;  %v2599_v34 = vsel %vm1392_vm4, %v2598_v4, %v2595_v35  ;;  %v2601_v36 = vsel %vm1392_vm4, %v2595_v35, %v2598_v4  ;;  %v2870_v35 = vld [vmem:[%s5888_s28] sm:$0xf] }
 0xcc2   : > { %v2648_v25 = vrot.slane %v2609_v24, 4  ;;  %v2647_v26 = vrot.slane %v2606_v22, 4  ;;  %v2642_v45 = vrot.slane %v2601_v36, 4  ;;  %v2643_v46 = vrot.slane %v2599_v34, 4 }
 0xcc4   : > { %v2613_v31 = vpop.permute.xlu0 %2612  ;;  %v2578_v32 = vpop.permute.xlu1 %2577  ;;  %v2661_v41 = vsel %vm1452_vm12, %v2564_v18, %v2648_v25  ;;  %v2660_v42 = vsel %vm1452_vm12, %v2562_v13, %v2647_v26 }
 0xcc5   : > { %v2614_v37 = vsel %vm2406_vm8, %v2611_v27, %v2613_v31  ;;  %v2618_v38 = vsel %vm2406_vm8, %v2613_v31, %v2611_v27  ;;  %v2582_v47 = vsel %vm2371_vm9, %v2581_v6, %v2578_v32  ;;  %v2584_v53 = vsel %vm2371_vm9, %v2578_v32, %v2581_v6  ;;  %v2674_v27 = vld [vmem:[%s5887_s16] sm:$0xf] }
 0xcc6   : > { %v2662_v39 = vsel %vm1452_vm12, %v2614_v37, %v2652_v29  ;;  %v2663_v40 = vsel %vm1452_vm12, %v2618_v38, %v2653_v30  ;;  %v2669_v56 = vmul.f32 %v2661_v41, %v5457_v23  ;;  %v2668_v62 = vmul.f32 %v2660_v42, %v5463_v28 }
 0xcc7   : > { %v2670_v43 = vmul.f32 %v2662_v39, %v5445_v12  ;;  %v2671_v44 = vmul.f32 %v2663_v40, %v5447_v15  ;;  %v2637_v0 = vrot.slane %v2584_v53, 4  ;;  %v2638_v18 = vrot.slane %v2582_v47, 4 }
 0xcc8   : > { %v2589_v51 = vpop.permute.xlu0 %2588  ;;  %v2586_v52 = vpop.permute.xlu1 %2585 }
 0xcc9   : > { %v2590_v54 = vsel %vm2380_vm10, %v2589_v51, %v2586_v52  ;;  %v2593_v55 = vsel %vm2380_vm10, %v2586_v52, %v2589_v51  ;;  %2714 = vmatprep.subr.mxu0 %v2671_v44 }
 0xcca   : > { %v2658_v60 = vsel %vm1452_vm12, %v2593_v55, %v2642_v45  ;;  %v2659_v61 = vsel %vm1452_vm12, %v2590_v54, %v2643_v46  ;;  %2715 = vmatpush1.msra.mxu0 %v2670_v43 }
 0xccb   : > { %v2666_v63 = vmul.f32 %v2658_v60, %v5466_v33  ;;  %2716 = vmatprep.subr.mxu0 %v2669_v56  ;;  %v2667_v13 = vmul.f32 %v2659_v61, %v5468_v58 }
 0xccc   : > { %v2572_v3 = vpop.permute.xlu0 %2571  ;;  %2717 = vmatpush1.msra.mxu0 %v2668_v62  ;;  %v2568_v4 = vpop.permute.xlu1 %2567 }
 0xccd   : > { %v2573_v5 = vsel %vm2361_vm11, %v2572_v3, %v2568_v4  ;;  %v2576_v6 = vsel %vm2361_vm11, %v2568_v4, %v2572_v3  ;;  %2718 = vmatprep.subr.mxu0 %v2667_v13 }
 0xcce   : > { %v2656_v7 = vsel %vm1452_vm12, %v2576_v6, %v2637_v0  ;;  %v2657_v8 = vsel %vm1452_vm12, %v2573_v5, %v2638_v18  ;;  %2719 = vmatpush1.msra.mxu0 %v2666_v63 }
 0xccf   : > { %v2664_v9 = vmul.f32 %v2656_v7, %v5479_v48  ;;  %v2665_v10 = vmul.f32 %v2657_v8, %v5481_v2 }
 0xcd1   : > { %2720 = vmatprep.subr.mxu0 %v2665_v10 }
 0xcd2   : > { %2721 = vmatpush1.msra.mxu0 %v2664_v9 }
 0xcd3   : > { %3776 = vmatmul.mubr.msk.f32.vlgmr.msra.gmra.mxu0 %vm1637_vm6, %v2674_v27 }
 0xcd4   : > { %3198 = vmatprep.mubr.f32.mxu0 %v4696_v1 }
 0xcd9   : > { %v2679_v11 = vpop.permute.xlu1 %2678 }
 0xd93   : > { %v2756_v14 = vpop.f32.mrf.mxu0 }
 0xd94   : > { %v2757_v16 = vadd.f32 %v2756_v14, %v2679_v11 }
 0xd95   : > { %v2758_v17 = vpop.f32.mrf.mxu0 }
 0xd96   : > { %2792 = vrot.lane.b32.xlu1 %v2757_v16, %s5870_s6  ;;  %2814 = vrot.lane.b32.xlu0 %v2757_v16, %s4715_s19  ;;  %v2759_v19 = vadd.f32 %v2758_v17, %v2679_v11 }
 0xd9a   : > { %2775 = vrot.lane.b32.xlu1 %v2757_v16, %s4716_s18  ;;  %2822 = vrot.lane.b32.xlu0 %v2757_v16, %s4717_s4 }
 0xd9e   : > { %2816 = vrot.lane.b32.xlu1 %v2759_v19, %s4715_s19  ;;  %2797 = vrot.lane.b32.xlu0 %v2757_v16, %s5868_s3 }
 0xda2   : > { %2824 = vrot.lane.b32.xlu1 %v2759_v19, %s4717_s4  ;;  %2805 = vrot.lane.b32.xlu0 %v2757_v16, %s4718_s8 }
 0xda6   : > { %2799 = vrot.lane.b32.xlu1 %v2759_v19, %s5868_s3  ;;  %2789 = vrot.lane.b32.xlu0 %v2759_v19, %s5870_s6 }
 0xdaa   : > { %2807 = vrot.lane.b32.xlu1 %v2759_v19, %s4718_s8  ;;  %2772 = vrot.lane.b32.xlu0 %v2759_v19, %s4716_s18 }
 0xdae   : > { %2783 = vrot.lane.b32.xlu1 %v2757_v16, %s4719_s15  ;;  %2780 = vrot.lane.b32.xlu0 %v2759_v19, %s4719_s15 }
 0xdb2   : > { %2766 = vrot.lane.b32.xlu1 %v2757_v16, %s4720_s13  ;;  %2762 = vrot.lane.b32.xlu0 %v2759_v19, %s4720_s13 }
 0xdb6   : > { %2873 = vperm.xlu0 %4145, %v2870_v35  }
 0xe08   : > { %v2793_v20 = vpop.permute.xlu1 %2792  ;;  %v2815_v21 = vpop.permute.xlu0 %2814 }
 0xe0c   : > { %v2776_v22 = vpop.permute.xlu1 %2775  ;;  %v2823_v24 = vpop.permute.xlu0 %2822 }
 0xe10   : > { %v2817_v25 = vpop.permute.xlu1 %2816  ;;  %v2798_v26 = vpop.permute.xlu0 %2797 }
 0xe11   : > { %v2818_v39 = vsel %vm2416_vm5, %v2815_v21, %v2817_v25  ;;  %v2821_v40 = vsel %vm2416_vm5, %v2817_v25, %v2815_v21 }
 0xe12   : > { %v2847_v45 = vrot.slane %v2818_v39, 4  ;;  %v2848_v46 = vrot.slane %v2821_v40, 4 }
 0xe14   : > { %v2825_v29 = vpop.permute.xlu1 %2824  ;;  %v2806_v30 = vpop.permute.xlu0 %2805 }
 0xe15   : > { %v2826_v31 = vsel %vm2425_vm3, %v2823_v24, %v2825_v29  ;;  %v2830_v32 = vsel %vm2425_vm3, %v2825_v29, %v2823_v24 }
 0xe16   : > { %v2867_v34 = vmul.f32 %v2826_v31, %v5431_v57  ;;  %v2868_v36 = vmul.f32 %v2830_v32, %v5433_v59 }
 0xe18   : > { %v2800_v37 = vpop.permute.xlu1 %2799  ;;  %3777 = vmatprep.subr.msk.mxu1 %vm1452_vm12, %v2868_v36  ;;  %v2790_v38 = vpop.permute.xlu0 %2789 }
 0xe19   : > { %v2801_v41 = vsel %vm2397_vm7, %v2798_v26, %v2800_v37  ;;  %v2804_v42 = vsel %vm2397_vm7, %v2800_v37, %v2798_v26  ;;  %3778 = vmatpush1.msk.msra.mxu1 %vm1452_vm12, %v2867_v34  ;;  %v2794_v52 = vsel %vm1392_vm4, %v2793_v20, %v2790_v38  ;;  %v2796_v53 = vsel %vm1392_vm4, %v2790_v38, %v2793_v20 }
 0xe1a   : > { %v2843_v43 = vrot.slane %v2804_v42, 4  ;;  %v2842_v44 = vrot.slane %v2801_v41, 4  ;;  %v2837_v0 = vrot.slane %v2796_v53, 4  ;;  %v2838_v18 = vrot.slane %v2794_v52, 4 }
 0xe1c   : > { %v2808_v47 = vpop.permute.xlu1 %2807  ;;  %v2773_v51 = vpop.permute.xlu0 %2772  ;;  %v2856_v61 = vsel %vm1452_vm12, %v2759_v19, %v2843_v43  ;;  %v2855_v62 = vsel %vm1452_vm12, %v2757_v16, %v2842_v44 }
 0xe1d   : > { %v2809_v54 = vsel %vm2406_vm8, %v2806_v30, %v2808_v47  ;;  %v2813_v55 = vsel %vm2406_vm8, %v2808_v47, %v2806_v30  ;;  %v2777_v3 = vsel %vm2371_vm9, %v2776_v22, %v2773_v51  ;;  %v2779_v6 = vsel %vm2371_vm9, %v2773_v51, %v2776_v22  ;;  %v2869_v30 = vld [vmem:[%s5889_s12] sm:$0xf] }
 0xe1e   : > { %v2857_v56 = vsel %vm1452_vm12, %v2809_v54, %v2847_v45  ;;  %v2858_v60 = vsel %vm1452_vm12, %v2813_v55, %v2848_v46  ;;  %v2864_v9 = vmul.f32 %v2856_v61, %v5457_v23  ;;  %v2863_v11 = vmul.f32 %v2855_v62, %v5463_v28  ;;  %v2978_v62 = vld [vmem:[%s5890_s10] sm:$0x3] }
 0xe1f   : > { %v2865_v63 = vmul.f32 %v2857_v56, %v5445_v12  ;;  %v2866_v13 = vmul.f32 %v2858_v60, %v5447_v15  ;;  %v2832_v17 = vrot.slane %v2779_v6, 4  ;;  %v2833_v19 = vrot.slane %v2777_v3, 4 }
 0xe20   : > { %v2784_v4 = vpop.permute.xlu1 %2783  ;;  %v2781_v5 = vpop.permute.xlu0 %2780  ;;  %v2980_v55 = vlaneseq }
 0xe21   : > { %v2785_v7 = vsel %vm2380_vm10, %v2784_v4, %v2781_v5  ;;  %v2788_v8 = vsel %vm2380_vm10, %v2781_v5, %v2784_v4  ;;  %2909 = vmatprep.subr.mxu1 %v2866_v13 }
 0xe22   : > { %v2853_v10 = vsel %vm1452_vm12, %v2788_v8, %v2837_v0  ;;  %v2854_v27 = vsel %vm1452_vm12, %v2785_v7, %v2838_v18  ;;  %2910 = vmatpush1.msra.mxu1 %v2865_v63  ;;  %v5609_v56 = vshrl.u32 %v2980_v55, 7  ;;  %v2992_v63 = vld [vmem:[%s5891_s0] sm:$0x3] }
 0xe23   : > { %v2861_v14 = vmul.f32 %v2853_v10, %v5466_v33  ;;  %2911 = vmatprep.subr.mxu1 %v2864_v9  ;;  %v2862_v16 = vmul.f32 %v2854_v27, %v5468_v58 }
 0xe24   : > { %v2767_v35 = vpop.permute.xlu1 %2766  ;;  %2912 = vmatpush1.msra.mxu1 %v2863_v11  ;;  %v2763_v20 = vpop.permute.xlu0 %2762  ;;  %v5612_v60 = vsub.s32 0, %v5609_v56  ;;  %v5615_v61 = vsub.s32 1, %v5609_v56 }
 0xe25   : > { %v2768_v21 = vsel %vm2361_vm11, %v2767_v35, %v2763_v20  ;;  %v2771_v22 = vsel %vm2361_vm11, %v2763_v20, %v2767_v35  ;;  %2913 = vmatprep.subr.mxu1 %v2862_v16 }
 0xe26   : > { %v2851_v24 = vsel %vm1452_vm12, %v2771_v22, %v2832_v17  ;;  %v2852_v25 = vsel %vm1452_vm12, %v2768_v21, %v2833_v19  ;;  %2914 = vmatpush1.msra.mxu1 %v2861_v14  ;;  %v2983_v18 = vrot.slane %v2978_v62, %v5612_v60  ;;  %v2987_v3 = vrot.slane %v2978_v62, %v5615_v61 }
 0xe27   : > { %v2859_v26 = vmul.f32 %v2851_v24, %v5479_v48  ;;  %v2860_v29 = vmul.f32 %v2852_v25, %v5481_v2  ;;  %v2997_v5 = vrot.slane %v2992_v63, %v5612_v60  ;;  %v3001_v6 = vrot.slane %v2992_v63, %v5615_v61 }
 0xe29   : > { %2915 = vmatprep.subr.mxu1 %v2860_v29 }
 0xe2a   : > { %2916 = vmatpush1.msra.mxu1 %v2859_v26 }
 0xe2b   : > { %3779 = vmatmul.mubr.msk.f32.vlgmr.msra.gmra.mxu1 %vm1637_vm6, %v2869_v30 }
 0xe2c   : > { %3449 = vmatprep.mubr.f32.mxu1 %v4696_v1 }
 0xe31   : > { %v2874_v31 = vpop.permute.xlu0 %2873 }
 0xeeb   : > { %v2951_v32 = vpop.f32.mrf.mxu1 }
 0xeec   : > { %v2952_v34 = vadd.f32 %v2951_v32, %v2874_v31 }
 0xeed   : > { %v2953_v36 = vpop.f32.mrf.mxu1 }
 0xeee   : > { %v2962_v37 = vmul.f32 %v2952_v34, %v2952_v34  ;;  %v2954_v38 = vadd.f32 %v2953_v36, %v2874_v31  ;;  %v2956_v40 = vsel %vm1452_vm12, %v2952_v34, 0.0 }
 0xef0   : > { %v2963_v39 = vmul.f32 %v2954_v38, %v2954_v38  ;;  %v2957_v41 = vsel %vm1452_vm12, %v2954_v38, 0.0  ;;  %v2964_v43 = vsel %vm1452_vm12, %v2962_v37, 0.0 }
 0xef1   : > { %v2958_v42 = vadd.f32 %v2957_v41, %v2956_v40 }
 0xef2   : > { %v2965_v44 = vsel %vm1452_vm12, %v2963_v39, 0.0 }
 0xef3   : > { %2959 = vadd.xlane.f32.xlu1 %v2958_v42  ;;  %v2966_v1 = vadd.f32 %v2965_v44, %v2964_v43 }
 0xef5   : > { %2967 = vadd.xlane.f32.xlu0 %v2966_v1 }
 0xf7c   : > { %v2960_v45 = vpop.xlane.xlu1 %2959 }
 0xf7d   : > { %v2961_v46 = vmul.f32 0.00390625, %v2960_v45 }
 0xf7e   : > { %v2968_v47 = vpop.xlane.xlu0 %2967 }
 0xf7f   : > { %v2969_v51 = vmul.f32 0.00390625, %v2968_v47  ;;  %v2970_v52 = vmul.f32 %v2961_v46, %v2961_v46  ;;  %v2972_v13 = vsub.f32 %v2952_v34, %v2961_v46  ;;  %v2973_v0 = vsub.f32 %v2954_v38, %v2961_v46 }
 0xf81   : > { %v2971_v53 = vsub.f32 %v2969_v51, %v2970_v52 }
 0xf83   : > { %v2974_v54 = vadd.f32 1e-05, %v2971_v53 }
 0xf85   : > { %4151 = vrsqrt.f32 %v2974_v54 }
 0xf92   : > { %v4152_v4 = vpop.eup %4151 }
 0xf93   : > { %v2976_v7 = vmul.f32 %v4152_v4, %v2972_v13  ;;  %v2977_v8 = vmul.f32 %v4152_v4, %v2973_v0 }
 0xf95   : > { %v2990_v9 = vmul.f32 %v2983_v18, %v2976_v7  ;;  %v2991_v10 = vmul.f32 %v2987_v3, %v2977_v8 }
 0xf97   : > { %v3004_v27 = vadd.f32 %v2997_v5, %v2990_v9  ;;  %v3005_v11 = vadd.f32 %v3001_v6, %v2991_v10 }
 0xf99   : > { %v3006_v14 = vmax.f32 %v3004_v27, 0.0  ;;  %v3007_v16 = vmax.f32 %v3005_v11, 0.0 }
 0xf9b   : > { %v3008_v17 = vadd.f32 %v3006_v14, %v5394_v49  ;;  %v3009_v19 = vadd.f32 %v3007_v16, %v5404_v50  ;;  %v3119_v49 = vld [vmem:[%s5892_s17] sm:$0xf] }
 0xf9d   : > { %3065 = vrot.lane.b32.xlu1 %v3009_v19, %s4715_s19  ;;  %3063 = vrot.lane.b32.xlu0 %v3008_v17, %s4715_s19 }
 0xfa1   : > { %3071 = vrot.lane.b32.xlu1 %v3008_v17, %s4717_s4  ;;  %3073 = vrot.lane.b32.xlu0 %v3009_v19, %s4717_s4 }
 0xfa5   : > { %3046 = vrot.lane.b32.xlu1 %v3008_v17, %s5868_s3  ;;  %3048 = vrot.lane.b32.xlu0 %v3009_v19, %s5868_s3 }
 0xfa9   : > { %3054 = vrot.lane.b32.xlu1 %v3008_v17, %s4718_s8  ;;  %3056 = vrot.lane.b32.xlu0 %v3009_v19, %s4718_s8 }
 0xfad   : > { %3038 = vrot.lane.b32.xlu1 %v3009_v19, %s5870_s6  ;;  %3041 = vrot.lane.b32.xlu0 %v3008_v17, %s5870_s6 }
 0xfb1   : > { %3021 = vrot.lane.b32.xlu1 %v3009_v19, %s4716_s18  ;;  %3024 = vrot.lane.b32.xlu0 %v3008_v17, %s4716_s18 }
 0xfb5   : > { %3029 = vrot.lane.b32.xlu1 %v3009_v19, %s4719_s15  ;;  %3032 = vrot.lane.b32.xlu0 %v3008_v17, %s4719_s15 }
 0xfb9   : > { %3011 = vrot.lane.b32.xlu1 %v3009_v19, %s4720_s13  ;;  %3015 = vrot.lane.b32.xlu0 %v3008_v17, %s4720_s13 }
 0xfbd   : > { %3122 = vperm.xlu1 %4146, %v3119_v49  }
0x100f   : > { %v3066_v50 = vpop.permute.xlu1 %3065  ;;  %v3064_v35 = vpop.permute.xlu0 %3063 }
0x1010   : > { %v3067_v31 = vsel %vm2416_vm5, %v3064_v35, %v3066_v50  ;;  %v3070_v32 = vsel %vm2416_vm5, %v3066_v50, %v3064_v35 }
0x1011   : > { %v3096_v39 = vrot.slane %v3067_v31, 4  ;;  %v3097_v40 = vrot.slane %v3070_v32, 4 }
0x1013   : > { %v3072_v20 = vpop.permute.xlu1 %3071  ;;  %v3074_v21 = vpop.permute.xlu0 %3073 }
0x1014   : > { %v3075_v22 = vsel %vm2425_vm3, %v3072_v20, %v3074_v21  ;;  %v3079_v24 = vsel %vm2425_vm3, %v3074_v21, %v3072_v20 }
0x1015   : > { %v3116_v25 = vmul.f32 %v3075_v22, %v5431_v57  ;;  %v3117_v26 = vmul.f32 %v3079_v24, %v5433_v59 }
0x1017   : > { %v3047_v29 = vpop.permute.xlu1 %3046  ;;  %3780 = vmatprep.subr.msk.mxu0 %vm1452_vm12, %v3117_v26  ;;  %v3049_v30 = vpop.permute.xlu0 %3048 }
0x1018   : > { %v3050_v34 = vsel %vm2397_vm7, %v3047_v29, %v3049_v30  ;;  %v3053_v36 = vsel %vm2397_vm7, %v3049_v30, %v3047_v29  ;;  %3781 = vmatpush1.msk.msra.mxu0 %vm1452_vm12, %v3116_v25  ;;  %v3118_v29 = vld [vmem:[%s5893_s14] sm:$0xf] }
0x1019   : > { %v3092_v37 = vrot.slane %v3053_v36, 4  ;;  %v3091_v38 = vrot.slane %v3050_v34, 4 }
0x101b   : > { %v3055_v41 = vpop.permute.xlu1 %3054  ;;  %v3057_v42 = vpop.permute.xlu0 %3056  ;;  %v3105_v46 = vsel %vm1452_vm12, %v3009_v19, %v3092_v37  ;;  %v3104_v47 = vsel %vm1452_vm12, %v3008_v17, %v3091_v38 }
0x101c   : > { %v3058_v43 = vsel %vm2406_vm8, %v3055_v41, %v3057_v42  ;;  %v3062_v44 = vsel %vm2406_vm8, %v3057_v42, %v3055_v41  ;;  %v3113_v62 = vmul.f32 %v3105_v46, %v5457_v23  ;;  %v3112_v63 = vmul.f32 %v3104_v47, %v5463_v28 }
0x101d   : > { %v3106_v1 = vsel %vm1452_vm12, %v3058_v43, %v3096_v39  ;;  %v3107_v45 = vsel %vm1452_vm12, %v3062_v44, %v3097_v40 }
0x101e   : > { %v3114_v51 = vmul.f32 %v3106_v1, %v5445_v12  ;;  %v3115_v52 = vmul.f32 %v3107_v45, %v5447_v15 }
0x101f   : > { %v3039_v53 = vpop.permute.xlu1 %3038  ;;  %v3042_v54 = vpop.permute.xlu0 %3041 }
0x1020   : > { %3158 = vmatprep.subr.mxu0 %v3115_v52  ;;  %v3043_v18 = vsel %vm1392_vm4, %v3042_v54, %v3039_v53  ;;  %v3045_v3 = vsel %vm1392_vm4, %v3039_v53, %v3042_v54  ;;  %v3227_v54 = vld [vmem:[%s5894_s2] sm:$0x3] }
0x1021   : > { %3159 = vmatpush1.msra.mxu0 %v3114_v51  ;;  %v3086_v4 = vrot.slane %v3045_v3, 4  ;;  %v3087_v5 = vrot.slane %v3043_v18, 4  ;;  %v3236_v18 = vrot.slane %v3227_v54, %v5615_v61 }
0x1022   : > { %3160 = vmatprep.subr.mxu0 %v3113_v62  ;;  %v3241_v62 = vld [vmem:[%s4890_s9] sm:$0x3] }
0x1023   : > { %v3022_v13 = vpop.permute.xlu1 %3021  ;;  %3161 = vmatpush1.msra.mxu0 %v3112_v63  ;;  %v3025_v0 = vpop.permute.xlu0 %3024 }
0x1024   : > { %v3026_v8 = vsel %vm2371_vm9, %v3025_v0, %v3022_v13  ;;  %v3028_v9 = vsel %vm2371_vm9, %v3022_v13, %v3025_v0  ;;  %v3232_v0 = vrot.slane %v3227_v54, %v5612_v60 }
0x1025   : > { %v3081_v19 = vrot.slane %v3028_v9, 4  ;;  %v3082_v49 = vrot.slane %v3026_v8, 4 }
0x1027   : > { %v3030_v6 = vpop.permute.xlu1 %3029  ;;  %v3033_v7 = vpop.permute.xlu0 %3032 }
0x1028   : > { %v3034_v10 = vsel %vm2380_vm10, %v3033_v7, %v3030_v6  ;;  %v3037_v27 = vsel %vm2380_vm10, %v3030_v6, %v3033_v7 }
0x1029   : > { %v3102_v11 = vsel %vm1452_vm12, %v3037_v27, %v3086_v4  ;;  %v3103_v14 = vsel %vm1452_vm12, %v3034_v10, %v3087_v5  ;;  %v3246_v4 = vrot.slane %v3241_v62, %v5612_v60  ;;  %v3250_v5 = vrot.slane %v3241_v62, %v5615_v61  ;;  %v3366_v61 = vld [vmem:[#allocation2] sm:$0x1] }
0x102a   : > { %v3110_v16 = vmul.f32 %v3102_v11, %v5466_v33  ;;  %v3111_v17 = vmul.f32 %v3103_v14, %v5468_v58 }
0x102b   : > { %v3012_v50 = vpop.permute.xlu1 %3011  ;;  %v3016_v35 = vpop.permute.xlu0 %3015 }
0x102c   : > { %v3017_v20 = vsel %vm2361_vm11, %v3016_v35, %v3012_v50  ;;  %v3020_v21 = vsel %vm2361_vm11, %v3012_v50, %v3016_v35  ;;  %3162 = vmatprep.subr.mxu0 %v3111_v17 }
0x102d   : > { %v3100_v22 = vsel %vm1452_vm12, %v3020_v21, %v3081_v19  ;;  %v3101_v24 = vsel %vm1452_vm12, %v3017_v20, %v3082_v49  ;;  %3163 = vmatpush1.msra.mxu0 %v3110_v16 }
0x102e   : > { %v3108_v25 = vmul.f32 %v3100_v22, %v5479_v48  ;;  %v3109_v26 = vmul.f32 %v3101_v24, %v5481_v2 }
0x1030   : > { %3164 = vmatprep.subr.mxu0 %v3109_v26 }
0x1031   : > { %3165 = vmatpush1.msra.mxu0 %v3108_v25 }
0x1032   : > { %3782 = vmatmul.mubr.msk.f32.vlgmr.msra.gmra.mxu0 %vm1637_vm6, %v3118_v29 }
0x1038   : > { %v3123_v30 = vpop.permute.xlu1 %3122 }
0x10f2   : > { %v3200_v31 = vpop.f32.mrf.mxu0 }
0x10f3   : > { %v3201_v32 = vadd.f32 %v3200_v31, %v3123_v30 }
0x10f4   : > { %v3202_v34 = vpop.f32.mrf.mxu0 }
0x10f5   : > { %v3211_v36 = vmul.f32 %v3201_v32, %v3201_v32  ;;  %v3203_v37 = vadd.f32 %v3202_v34, %v3123_v30  ;;  %v3205_v39 = vsel %vm1452_vm12, %v3201_v32, 0.0 }
0x10f7   : > { %v3212_v38 = vmul.f32 %v3203_v37, %v3203_v37  ;;  %v3206_v40 = vsel %vm1452_vm12, %v3203_v37, 0.0  ;;  %v3213_v42 = vsel %vm1452_vm12, %v3211_v36, 0.0 }
0x10f8   : > { %v3207_v41 = vadd.f32 %v3206_v40, %v3205_v39 }
0x10f9   : > { %v3214_v43 = vsel %vm1452_vm12, %v3212_v38, 0.0 }
0x10fa   : > { %3208 = vadd.xlane.f32.xlu0 %v3207_v41  ;;  %v3215_v44 = vadd.f32 %v3214_v43, %v3213_v42 }
0x10fc   : > { %3216 = vadd.xlane.f32.xlu1 %v3215_v44 }
0x1183   : > { %v3209_v1 = vpop.xlane.xlu0 %3208 }
0x1184   : > { %v3210_v45 = vmul.f32 0.00390625, %v3209_v1 }
0x1185   : > { %v3217_v46 = vpop.xlane.xlu1 %3216 }
0x1186   : > { %v3218_v47 = vmul.f32 0.00390625, %v3217_v46  ;;  %v3219_v51 = vmul.f32 %v3210_v45, %v3210_v45  ;;  %v3221_v63 = vsub.f32 %v3201_v32, %v3210_v45  ;;  %v3222_v13 = vsub.f32 %v3203_v37, %v3210_v45 }
0x1188   : > { %v3220_v52 = vsub.f32 %v3218_v47, %v3219_v51 }
0x118a   : > { %v3223_v53 = vadd.f32 1e-05, %v3220_v52 }
0x118c   : > { %4153 = vrsqrt.f32 %v3223_v53 }
0x1199   : > { %v4154_v3 = vpop.eup %4153 }
0x119a   : > { %v3225_v6 = vmul.f32 %v4154_v3, %v3221_v63  ;;  %v3226_v7 = vmul.f32 %v4154_v3, %v3222_v13 }
0x119c   : > { %v3239_v8 = vmul.f32 %v3232_v0, %v3225_v6  ;;  %v3240_v9 = vmul.f32 %v3236_v18, %v3226_v7 }
0x119e   : > { %v3253_v10 = vadd.f32 %v3246_v4, %v3239_v8  ;;  %v3254_v27 = vadd.f32 %v3250_v5, %v3240_v9 }
0x11a0   : > { %v3255_v11 = vmax.f32 %v3253_v10, 0.0  ;;  %v3256_v14 = vmax.f32 %v3254_v27, 0.0 }
0x11a2   : > { %3312 = vrot.lane.b32.xlu1 %v3256_v14, %s4715_s19  ;;  %3310 = vrot.lane.b32.xlu0 %v3255_v11, %s4715_s19 }
0x11a6   : > { %3320 = vrot.lane.b32.xlu1 %v3256_v14, %s4717_s4  ;;  %3318 = vrot.lane.b32.xlu0 %v3255_v11, %s4717_s4 }
0x11aa   : > { %3295 = vrot.lane.b32.xlu1 %v3256_v14, %s5868_s3  ;;  %3293 = vrot.lane.b32.xlu0 %v3255_v11, %s5868_s3  ;;  %s3754_s3 = sshll.u32 %s5901_s1, 1 }
0x11ae   : > { %3303 = vrot.lane.b32.xlu1 %v3256_v14, %s4718_s8  ;;  %3301 = vrot.lane.b32.xlu0 %v3255_v11, %s4718_s8 }
0x11b2   : > { %3288 = vrot.lane.b32.xlu1 %v3255_v11, %s5870_s6  ;;  %3285 = vrot.lane.b32.xlu0 %v3256_v14, %s5870_s6  ;;  %s5895_s6 = sld [smem:[#allocation63_spill]] }
0x11b6   : > { %3271 = vrot.lane.b32.xlu1 %v3255_v11, %s4716_s18  ;;  %3268 = vrot.lane.b32.xlu0 %v3256_v14, %s4716_s18 }
0x11b8   : > { %s1280_s19 = scalar_lea.vmem %s5895_s6, %s3754_s3 }
0x11ba   : > { %3279 = vrot.lane.b32.xlu1 %v3255_v11, %s4719_s15  ;;  %3276 = vrot.lane.b32.xlu0 %v3256_v14, %s4719_s15 }
0x11be   : > { %3262 = vrot.lane.b32.xlu1 %v3255_v11, %s4720_s13  ;;  %3258 = vrot.lane.b32.xlu0 %v3256_v14, %s4720_s13 }
0x11c2   : > { %3369 = vperm.xlu0 %4145, %v3366_v61   ;;  %v3365_v61 = vld [vmem:[%s4895_s5] sm:$0x1] }
0x1214   : > { %v3313_v16 = vpop.permute.xlu1 %3312  ;;  %v3311_v17 = vpop.permute.xlu0 %3310 }
0x1215   : > { %v3314_v25 = vsel %vm2416_vm5, %v3311_v17, %v3313_v16  ;;  %v3317_v26 = vsel %vm2416_vm5, %v3313_v16, %v3311_v17  ;;  %v4721_v16 = vmov 1966171168  }
0x1216   : > { %v3343_v34 = vrot.slane %v3314_v25, 4  ;;  %v3460_v17 = vunpack.c.l.s4 %v4721_v16 }
0x1218   : > { %v3321_v19 = vpop.permute.xlu1 %3320  ;;  %v3319_v49 = vpop.permute.xlu0 %3318 }
0x1219   : > { %v3322_v50 = vsel %vm2425_vm3, %v3319_v49, %v3321_v19  ;;  %v3326_v35 = vsel %vm2425_vm3, %v3321_v19, %v3319_v49  ;;  %v3461_v49 = vunpack.c.0.s8 %v3460_v17 }
0x121a   : > { %v3363_v20 = vmul.f32 %v3322_v50, %v5431_v57  ;;  %v3364_v21 = vmul.f32 %v3326_v35, %v5433_v59  ;;  %v3344_v57 = vrot.slane %v3317_v26, 4 }
0x121c   : > { %v3296_v22 = vpop.permute.xlu1 %3295  ;;  %3783 = vmatprep.subr.msk.mxu1 %vm1452_vm12, %v3364_v21  ;;  %v3294_v24 = vpop.permute.xlu0 %3293 }
0x121d   : > { %v3297_v29 = vsel %vm2397_vm7, %v3294_v24, %v3296_v22  ;;  %v3300_v30 = vsel %vm2397_vm7, %v3296_v22, %v3294_v24  ;;  %3784 = vmatpush1.msk.msra.mxu1 %vm1452_vm12, %v3363_v20 }
0x121e   : > { %v3339_v31 = vrot.slane %v3300_v30, 4  ;;  %v3338_v32 = vrot.slane %v3297_v29, 4 }
0x1220   : > { %v3304_v36 = vpop.permute.xlu1 %3303  ;;  %v3302_v59 = vpop.permute.xlu0 %3301  ;;  %v3352_v41 = vsel %vm1452_vm12, %v3256_v14, %v3339_v31  ;;  %v3351_v42 = vsel %vm1452_vm12, %v3255_v11, %v3338_v32 }
0x1221   : > { %v3305_v37 = vsel %vm2406_vm8, %v3302_v59, %v3304_v36  ;;  %v3309_v38 = vsel %vm2406_vm8, %v3304_v36, %v3302_v59  ;;  %v3360_v46 = vmul.f32 %v3352_v41, %v5457_v23  ;;  %v3359_v47 = vmul.f32 %v3351_v42, %v5463_v28 }
0x1222   : > { %v3353_v39 = vsel %vm1452_vm12, %v3305_v37, %v3343_v34  ;;  %v3354_v40 = vsel %vm1452_vm12, %v3309_v38, %v3344_v57 }
0x1223   : > { %v3361_v43 = vmul.f32 %v3353_v39, %v5445_v12  ;;  %v3362_v44 = vmul.f32 %v3354_v40, %v5447_v15 }
0x1224   : > { %v3289_v1 = vpop.permute.xlu1 %3288  ;;  %v3286_v45 = vpop.permute.xlu0 %3285 }
0x1225   : > { %3409 = vmatprep.subr.mxu1 %v3362_v44  ;;  %v3290_v53 = vsel %vm1392_vm4, %v3289_v1, %v3286_v45  ;;  %v3292_v54 = vsel %vm1392_vm4, %v3286_v45, %v3289_v1  ;;  %vm3476_vm4 = vcmp.lt.s32.totalorder %v2980_v55, 256 }
0x1226   : > { %3410 = vmatpush1.msra.mxu1 %v3361_v43  ;;  %v3333_v62 = vrot.slane %v3292_v54, 4  ;;  %v3334_v12 = vrot.slane %v3290_v53, 4 }
0x1227   : > { %3411 = vmatprep.subr.mxu1 %v3360_v46 }
0x1228   : > { %v3272_v51 = vpop.permute.xlu1 %3271  ;;  %3412 = vmatpush1.msra.mxu1 %v3359_v47  ;;  %v3269_v52 = vpop.permute.xlu0 %3268 }
0x1229   : > { %v3273_v13 = vsel %vm2371_vm9, %v3272_v51, %v3269_v52  ;;  %v3275_v0 = vsel %vm2371_vm9, %v3269_v52, %v3272_v51 }
0x122a   : > { %v3328_v6 = vrot.slane %v3275_v0, 4  ;;  %v3329_v7 = vrot.slane %v3273_v13, 4 }
0x122c   : > { %v3280_v63 = vpop.permute.xlu1 %3279  ;;  %v3277_v15 = vpop.permute.xlu0 %3276 }
0x122d   : > { %v3281_v23 = vsel %vm2380_vm10, %v3280_v63, %v3277_v15  ;;  %v3284_v28 = vsel %vm2380_vm10, %v3277_v15, %v3280_v63 }
0x122e   : > { %v3349_v18 = vsel %vm1452_vm12, %v3284_v28, %v3333_v62  ;;  %v3350_v3 = vsel %vm1452_vm12, %v3281_v23, %v3334_v12 }
0x122f   : > { %v3357_v4 = vmul.f32 %v3349_v18, %v5466_v33  ;;  %v3358_v5 = vmul.f32 %v3350_v3, %v5468_v58 }
0x1230   : > { %v3263_v8 = vpop.permute.xlu1 %3262  ;;  %v3259_v9 = vpop.permute.xlu0 %3258 }
0x1231   : > { %v3264_v10 = vsel %vm2361_vm11, %v3263_v8, %v3259_v9  ;;  %v3267_v27 = vsel %vm2361_vm11, %v3259_v9, %v3263_v8  ;;  %3413 = vmatprep.subr.mxu1 %v3358_v5 }
0x1232   : > { %v3347_v11 = vsel %vm1452_vm12, %v3267_v27, %v3328_v6  ;;  %v3348_v14 = vsel %vm1452_vm12, %v3264_v10, %v3329_v7  ;;  %3414 = vmatpush1.msra.mxu1 %v3357_v4 }
0x1233   : > { %v3355_v33 = vmul.f32 %v3347_v11, %v5479_v48  ;;  %v3356_v58 = vmul.f32 %v3348_v14, %v5481_v2  ;;  %v3464_v2 = vsub.s32 %v3461_v49, %v5609_v56 }
0x1235   : > { %3415 = vmatprep.subr.mxu1 %v3356_v58 }
0x1236   : > { %3416 = vmatpush1.msra.mxu1 %v3355_v33 }
0x1237   : > { %3785 = vmatmul.mubr.msk.f32.vlgmr.msra.gmra.mxu1 %vm1637_vm6, %v3365_v61 }
0x123d   : > { %v3370_v19 = vpop.permute.xlu0 %3369 }
0x123e   : > { %v3375_v35 = vrot.slane %v3370_v19, %v5612_v60 }
0x12f7   : > { %v3451_v50 = vpop.f32.mrf.mxu1 }
0x12f8   : > { %v3452_v21 = vadd.f32 %v3451_v50, %v3375_v35 }
0x12f9   : > { %v3453_v20 = vpop.f32.mrf.mxu1 }
0x12fa   : > { %v3454_v48 = vadd.f32 %v3453_v20, %v3375_v35 }
0x12fc   : > { %v3458_v22 = vcombine.low %v3452_v21, %v3454_v48 }
0x12fe   : > { %v3465_v24 = vrot.slane %v3458_v22, %v3464_v2 }
0x1300   : > { %v3472_v25 = vrot.slane %v3465_v24, %v3464_v2 }
0x1302   : > { %3478 = vst.msk [vmem:[%s1280_s19] sm:$0x3] %vm3476_vm4, %v3472_v25 }
0x1303 PF: > { %p91_p6 = scmp.ge.s32.totalorder %s5045_s11, 4   ;;  %s5896_s22 = smov %s4631_s23 }
0x1304   : > { %s5897_s23 = smov %s4635_s26  ;;  %s5898_s26 = smov %s5056_s20 }
0x1305   : > { %s5899_s0 = smov %s5045_s11  ;;  %93 = sbr.rel (!%p91_p6) target bundleno = 80 (0x50), region = 295 }
0x130a   :  { %3498 = vsyncpa [#allocation4], 1 }
0x130b   :  { %3500 = vsyncpa [#allocation4 + $0x1], 1 }
0x130c   :  { %3501 = vsyncpa [#allocation6], 1 }
0x130d   :  { %3502 = vsyncpa [#allocation9], 1 }
0x130e   :  { %3503 = vsyncpa [#allocation12], 1 }
0x130f   :  { %3504 = vsyncpa [#allocation15], 1 }
0x1310   :  { %3505 = vsyncpa [#allocation18], 1 }
0x1311   :  { %3506 = vsyncpa [#allocation21], 1 }
0x1312   :  { %3507 = vsyncpa [#allocation24], 1 }
0x1313   :  { %3508 = vsyncpa [#allocation27], 1 }

</bundles_post_ra>
